<compile_context>
chip_gen: v7x
topology: tpu7x:2x2x1
jax: 0.10.0
libtpu: 0.0.40
codegen_flags: <defaults>
</compile_context>

<pallas_src>
import jax
import jax.numpy as jnp
from jax.experimental import pallas as pl
from jax.experimental.pallas import tpu as pltpu


# ----------------------------------------------------------------------------
# Pallas kernel: the entire MyNet forward as one fused chain of GEMMs
# ----------------------------------------------------------------------------
def _make_kernel(bias_slices, n_layers):
    """bias_slices: static (offset, width) per layer into the fused bias row."""

    def kernel(x_ref, *refs):
        w_refs = refs[:n_layers]
        b_ref = refs[n_layers]
        o_ref = refs[n_layers + 1]

        h = x_ref[...]                       # (TB, 2*bands) bf16
        for li in range(n_layers):
            off, n = bias_slices[li]
            y = jnp.dot(h, w_refs[li][...], preferred_element_type=jnp.float32)
            y = y + b_ref[:, off:off + n]    # static, 128-aligned bias slice
            # Layers 0..n-2 carry ReLU; last fc layer is linear.
            # TODO(synk): nn.Dropout(0.4) is eval-mode identity; not implemented.
            h = jnp.maximum(y, 0.0) if li < n_layers - 1 else y
        o_ref[...] = h.astype(o_ref.dtype)

    return kernel


def mynet_forward(inference_params, X, XS, *, batch_tile=None):
    """X, XS: (B, 1, bands, 1, 1) float32.  Returns (B, out_dim) float32."""
    B = X.shape[0]
    xa = X.reshape(B, -1)                                   # (B, bands) NCDHW flatten
    xb = XS.reshape(B, -1)                                  # (B, seg_bands)
    x = jnp.concatenate([xa, xb], axis=1).astype(jnp.bfloat16)   # (B, 2*bands)

    weights = inference_params["weights"]                   # 7 bf16 GEMM weights
    bias = inference_params["bias"]                         # (1, sum_N) f32
    bias_slices = inference_params["bias_slices"]
    out_dim = inference_params["out_dim"]
    n_layers = len(weights)
    n_out_pad = weights[-1].shape[1]                        # out_dim padded to 128

    # Batch tiling: single grid step for small B (weights DMA'd once); for very
    # large B shard batch tiles across cores (v7x megacore) with "parallel".
    if batch_tile is None:
        batch_tile = B if B <= 256 else 256
    if B % batch_tile != 0 or (batch_tile != B and batch_tile % 8 != 0):
        batch_tile = B
    n_tiles = B // batch_tile

    kernel = _make_kernel(bias_slices, n_layers)

    in_specs = [pl.BlockSpec((batch_tile, x.shape[1]), lambda i: (i, 0))]
    in_specs += [pl.BlockSpec(w.shape, lambda i: (0, 0)) for w in weights]
    in_specs.append(pl.BlockSpec(bias.shape, lambda i: (0, 0)))

    out = pl.pallas_call(
        kernel,
        out_shape=jax.ShapeDtypeStruct((B, n_out_pad), jnp.float32),
        grid=(n_tiles,),
        in_specs=in_specs,
        out_specs=pl.BlockSpec((batch_tile, n_out_pad), lambda i: (i, 0)),
        compiler_params=pltpu.CompilerParams(dimension_semantics=("parallel",)),
    )(x, *weights, bias)
    return out[:, :out_dim]


# ----------------------------------------------------------------------------
# Host-side parameter precompute: fold BN, drop zero taps, densify 1-D convs,
# merge branches block-diagonally, pad N to 128, fuse biases.
# ----------------------------------------------------------------------------
def _round_up(n, m=128):
    return ((n + m - 1) // m) * m


def _fold_bn(conv_bias, gamma, beta, mean, var, eps=1e-5):
    # eps must match the source model's BatchNorm eps (PyTorch default 1e-5).
    s = gamma / jnp.sqrt(var + eps)
    b = (conv_bias - mean) * s + beta
    return s, b


def _conv1d_to_dense(w_center, scale, bias_folded, d_in, pad=1):
    """Densify a 1-D conv (pad=1, stride=1) along the band axis into a GEMM.

    w_center: (cout, cin, kd) center-spatial-tap conv weights.
    Returns Wbig: (cin*d_in, cout*d_out), bias: (cout*d_out,), d_out.
    Row index = ci*d_in + din ; column index = co*d_out + dout (channel-major,
    matching PyTorch's NCDHW contiguous flattening / .view()).
    """
    cout, cin, kd = w_center.shape
    d_out = d_in + 2 * pad - kd + 1
    t = jnp.arange(d_in)[:, None] - jnp.arange(d_out)[None, :] + pad   # (d_in, d_out)
    valid = ((t >= 0) & (t < kd)).astype(jnp.float32)
    tc = jnp.clip(t, 0, kd - 1)

    w_scaled = w_center * scale[:, None, None]          # fold BN scale into weights
    W4 = w_scaled[:, :, tc] * valid[None, None, :, :]   # (cout, cin, d_in, d_out)
    Wbig = W4.transpose(1, 2, 0, 3).reshape(cin * d_in, cout * d_out)
    bias = jnp.repeat(bias_folded, d_out)               # (cout*d_out,) channel-major
    return Wbig, bias, d_out


def precompute_inference_params(params, bands, seg_bands, patch_size):
    assert patch_size == 1, "fused kernel is specialized for patch_size == 1"
    assert seg_bands == bands, "X.view(f_shape1) in the original net requires seg_bands == bands"
    # TODO(synk): patch_size > 1 would need the full 3x3 spatial im2col taps; not implemented.
    out_dim = params["fc3"][0].shape[0]

    def branch_mats(conv3d_layers, conv2d_params, d_in):
        mats, d = [], d_in
        for (w, b, g, be, m, v) in conv3d_layers:
            s, bf = _fold_bn(b, g, be, m, v)
            Wbig, bias, d = _conv1d_to_dense(w[:, :, :, 1, 1], s, bf, d)
            mats.append((Wbig, bias))
        w2, b2, g2, be2, m2, v2 = conv2d_params
        s2, bf2 = _fold_bn(b2, g2, be2, m2, v2)
        mats.append(((w2[:, :, 1, 1] * s2[:, None]).T, bf2))   # 1x1-effective conv2d
        return mats

    mats_a = branch_mats(params["conv3dseq"], params["conv2d1"], bands)
    mats_b = branch_mats(params["conv3dseq2"], params["conv2d2"], seg_bands)
    fc_mats = [(params[n][0].T, params[n][1]) for n in ("fc1", "fc2", "fc3")]

    # ---- merge branches into block-diagonal GEMMs, pad every N to 128 --------
    merged = []                 # (W_f32 (K_pad, N_pad), bias_f32 (N_pad,))
    k_pad = 2 * bands           # fused input: concat([xa, xb], axis=1)
    row_a, row_b = 0, bands
    for (Wa, ba), (Wb, bb) in zip(mats_a, mats_b):
        na, nb = Wa.shape[1], Wb.shape[1]
        n_pad = _round_up(na + nb)
        W = jnp.zeros((k_pad, n_pad), jnp.float32)
        W = W.at[row_a:row_a + Wa.shape[0], 0:na].set(Wa)
        W = W.at[row_b:row_b + Wb.shape[0], na:na + nb].set(Wb)
        bias = jnp.zeros((n_pad,), jnp.float32).at[0:na].set(ba).at[na:na + nb].set(bb)
        merged.append((W, bias))
        row_a, row_b, k_pad = 0, na, n_pad

    # fc1 with X.add_(XS) folded in: stack [Wfc1; Wfc1] over (A|B) 64+64 columns.
    Wf1, bf1 = fc_mats[0]
    W = jnp.zeros((k_pad, Wf1.shape[1]), jnp.float32)
    W = W.at[row_a:row_a + Wf1.shape[0], :].set(Wf1)
    W = W.at[row_b:row_b + Wf1.shape[0], :].set(Wf1)
    merged.append((W, bf1))

    merged.append(fc_mats[1])                               # fc2: (256, 128), aligned

    Wf3, bf3 = fc_mats[2]
    n_out_pad = _round_up(out_dim)
    W = jnp.zeros((Wf3.shape[0], n_out_pad), jnp.float32).at[:, :out_dim].set(Wf3)
    bias = jnp.zeros((n_out_pad,), jnp.float32).at[:out_dim].set(bf3)
    merged.append((W, bias))

    weights = tuple(W.astype(jnp.bfloat16) for (W, _) in merged)   # bf16 weights
    bias_slices, off = [], 0
    for (W, _) in merged:
        bias_slices.append((off, W.shape[1]))
        off += W.shape[1]
    bias_cat = jnp.concatenate([b for (_, b) in merged]).reshape(1, -1)   # f32

    return {
        "weights": weights,
        "bias": bias_cat,
        "bias_slices": tuple(bias_slices),
        "out_dim": out_dim,
        "reference": {"branch_a": mats_a, "branch_b": mats_b, "fc": fc_mats},
    }


# ----------------------------------------------------------------------------
# Pure-JAX reference (unmerged, unpadded) for a correctness sanity check.
# ----------------------------------------------------------------------------
def mynet_reference(ref_params, X, XS):
    B = X.shape[0]
    hp = jax.lax.Precision.HIGHEST

    def q(a):   # mimic the kernel's bf16 weight/input storage
        return a.astype(jnp.bfloat16).astype(jnp.float32)

    def branch(x, mats):
        h = x
        for (W, b) in mats:
            h = jnp.maximum(jnp.dot(h, q(W), precision=hp) + b.reshape(1, -1), 0.0)
        return h

    ha = branch(q(X.reshape(B, -1).astype(jnp.float32)), ref_params["branch_a"])
    hb = branch(q(XS.reshape(B, -1).astype(jnp.float32)), ref_params["branch_b"])
    h = ha + hb
    fcs = ref_params["fc"]
    for i, (W, b) in enumerate(fcs):
        h = jnp.dot(h, q(W), precision=hp) + b.reshape(1, -1)
        if i < len(fcs) - 1:
            h = jnp.maximum(h, 0.0)
    return h


# ----------------------------------------------------------------------------
# Parameter construction (deterministic, mirrors MyNet.__init__ shapes)
# ----------------------------------------------------------------------------
def _conv_bn_params(key, cin, cout, ksize, fan_in):
    kw_, kb_ = jax.random.split(key)
    scale = (2.0 / fan_in) ** 0.5
    w = jax.random.normal(kw_, (cout, cin) + tuple(ksize), jnp.float32) * scale
    b = jax.random.normal(kb_, (cout,), jnp.float32) * 0.01
    gamma = jnp.ones((cout,), jnp.float32)
    beta = jnp.zeros((cout,), jnp.float32)
    mean = jnp.zeros((cout,), jnp.float32)
    var = jnp.ones((cout,), jnp.float32)
    return (w, b, gamma, beta, mean, var)


def _linear_params(key, fin, fout):
    kw_, kb_ = jax.random.split(key)
    w = jax.random.normal(kw_, (fout, fin), jnp.float32) * (2.0 / fin) ** 0.5
    b = jax.random.normal(kb_, (fout,), jnp.float32) * 0.01
    return (w, b)


def init_mynet(key, out_dim, bands, seg_bands, patch_size, batch_size):
    # conv3dseq depth: bands -> bands-4 -> bands-6 -> bands-6 ; spatial stays patch_size.
    d_out = bands - 6
    f_shape1 = (batch_size, 32 * d_out, patch_size, patch_size)
    fc_in = 64 * f_shape1[2] * f_shape1[3]

    keys = jax.random.split(key, 12)
    params = {
        "conv3dseq": [
            _conv_bn_params(keys[0], 1, 8, (7, 3, 3), fan_in=1 * 7),
            _conv_bn_params(keys[1], 8, 16, (5, 3, 3), fan_in=8 * 5),
            _conv_bn_params(keys[2], 16, 32, (3, 3, 3), fan_in=16 * 3),
        ],
        "conv3dseq2": [
            _conv_bn_params(keys[3], 1, 8, (7, 3, 3), fan_in=1 * 7),
            _conv_bn_params(keys[4], 8, 16, (5, 3, 3), fan_in=8 * 5),
            _conv_bn_params(keys[5], 16, 32, (3, 3, 3), fan_in=16 * 3),
        ],
        "conv2d1": _conv_bn_params(keys[6], f_shape1[1], 64, (3, 3), fan_in=f_shape1[1]),
        "conv2d2": _conv_bn_params(keys[7], f_shape1[1], 64, (3, 3), fan_in=f_shape1[1]),
        "fc1": _linear_params(keys[8], fc_in, 256),
        "fc2": _linear_params(keys[9], 256, 128),
        "fc3": _linear_params(keys[10], 128, out_dim),
    }
    return params, f_shape1


# ----------------------------------------------------------------------------
if __name__ == "__main__":
    batch_size = 128        # module default; large M amortizes launch + weight DMA
    bands = 16
    seg_bands = 16          # must equal bands for the .view(f_shape1) to hold
    patch_size = 1
    out_dim = 10

    key = jax.random.PRNGKey(0)
    kp, kx, ks = jax.random.split(key, 3)

    params, f_shape1 = init_mynet(kp, out_dim, bands, seg_bands, patch_size, batch_size)
    inference_params = precompute_inference_params(params, bands, seg_bands, patch_size)

    X = jax.random.normal(kx, (batch_size, 1, bands, patch_size, patch_size), jnp.float32)
    XS = jax.random.normal(ks, (batch_size, 1, seg_bands, patch_size, patch_size), jnp.float32)

    fwd = jax.jit(lambda a, b: mynet_forward(inference_params, a, b))
    out = jax.block_until_ready(fwd(X, XS))

    assert out.shape == (batch_size, out_dim), out.shape
    assert out.dtype == jnp.float32
    assert bool(jnp.all(jnp.isfinite(out)))

    # Sanity-check the fused/merged/padded kernel against a plain JAX reference.
    ref = mynet_reference(inference_params["reference"], X, XS)
    err = float(jnp.max(jnp.abs(out - ref)))
    scale = float(jnp.max(jnp.abs(ref))) + 1e-3
    assert err <= 5e-2 * scale, (err, scale)

    print("KERNEL_OK")
</pallas_src>

<mosaic_0001>
module attributes {stable_mosaic.version = 11 : i64} {
  func.func @kernel(%arg0: i32, %arg1: memref<128x32xbf16, #tpu.memory_space<vmem>>, %arg2: memref<32x256xbf16, #tpu.memory_space<vmem>>, %arg3: memref<256x384xbf16, #tpu.memory_space<vmem>>, %arg4: memref<384x640xbf16, #tpu.memory_space<vmem>>, %arg5: memref<640x128xbf16, #tpu.memory_space<vmem>>, %arg6: memref<128x256xbf16, #tpu.memory_space<vmem>>, %arg7: memref<256x128xbf16, #tpu.memory_space<vmem>>, %arg8: memref<128x128xbf16, #tpu.memory_space<vmem>>, %arg9: memref<1x1920xf32, #tpu.memory_space<vmem>>, %arg10: memref<128x128xf32, #tpu.memory_space<vmem>>) attributes {dimension_semantics = [#tpu.dimension_semantics<parallel>], iteration_bounds = array<i64: 1>, scalar_prefetch = 0 : i64, scratch_operands = 0 : i64, tpu.core_type = #tpu.core_type<tc>, window_params = [{transform_indices = @transform_0, window_bounds = array<i64: 128, 32>}, {pipeline_mode = #tpu.pipeline_mode<synchronous>, transform_indices = @transform_1, window_bounds = array<i64: 32, 256>}, {pipeline_mode = #tpu.pipeline_mode<synchronous>, transform_indices = @transform_2, window_bounds = array<i64: 256, 384>}, {pipeline_mode = #tpu.pipeline_mode<synchronous>, transform_indices = @transform_3, window_bounds = array<i64: 384, 640>}, {pipeline_mode = #tpu.pipeline_mode<synchronous>, transform_indices = @transform_4, window_bounds = array<i64: 640, 128>}, {pipeline_mode = #tpu.pipeline_mode<synchronous>, transform_indices = @transform_5, window_bounds = array<i64: 128, 256>}, {pipeline_mode = #tpu.pipeline_mode<synchronous>, transform_indices = @transform_6, window_bounds = array<i64: 256, 128>}, {pipeline_mode = #tpu.pipeline_mode<synchronous>, transform_indices = @transform_7, window_bounds = array<i64: 128, 128>}, {pipeline_mode = #tpu.pipeline_mode<synchronous>, transform_indices = @transform_8, window_bounds = array<i64: 1, 1920>}, {transform_indices = @transform_9, window_bounds = array<i64: 128, 128>}]} {
    %c0 = arith.constant 0 : index
    %c0_0 = arith.constant 0 : index
    %0 = vector.load %arg1[%c0, %c0_0] : memref<128x32xbf16, #tpu.memory_space<vmem>>, vector<128x32xbf16>
    %c0_1 = arith.constant 0 : index
    %c0_2 = arith.constant 0 : index
    %1 = vector.load %arg2[%c0_1, %c0_2] : memref<32x256xbf16, #tpu.memory_space<vmem>>, vector<32x256xbf16>
    %cst = arith.constant dense<0.000000e+00> : vector<128x256xf32>
    %2 = tpu.matmul %0, %1, %cst {dimension_numbers = #tpu.dot_dimension_numbers<[1], [0], [0], [1], [0, 0, 1, 1], [], []>} : vector<128x32xbf16>, vector<32x256xbf16>, vector<128x256xf32> -> vector<128x256xf32>
    %c0_3 = arith.constant 0 : index
    %c0_4 = arith.constant 0 : index
    %3 = vector.load %arg9[%c0_3, %c0_4] : memref<1x1920xf32, #tpu.memory_space<vmem>>, vector<1x256xf32>
    %4 = vector.broadcast %3 : vector<1x256xf32> to vector<128x256xf32>
    %5 = arith.addf %2, %4 : vector<128x256xf32>
    %cst_5 = arith.constant 0.000000e+00 : f32
    %6 = vector.broadcast %cst_5 : f32 to vector<128x256xf32>
    %7 = arith.maximumf %5, %6 : vector<128x256xf32>
    %c0_6 = arith.constant 0 : index
    %c0_7 = arith.constant 0 : index
    %8 = vector.load %arg3[%c0_6, %c0_7] : memref<256x384xbf16, #tpu.memory_space<vmem>>, vector<256x384xbf16>
    %cst_8 = arith.constant dense<0.000000e+00> : vector<128x384xf32>
    %9 = tpu.matmul %7, %8, %cst_8 {dimension_numbers = #tpu.dot_dimension_numbers<[1], [0], [0], [1], [0, 0, 1, 1], [], []>} : vector<128x256xf32>, vector<256x384xbf16>, vector<128x384xf32> -> vector<128x384xf32>
    %c0_9 = arith.constant 0 : index
    %c256 = arith.constant 256 : index
    %10 = vector.load %arg9[%c0_9, %c256] : memref<1x1920xf32, #tpu.memory_space<vmem>>, vector<1x384xf32>
    %11 = vector.broadcast %10 : vector<1x384xf32> to vector<128x384xf32>
    %12 = arith.addf %9, %11 : vector<128x384xf32>
    %cst_10 = arith.constant 0.000000e+00 : f32
    %13 = vector.broadcast %cst_10 : f32 to vector<128x384xf32>
    %14 = arith.maximumf %12, %13 : vector<128x384xf32>
    %c0_11 = arith.constant 0 : index
    %c0_12 = arith.constant 0 : index
    %15 = vector.load %arg4[%c0_11, %c0_12] : memref<384x640xbf16, #tpu.memory_space<vmem>>, vector<384x640xbf16>
    %cst_13 = arith.constant dense<0.000000e+00> : vector<128x640xf32>
    %16 = tpu.matmul %14, %15, %cst_13 {dimension_numbers = #tpu.dot_dimension_numbers<[1], [0], [0], [1], [0, 0, 1, 1], [], []>} : vector<128x384xf32>, vector<384x640xbf16>, vector<128x640xf32> -> vector<128x640xf32>
    %c0_14 = arith.constant 0 : index
    %c640 = arith.constant 640 : index
    %17 = vector.load %arg9[%c0_14, %c640] : memref<1x1920xf32, #tpu.memory_space<vmem>>, vector<1x640xf32>
    %18 = vector.broadcast %17 : vector<1x640xf32> to vector<128x640xf32>
    %19 = arith.addf %16, %18 : vector<128x640xf32>
    %cst_15 = arith.constant 0.000000e+00 : f32
    %20 = vector.broadcast %cst_15 : f32 to vector<128x640xf32>
    %21 = arith.maximumf %19, %20 : vector<128x640xf32>
    %c0_16 = arith.constant 0 : index
    %c0_17 = arith.constant 0 : index
    %22 = vector.load %arg5[%c0_16, %c0_17] : memref<640x128xbf16, #tpu.memory_space<vmem>>, vector<640x128xbf16>
    %cst_18 = arith.constant dense<0.000000e+00> : vector<128x128xf32>
    %23 = tpu.matmul %21, %22, %cst_18 {dimension_numbers = #tpu.dot_dimension_numbers<[1], [0], [0], [1], [0, 0, 1, 1], [], []>} : vector<128x640xf32>, vector<640x128xbf16>, vector<128x128xf32> -> vector<128x128xf32>
    %c0_19 = arith.constant 0 : index
    %c1280 = arith.constant 1280 : index
    %24 = vector.load %arg9[%c0_19, %c1280] : memref<1x1920xf32, #tpu.memory_space<vmem>>, vector<1x128xf32>
    %25 = vector.broadcast %24 : vector<1x128xf32> to vector<128x128xf32>
    %26 = arith.addf %23, %25 : vector<128x128xf32>
    %cst_20 = arith.constant 0.000000e+00 : f32
    %27 = vector.broadcast %cst_20 : f32 to vector<128x128xf32>
    %28 = arith.maximumf %26, %27 : vector<128x128xf32>
    %c0_21 = arith.constant 0 : index
    %c0_22 = arith.constant 0 : index
    %29 = vector.load %arg6[%c0_21, %c0_22] : memref<128x256xbf16, #tpu.memory_space<vmem>>, vector<128x256xbf16>
    %cst_23 = arith.constant dense<0.000000e+00> : vector<128x256xf32>
    %30 = tpu.matmul %28, %29, %cst_23 {dimension_numbers = #tpu.dot_dimension_numbers<[1], [0], [0], [1], [0, 0, 1, 1], [], []>} : vector<128x128xf32>, vector<128x256xbf16>, vector<128x256xf32> -> vector<128x256xf32>
    %c0_24 = arith.constant 0 : index
    %c1408 = arith.constant 1408 : index
    %31 = vector.load %arg9[%c0_24, %c1408] : memref<1x1920xf32, #tpu.memory_space<vmem>>, vector<1x256xf32>
    %32 = vector.broadcast %31 : vector<1x256xf32> to vector<128x256xf32>
    %33 = arith.addf %30, %32 : vector<128x256xf32>
    %cst_25 = arith.constant 0.000000e+00 : f32
    %34 = vector.broadcast %cst_25 : f32 to vector<128x256xf32>
    %35 = arith.maximumf %33, %34 : vector<128x256xf32>
    %c0_26 = arith.constant 0 : index
    %c0_27 = arith.constant 0 : index
    %36 = vector.load %arg7[%c0_26, %c0_27] : memref<256x128xbf16, #tpu.memory_space<vmem>>, vector<256x128xbf16>
    %cst_28 = arith.constant dense<0.000000e+00> : vector<128x128xf32>
    %37 = tpu.matmul %35, %36, %cst_28 {dimension_numbers = #tpu.dot_dimension_numbers<[1], [0], [0], [1], [0, 0, 1, 1], [], []>} : vector<128x256xf32>, vector<256x128xbf16>, vector<128x128xf32> -> vector<128x128xf32>
    %c0_29 = arith.constant 0 : index
    %c1664 = arith.constant 1664 : index
    %38 = vector.load %arg9[%c0_29, %c1664] : memref<1x1920xf32, #tpu.memory_space<vmem>>, vector<1x128xf32>
    %39 = vector.broadcast %38 : vector<1x128xf32> to vector<128x128xf32>
    %40 = arith.addf %37, %39 : vector<128x128xf32>
    %cst_30 = arith.constant 0.000000e+00 : f32
    %41 = vector.broadcast %cst_30 : f32 to vector<128x128xf32>
    %42 = arith.maximumf %40, %41 : vector<128x128xf32>
    %c0_31 = arith.constant 0 : index
    %c0_32 = arith.constant 0 : index
    %43 = vector.load %arg8[%c0_31, %c0_32] : memref<128x128xbf16, #tpu.memory_space<vmem>>, vector<128x128xbf16>
    %cst_33 = arith.constant dense<0.000000e+00> : vector<128x128xf32>
    %44 = tpu.matmul %42, %43, %cst_33 {dimension_numbers = #tpu.dot_dimension_numbers<[1], [0], [0], [1], [0, 0, 1, 1], [], []>} : vector<128x128xf32>, vector<128x128xbf16>, vector<128x128xf32> -> vector<128x128xf32>
    %c0_34 = arith.constant 0 : index
    %c1792 = arith.constant 1792 : index
    %45 = vector.load %arg9[%c0_34, %c1792] : memref<1x1920xf32, #tpu.memory_space<vmem>>, vector<1x128xf32>
    %46 = vector.broadcast %45 : vector<1x128xf32> to vector<128x128xf32>
    %47 = arith.addf %44, %46 : vector<128x128xf32>
    %c0_35 = arith.constant 0 : index
    %c0_36 = arith.constant 0 : index
    %48 = vector.load %arg10[%c0_35, %c0_36] : memref<128x128xf32, #tpu.memory_space<vmem>>, vector<128x128xf32>
    tpu.vector_store %arg10[%c0_35, %c0_36], %47 {strides = array<i32>} : memref<128x128xf32, #tpu.memory_space<vmem>>, vector<128x128xf32>,
    return
  }
  func.func @transform_0(%arg0: i32) -> (i32, i32) {
    %c0_i32 = arith.constant 0 : i32
    %c0_i32_0 = arith.constant 0 : i32
    return %arg0, %c0_i32 : i32, i32
  }
  func.func @transform_1(%arg0: i32) -> (i32, i32) {
    %c0_i32 = arith.constant 0 : i32
    %c0_i32_0 = arith.constant 0 : i32
    %c0_i32_1 = arith.constant 0 : i32
    return %c0_i32, %c0_i32_0 : i32, i32
  }
  func.func @transform_2(%arg0: i32) -> (i32, i32) {
    %c0_i32 = arith.constant 0 : i32
    %c0_i32_0 = arith.constant 0 : i32
    %c0_i32_1 = arith.constant 0 : i32
    return %c0_i32, %c0_i32_0 : i32, i32
  }
  func.func @transform_3(%arg0: i32) -> (i32, i32) {
    %c0_i32 = arith.constant 0 : i32
    %c0_i32_0 = arith.constant 0 : i32
    %c0_i32_1 = arith.constant 0 : i32
    return %c0_i32, %c0_i32_0 : i32, i32
  }
  func.func @transform_4(%arg0: i32) -> (i32, i32) {
    %c0_i32 = arith.constant 0 : i32
    %c0_i32_0 = arith.constant 0 : i32
    %c0_i32_1 = arith.constant 0 : i32
    return %c0_i32, %c0_i32_0 : i32, i32
  }
  func.func @transform_5(%arg0: i32) -> (i32, i32) {
    %c0_i32 = arith.constant 0 : i32
    %c0_i32_0 = arith.constant 0 : i32
    %c0_i32_1 = arith.constant 0 : i32
    return %c0_i32, %c0_i32_0 : i32, i32
  }
  func.func @transform_6(%arg0: i32) -> (i32, i32) {
    %c0_i32 = arith.constant 0 : i32
    %c0_i32_0 = arith.constant 0 : i32
    %c0_i32_1 = arith.constant 0 : i32
    return %c0_i32, %c0_i32_0 : i32, i32
  }
  func.func @transform_7(%arg0: i32) -> (i32, i32) {
    %c0_i32 = arith.constant 0 : i32
    %c0_i32_0 = arith.constant 0 : i32
    %c0_i32_1 = arith.constant 0 : i32
    return %c0_i32, %c0_i32_0 : i32, i32
  }
  func.func @transform_8(%arg0: i32) -> (i32, i32) {
    %c0_i32 = arith.constant 0 : i32
    %c0_i32_0 = arith.constant 0 : i32
    %c0_i32_1 = arith.constant 0 : i32
    return %c0_i32, %c0_i32_0 : i32, i32
  }
  func.func @transform_9(%arg0: i32) -> (i32, i32) {
    %c0_i32 = arith.constant 0 : i32
    %c0_i32_0 = arith.constant 0 : i32
    return %arg0, %c0_i32 : i32, i32
  }
}

</mosaic_0001>

<bundles_post_ra>
// kernel: _lambda_.1
= control target key start
LH: loop header
LB: loop body
LE: loop exit
PB: predicated region body
PF: predicated region fallthrough
CT: control target
= control target key end

     0   :  { %v5221_v1 = vmov 0   ;;  %vm125_vm0 = vcmask 261120   ;;  %v55_v63 = vlaneseq  ;;  %s6828_s1 = inlined_call_operand.vmem [shape: bf16[32,256], index: 1, kind: input, shape index: {}]   ;;  %s6829_s0 = inlined_call_operand.vmem [shape: bf16[128,32], index: 0, kind: input, shape index: {}]   ;;  %s6830_s2 = inlined_call_operand.vmem [shape: bf16[256,384], index: 2, kind: input, shape index: {}]   ;;  %s6831_s3 = inlined_call_operand.vmem [shape: bf16[384,640], index: 3, kind: input, shape index: {}]   ;;  %s6832_s8 = inlined_call_operand.vmem [shape: f32[1,1920], index: 8, kind: input, shape index: {}]   ;;  %s6833_s4 = inlined_call_operand.vmem [shape: bf16[640,128], index: 4, kind: input, shape index: {}]   ;;  %s6834_s5 = inlined_call_operand.vmem [shape: bf16[128,256], index: 5, kind: input, shape index: {}]   ;;  %s6835_s6 = inlined_call_operand.vmem [shape: bf16[256,128], index: 6, kind: input, shape index: {}]   ;;  %s6836_s7 = inlined_call_operand.vmem [shape: bf16[128,128], index: 7, kind: input, shape index: {}]   ;;  %s6837_s9 = inlined_call_operand.vmem [shape: f32[128,128], index: 9, kind: output, shape index: {}]  }
   0x1   :  { %v4887_v0 = vld [vmem:[%s6828_s1 + $0x4] ss:$8 sps:$4 sm:$0xff]   ;;  %182 = vmatprep.mubr.bf16.mxu0 %v5221_v1  ;;  %v4889_v2 = vld [vmem:[%s6828_s1] ss:$8 sps:$4 sm:$0xff]   ;;  %v4890_v3 = vld [vmem:[%s6828_s1 + $0x14] ss:$8 sps:$4 sm:$0xff]  }
   0x2   :  { %150 = vmatprep.subr.bf16.mxu0 %v4887_v0  ;;  %v4892_v4 = vld [vmem:[%s6828_s1 + $0x10] ss:$8 sps:$4 sm:$0xff]   ;;  %v4893_v5 = vld [vmem:[%s6829_s0] sm:$0xff]   ;;  %v4904_v8 = vld [vmem:[%s6830_s2 + $0x1c] ss:$12 sps:$4 sm:$0xff]   ;;  %v5475_v0 = vshrl.u32 %v55_v63, 7 }
   0x3   :  { %151 = vmatpush1.bf16.msra.mxu0 %v4889_v2  ;;  %v4901_v6 = vld [vmem:[%s6830_s2 + $0x4] ss:$12 sps:$4 sm:$0xff]   ;;  %v4903_v7 = vld [vmem:[%s6830_s2] ss:$12 sps:$4 sm:$0xff]   ;;  %v4912_v15 = vld [vmem:[%s6830_s2 + $0x48] ss:$12 sps:$4 sm:$0xff]  }
   0x4   :  { %152 = vmatprep.subr.bf16.mxu0 %v4890_v3  ;;  %632 = vmatprep.subr.bf16.mxu1 %v4901_v6  ;;  %v4894_v9 = vld [vmem:[%s6829_s0 + $0x8] sm:$0xff]   ;;  %v4906_v10 = vld [vmem:[%s6830_s2 + $0x18] ss:$12 sps:$4 sm:$0xff]   ;;  %v4907_v11 = vld [vmem:[%s6830_s2 + $0x34] ss:$12 sps:$4 sm:$0xff]   ;;  %v5484_v3 = vsub.s32 1, %v5475_v0 }
   0x5   :  { %633 = vmatpush1.bf16.msra.mxu1 %v4903_v7  ;;  %v4909_v12 = vld [vmem:[%s6830_s2 + $0x30] ss:$12 sps:$4 sm:$0xff]   ;;  %v4910_v13 = vld [vmem:[%s6830_s2 + $0x4c] ss:$12 sps:$4 sm:$0xff]   ;;  %v4927_v17 = vld [vmem:[%s6830_s2 + $0xc8] ss:$12 sps:$4 sm:$0xff]  }
   0x6   :  { %634 = vmatprep.subr.bf16.mxu1 %v4904_v8  ;;  %v4895_v14 = vld [vmem:[%s6829_s0 + $0x10] sm:$0xff]   ;;  %v4915_v19 = vld [vmem:[%s6830_s2 + $0x60] ss:$12 sps:$4 sm:$0xff]   ;;  %v4916_v21 = vld [vmem:[%s6830_s2 + $0x7c] ss:$12 sps:$4 sm:$0xff]  }
   0x7   :  { %153 = vmatpush1.bf16.msra.mxu0 %v4892_v4  ;;  %v4913_v16 = vld [vmem:[%s6830_s2 + $0x64] ss:$12 sps:$4 sm:$0xff]   ;;  %v4929_v18 = vld [vmem:[%s6830_s2 + $0x8] ss:$12 sps:$4 sm:$0xff]   ;;  %v4932_v20 = vld [vmem:[%s6830_s2 + $0xe0] ss:$12 sps:$4 sm:$0xff]  }
   0x8   :  { %4229 = vmatprep.subr.bf16.mxu0 %v4927_v17  ;;  %v4896_v22 = vld [vmem:[%s6829_s0 + $0x18] sm:$0xff]   ;;  %v4934_v23 = vld [vmem:[%s6830_s2 + $0x20] ss:$12 sps:$4 sm:$0xff]   ;;  %v4947_v33 = vld [vmem:[%s6830_s2 + $0x128] ss:$12 sps:$4 sm:$0xff]  }
   0x9   :  { %635 = vmatpush1.bf16.msra.mxu1 %v4906_v10  ;;  %v4937_v24 = vld [vmem:[%s6830_s2 + $0xf8] ss:$12 sps:$4 sm:$0xff]   ;;  %v4919_v26 = vld [vmem:[%s6830_s2 + $0x94] ss:$12 sps:$4 sm:$0xff]   ;;  %v4942_v28 = vld [vmem:[%s6830_s2 + $0x110] ss:$12 sps:$4 sm:$0xff]  }
   0xa   :  { %3970 = vmatmul.mubr.msk.bf16.vlgmr.msra.gmra.mrb[0].mxu0 %vm125_vm0, %v4893_v5  ;;  %636 = vmatprep.subr.bf16.mxu1 %v4907_v11  ;;  %v4918_v25 = vld [vmem:[%s6830_s2 + $0x78] ss:$12 sps:$4 sm:$0xff]   ;;  %v4921_v29 = vld [vmem:[%s6830_s2 + $0x90] ss:$12 sps:$4 sm:$0xff]   ;;  %v4924_v34 = vld [vmem:[%s6830_s2 + $0xa8] ss:$12 sps:$4 sm:$0xff]  }
   0xb   :  { %192 = vmatprep.mubr.bf16.mxu0 %v5221_v1  ;;  %4230 = vmatpush3.bf16.msra.mxu0 %v4929_v18  ;;  %v4939_v27 = vld [vmem:[%s6830_s2 + $0x38] ss:$12 sps:$4 sm:$0xff]   ;;  %v4944_v32 = vld [vmem:[%s6830_s2 + $0x50] ss:$12 sps:$4 sm:$0xff]   ;;  %v4928_v36 = vld [vmem:[%s6830_s2 + $0xc0] ss:$12 sps:$4 sm:$0xff]  }
   0xc   :  { %4231 = vmatprep.subr.bf16.mxu0 %v4932_v20  ;;  %v4922_v30 = vld [vmem:[%s6830_s2 + $0xac] ss:$12 sps:$4 sm:$0xff]   ;;  %v4897_v31 = vld [vmem:[%s6829_s0 + $0x20] sm:$0xff]   ;;  %v4949_v37 = vld [vmem:[%s6830_s2 + $0x68] ss:$12 sps:$4 sm:$0xff]  }
   0xd   :  { %637 = vmatpush1.bf16.msra.mxu1 %v4909_v12  ;;  %v4925_v35 = vld [vmem:[%s6830_s2 + $0xc4] ss:$12 sps:$4 sm:$0xff]   ;;  %v4952_v38 = vld [vmem:[%s6830_s2 + $0x140] ss:$12 sps:$4 sm:$0xff]   ;;  %v4930_v39 = vld [vmem:[%s6830_s2 + $0xdc] ss:$12 sps:$4 sm:$0xff]  }
   0xe   :  { %638 = vmatprep.subr.bf16.mxu1 %v4910_v13  ;;  %v4954_v40 = vld [vmem:[%s6830_s2 + $0x80] ss:$12 sps:$4 sm:$0xff]   ;;  %v4957_v41 = vld [vmem:[%s6830_s2 + $0x158] ss:$12 sps:$4 sm:$0xff]   ;;  %v4938_v45 = vld [vmem:[%s6830_s2 + $0xf0] ss:$12 sps:$4 sm:$0xff]  }
   0xf   :  { %4232 = vmatpush3.bf16.msra.mxu0 %v4934_v23  ;;  %v4898_v42 = vld [vmem:[%s6829_s0 + $0x28] sm:$0xff]   ;;  %v4933_v43 = vld [vmem:[%s6830_s2 + $0xd8] ss:$12 sps:$4 sm:$0xff]   ;;  %v4935_v44 = vld [vmem:[%s6830_s2 + $0xf4] ss:$12 sps:$4 sm:$0xff]  }
  0x10   :  { %4233 = vmatprep.subr.bf16.mxu0 %v4937_v24  ;;  %v4940_v46 = vld [vmem:[%s6830_s2 + $0x10c] ss:$12 sps:$4 sm:$0xff]   ;;  %v4899_v47 = vld [vmem:[%s6829_s0 + $0x30] sm:$0xff]   ;;  %v4950_v51 = vld [vmem:[%s6830_s2 + $0x13c] ss:$12 sps:$4 sm:$0xff]  }
  0x11   :  { %639 = vmatpush1.bf16.msra.mxu1 %v4912_v15  ;;  %v4943_v48 = vld [vmem:[%s6830_s2 + $0x108] ss:$12 sps:$4 sm:$0xff]   ;;  %v4945_v49 = vld [vmem:[%s6830_s2 + $0x124] ss:$12 sps:$4 sm:$0xff]   ;;  %v4948_v50 = vld [vmem:[%s6830_s2 + $0x120] ss:$12 sps:$4 sm:$0xff]  }
  0x12   :  { %3971 = vmatmul.mubr.msk.bf16.gmra.mrb[4].mxu0 %vm125_vm0, %v4894_v9  ;;  %640 = vmatprep.subr.bf16.mxu1 %v4913_v16  ;;  %v4900_v52 = vld [vmem:[%s6829_s0 + $0x38] sm:$0xff]   ;;  %v4955_v54 = vld [vmem:[%s6830_s2 + $0x154] ss:$12 sps:$4 sm:$0xff]  }
  0x13   :  { %202 = vmatprep.mubr.bf16.mxu0 %v5221_v1  ;;  %4234 = vmatpush3.bf16.msra.mxu0 %v4939_v27  ;;  %v4953_v53 = vld [vmem:[%s6830_s2 + $0x138] ss:$12 sps:$4 sm:$0xff]   ;;  %v4958_v55 = vld [vmem:[%s6830_s2 + $0x150] ss:$12 sps:$4 sm:$0xff]   ;;  %v4963_v59 = vld [vmem:[%s6830_s2 + $0x168] ss:$12 sps:$4 sm:$0xff]  }
  0x14   :  { %4235 = vmatprep.subr.bf16.mxu0 %v4942_v28  ;;  %v4959_v56 = vld [vmem:[%s6830_s2 + $0x98] ss:$12 sps:$4 sm:$0xff]   ;;  %v4962_v58 = vld [vmem:[%s6830_s2 + $0x170] ss:$12 sps:$4 sm:$0xff]   ;;  %v4970_v62 = vld [vmem:[%s6831_s3 + $0xc] ss:$20 sps:$4 sm:$0xff]  }
  0x15   :  { %641 = vmatpush1.bf16.msra.mxu1 %v4915_v19  ;;  %v4960_v57 = vld [vmem:[%s6830_s2 + $0x16c] ss:$12 sps:$4 sm:$0xff]   ;;  %v4964_v60 = vld [vmem:[%s6830_s2 + $0xb0] ss:$12 sps:$4 sm:$0xff]   ;;  %v53_v2 = vld [vmem:[%s6832_s8] sm:$0x3] }
  0x16   :  { %642 = vmatprep.subr.bf16.mxu1 %v4916_v21  ;;  %v4967_v61 = vld [vmem:[%s6831_s3 + $0x4] ss:$20 sps:$4 sm:$0xff]   ;;  %v5490_v5 = vrot.slane %v53_v2, %v5484_v3  ;;  %v4965_v12 = vld [vmem:[%s6831_s3] ss:$20 sps:$4 sm:$0xff]   ;;  %v4968_v13 = vld [vmem:[%s6831_s3 + $0x8] ss:$20 sps:$4 sm:$0xff]  }
  0x17   :  { %4236 = vmatpush3.bf16.msra.mxu0 %v4944_v32  ;;  %v4973_v16 = vld [vmem:[%s6831_s3 + $0x2c] ss:$20 sps:$4 sm:$0xff]   ;;  %v4976_v17 = vld [vmem:[%s6831_s3 + $0x34] ss:$20 sps:$4 sm:$0xff]  }
  0x18   :  { %4237 = vmatprep.subr.bf16.mxu0 %v4947_v33  ;;  %v4971_v21 = vld [vmem:[%s6831_s3 + $0x28] ss:$20 sps:$4 sm:$0xff]  }
  0x19   :  { %643 = vmatpush1.bf16.msra.mxu1 %v4918_v25 }
  0x1a   :  { %3972 = vmatmul.mubr.msk.bf16.gmra.mrb[8].mxu0 %vm125_vm0, %v4895_v14  ;;  %644 = vmatprep.subr.bf16.mxu1 %v4919_v26 }
  0x1b   :  { %212 = vmatprep.mubr.bf16.mxu0 %v5221_v1  ;;  %4238 = vmatpush3.bf16.msra.mxu0 %v4949_v37  ;;  %v4977_v37 = vld [vmem:[%s6831_s3 + $0x50] ss:$20 sps:$4 sm:$0xff]  }
  0x1c   :  { %4239 = vmatprep.subr.bf16.mxu0 %v4952_v38  ;;  %v4980_v38 = vld [vmem:[%s6831_s3 + $0x58] ss:$20 sps:$4 sm:$0xff]  }
  0x1d   :  { %645 = vmatpush1.bf16.msra.mxu1 %v4921_v29 }
  0x1e   :  { %646 = vmatprep.subr.bf16.mxu1 %v4922_v30 }
  0x1f   :  { %4240 = vmatpush3.bf16.msra.mxu0 %v4954_v40  ;;  %v4985_v40 = vld [vmem:[%s6831_s3 + $0x7c] ss:$20 sps:$4 sm:$0xff]  }
  0x20   :  { %4241 = vmatprep.subr.bf16.mxu0 %v4957_v41  ;;  %v4988_v41 = vld [vmem:[%s6831_s3 + $0x84] ss:$20 sps:$4 sm:$0xff]  }
  0x21   :  { %647 = vmatpush1.bf16.msra.mxu1 %v4924_v34  ;;  %v4979_v34 = vld [vmem:[%s6831_s3 + $0x54] ss:$20 sps:$4 sm:$0xff]  }
  0x22   :  { %3973 = vmatmul.mubr.msk.bf16.gmra.mrb[12].mxu0 %vm125_vm0, %v4896_v22  ;;  %648 = vmatprep.subr.bf16.mxu1 %v4925_v35  ;;  %v4974_v22 = vld [vmem:[%s6831_s3 + $0x30] ss:$20 sps:$4 sm:$0xff]  }
  0x23   :  { %222 = vmatprep.mubr.bf16.mxu0 %v5221_v1  ;;  %4242 = vmatpush3.bf16.msra.mxu0 %v4959_v56  ;;  %v4982_v35 = vld [vmem:[%s6831_s3 + $0x5c] ss:$20 sps:$4 sm:$0xff]   ;;  %v4994_v56 = vld [vmem:[%s6831_s3 + $0xac] ss:$20 sps:$4 sm:$0xff]  }
  0x24   :  { %4243 = vmatprep.subr.bf16.mxu0 %v4962_v58 }
  0x25   :  { %649 = vmatpush1.bf16.msra.mxu1 %v4928_v36 }
  0x26   :  { %650 = vmatprep.subr.bf16.mxu1 %v4930_v39 }
  0x27   :  { %4244 = vmatpush3.bf16.msra.mxu0 %v4964_v60 }
  0x28   :  { %1975 = vmatprep.subr.bf16.mxu0 %v4970_v62  ;;  %v4992_v62 = vld [vmem:[%s6831_s3 + $0xa8] ss:$20 sps:$4 sm:$0xff]  }
  0x29   :  { %651 = vmatpush1.bf16.msra.mxu1 %v4933_v43 }
  0x2a   :  { %3974 = vmatmul.mubr.msk.bf16.gmra.mrb[16].mxu0 %vm125_vm0, %v4897_v31  ;;  %652 = vmatprep.subr.bf16.mxu1 %v4935_v44 }
  0x2b   :  { %232 = vmatprep.mubr.bf16.mxu0 %v5221_v1 }
  0x2d   :  { %653 = vmatpush1.bf16.msra.mxu1 %v4938_v45 }
  0x2e   :  { %654 = vmatprep.subr.bf16.mxu1 %v4940_v46 }
  0x31   :  { %655 = vmatpush1.bf16.msra.mxu1 %v4943_v48 }
  0x32   :  { %3975 = vmatmul.mubr.msk.bf16.gmra.mrb[20].mxu0 %vm125_vm0, %v4898_v42  ;;  %656 = vmatprep.subr.bf16.mxu1 %v4945_v49 }
  0x33   :  { %242 = vmatprep.mubr.bf16.mxu0 %v5221_v1 }
  0x35   :  { %657 = vmatpush1.bf16.msra.mxu1 %v4948_v50 }
  0x36   :  { %658 = vmatprep.subr.bf16.mxu1 %v4950_v51 }
  0x39   :  { %659 = vmatpush1.bf16.msra.mxu1 %v4953_v53  ;;  %v4986_v53 = vld [vmem:[%s6831_s3 + $0x80] ss:$20 sps:$4 sm:$0xff]  }
  0x3a   :  { %3976 = vmatmul.mubr.msk.bf16.gmra.mrb[24].mxu0 %vm125_vm0, %v4899_v47  ;;  %660 = vmatprep.subr.bf16.mxu1 %v4955_v54 }
  0x3b   :  { %252 = vmatprep.mubr.bf16.mxu0 %v5221_v1  ;;  %v5478_v1 = vsub.s32 0, %v5475_v0 }
  0x3d   :  { %661 = vmatpush1.bf16.msra.mxu1 %v4958_v55  ;;  %v5487_v4 = vrot.slane %v53_v2, %v5478_v1  ;;  %v4991_v55 = vld [vmem:[%s6831_s3 + $0xa4] ss:$20 sps:$4 sm:$0xff]  }
  0x3e   :  { %662 = vmatprep.subr.bf16.mxu1 %v4960_v57 }
  0x41   :  { %663 = vmatpush1.bf16.msra.mxu1 %v4963_v59 }
  0x42   :  { %3977 = vmatmul.mubr.msk.bf16.gmra.mrb[28].mxu0 %vm125_vm0, %v4900_v52  ;;  %1717 = vmatprep.subr.bf16.mxu1 %v4967_v61  ;;  %v4983_v52 = vld [vmem:[%s6831_s3 + $0x78] ss:$20 sps:$4 sm:$0xff]   ;;  %v4989_v61 = vld [vmem:[%s6831_s3 + $0xa0] ss:$20 sps:$4 sm:$0xff]  }
  0xdd   :  { %v184_v6 = vpop.f32.mrb[0].mxu0 }
  0xde   :  { %v185_v7 = vadd.f32 %v184_v6, %v5487_v4  ;;  %v186_v8 = vpop.f32.mrb[1].mxu0 }
  0xdf   :  { %v187_v9 = vadd.f32 %v186_v8, %v5490_v5  ;;  %v188_v10 = vpop.f32.mrb[2].mxu0 }
  0xe0   :  { %v190_v11 = vpop.f32.mrb[3].mxu0  ;;  %v263_v18 = vmax.f32 %v185_v7, 0.0  ;;  %v189_v19 = vadd.f32 %v188_v10, %v5487_v4 }
  0xe1   :  { %v264_v14 = vmax.f32 %v187_v9, 0.0  ;;  %v191_v15 = vadd.f32 %v190_v11, %v5490_v5  ;;  %v4997_v11 = vld [vmem:[%s6831_s3 + $0xcc] ss:$20 sps:$4 sm:$0xff]  }
  0xe2   :  { %v265_v24 = vmax.f32 %v189_v19, 0.0 }
  0xe3   :  { %v266_v20 = vmax.f32 %v191_v15, 0.0  ;;  %664 = vmatprep.mubr.f32.mxu1 %v264_v14  ;;  %793 = vmatprep.mubr.f32.mxu0 %v264_v14  ;;  %v4995_v14 = vld [vmem:[%s6831_s3 + $0xc8] ss:$20 sps:$4 sm:$0xff]   ;;  %v4998_v15 = vld [vmem:[%s6831_s3 + $0xd0] ss:$20 sps:$4 sm:$0xff]  }
  0xe4   :  { %665 = vmatmul.mubr.f32.vlgmr.msra.gmra.mrb[0].mxu1 %v263_v18  ;;  %794 = vmatmul.mubr.f32.vlgmr.msra.gmra.mrb[32].mxu0 %v263_v18  ;;  %v5006_v18 = vld [vmem:[%s6831_s3 + $0xfc] ss:$20 sps:$4 sm:$0xff]  }
  0xe5   :  { %v194_v23 = vpop.f32.mrb[4].mxu0  ;;  %670 = vmatprep.mubr.f32.mxu1 %v266_v20  ;;  %798 = vmatprep.mubr.f32.mxu0 %v266_v20 }
  0xe6   :  { %v195_v25 = vadd.f32 %v194_v23, %v5487_v4  ;;  %v196_v26 = vpop.f32.mrb[5].mxu0  ;;  %1718 = vmatpush1.bf16.msra.mxu1 %v4965_v12  ;;  %1976 = vmatpush1.bf16.msra.mxu0 %v4968_v13  ;;  %v5000_v12 = vld [vmem:[%s6831_s3 + $0xd4] ss:$20 sps:$4 sm:$0xff]  }
  0xe7   :  { %v197_v27 = vadd.f32 %v196_v26, %v5490_v5  ;;  %v198_v28 = vpop.f32.mrb[6].mxu0  ;;  %1719 = vmatprep.subr.bf16.mxu1 %v4973_v16  ;;  %1977 = vmatprep.subr.bf16.mxu0 %v4976_v17  ;;  %v5003_v17 = vld [vmem:[%s6831_s3 + $0xf4] ss:$20 sps:$4 sm:$0xff]  }
  0xe8   :  { %v200_v29 = vpop.f32.mrb[7].mxu0  ;;  %671 = vmatmul.mubr.f32.gmra.mrb[2].mxu1 %v265_v24  ;;  %799 = vmatmul.mubr.f32.gmra.mrb[34].mxu0 %v265_v24  ;;  %v267_v32 = vmax.f32 %v195_v25, 0.0  ;;  %v199_v33 = vadd.f32 %v198_v28, %v5487_v4 }
  0xe9   :  { %v268_v30 = vmax.f32 %v197_v27, 0.0  ;;  %v201_v31 = vadd.f32 %v200_v29, %v5490_v5  ;;  %v5001_v29 = vld [vmem:[%s6831_s3 + $0xf0] ss:$20 sps:$4 sm:$0xff]  }
  0xea   :  { %1720 = vmatpush1.bf16.msra.mxu1 %v4971_v21  ;;  %1978 = vmatpush1.bf16.msra.mxu0 %v4974_v22  ;;  %v269_v42 = vmax.f32 %v199_v33, 0.0  ;;  %v5012_v33 = vld [vmem:[%s6831_s3 + $0x124] ss:$20 sps:$4 sm:$0xff]  }
  0xeb   :  { %v270_v36 = vmax.f32 %v201_v31, 0.0  ;;  %676 = vmatprep.mubr.f32.mxu1 %v268_v30  ;;  %803 = vmatprep.mubr.f32.mxu0 %v268_v30  ;;  %v5004_v30 = vld [vmem:[%s6831_s3 + $0xf8] ss:$20 sps:$4 sm:$0xff]  }
  0xec   :  { %677 = vmatmul.mubr.f32.gmra.mrb[4].mxu1 %v267_v32  ;;  %804 = vmatmul.mubr.f32.gmra.mrb[36].mxu0 %v267_v32  ;;  %v5009_v32 = vld [vmem:[%s6831_s3 + $0x11c] ss:$20 sps:$4 sm:$0xff]  }
  0xed   :  { %v204_v39 = vpop.f32.mrb[8].mxu0  ;;  %682 = vmatprep.mubr.f32.mxu1 %v270_v36  ;;  %808 = vmatprep.mubr.f32.mxu0 %v270_v36 }
  0xee   :  { %v205_v43 = vadd.f32 %v204_v39, %v5487_v4  ;;  %v206_v44 = vpop.f32.mrb[9].mxu0  ;;  %1721 = vmatprep.subr.bf16.mxu1 %v4979_v34  ;;  %1979 = vmatprep.subr.bf16.mxu0 %v4982_v35  ;;  %v5010_v39 = vld [vmem:[%s6831_s3 + $0x120] ss:$20 sps:$4 sm:$0xff]  }
  0xef   :  { %v207_v45 = vadd.f32 %v206_v44, %v5490_v5  ;;  %v208_v46 = vpop.f32.mrb[10].mxu0  ;;  %1722 = vmatpush1.bf16.msra.mxu1 %v4977_v37  ;;  %1980 = vmatpush1.bf16.msra.mxu0 %v4980_v38  ;;  %v5007_v38 = vld [vmem:[%s6831_s3 + $0x118] ss:$20 sps:$4 sm:$0xff]  }
  0xf0   :  { %v210_v47 = vpop.f32.mrb[11].mxu0  ;;  %683 = vmatmul.mubr.f32.gmra.mrb[6].mxu1 %v269_v42  ;;  %809 = vmatmul.mubr.f32.gmra.mrb[38].mxu0 %v269_v42  ;;  %v271_v50 = vmax.f32 %v205_v43, 0.0  ;;  %v209_v51 = vadd.f32 %v208_v46, %v5487_v4 }
  0xf1   :  { %v272_v48 = vmax.f32 %v207_v45, 0.0  ;;  %v211_v49 = vadd.f32 %v210_v47, %v5490_v5  ;;  %1723 = vmatprep.subr.bf16.mxu1 %v4985_v40  ;;  %1981 = vmatprep.subr.bf16.mxu0 %v4988_v41  ;;  %v5015_v47 = vld [vmem:[%s6831_s3 + $0x144] ss:$20 sps:$4 sm:$0xff]  }
  0xf2   :  { %v273_v58 = vmax.f32 %v209_v51, 0.0  ;;  %v5016_v51 = vld [vmem:[%s6831_s3 + $0x148] ss:$20 sps:$4 sm:$0xff]  }
  0xf3   :  { %v274_v54 = vmax.f32 %v211_v49, 0.0  ;;  %688 = vmatprep.mubr.f32.mxu1 %v272_v48  ;;  %813 = vmatprep.mubr.f32.mxu0 %v272_v48  ;;  %v5018_v48 = vld [vmem:[%s6831_s3 + $0x14c] ss:$20 sps:$4 sm:$0xff]  }
  0xf4   :  { %689 = vmatmul.mubr.f32.gmra.mrb[8].mxu1 %v271_v50  ;;  %814 = vmatmul.mubr.f32.gmra.mrb[40].mxu0 %v271_v50  ;;  %v5013_v50 = vld [vmem:[%s6831_s3 + $0x140] ss:$20 sps:$4 sm:$0xff]  }
  0xf5   :  { %v214_v57 = vpop.f32.mrb[12].mxu0  ;;  %694 = vmatprep.mubr.f32.mxu1 %v274_v54  ;;  %818 = vmatprep.mubr.f32.mxu0 %v274_v54  ;;  %v5024_v54 = vld [vmem:[%s6831_s3 + $0x174] ss:$20 sps:$4 sm:$0xff]  }
  0xf6   :  { %v215_v59 = vadd.f32 %v214_v57, %v5487_v4  ;;  %v216_v60 = vpop.f32.mrb[13].mxu0  ;;  %1724 = vmatpush1.bf16.msra.mxu1 %v4983_v52  ;;  %1982 = vmatpush1.bf16.msra.mxu0 %v4986_v53  ;;  %v5021_v53 = vld [vmem:[%s6831_s3 + $0x16c] ss:$20 sps:$4 sm:$0xff]  }
  0xf7   :  { %v217_v63 = vadd.f32 %v216_v60, %v5490_v5  ;;  %v218_v2 = vpop.f32.mrb[14].mxu0  ;;  %1725 = vmatprep.subr.bf16.mxu1 %v4991_v55  ;;  %1983 = vmatprep.subr.bf16.mxu0 %v4994_v56 }
  0xf8   :  { %v220_v6 = vpop.f32.mrb[15].mxu0  ;;  %695 = vmatmul.mubr.f32.gmra.mrb[10].mxu1 %v273_v58  ;;  %819 = vmatmul.mubr.f32.gmra.mrb[42].mxu0 %v273_v58  ;;  %v275_v9 = vmax.f32 %v215_v59, 0.0  ;;  %v219_v10 = vadd.f32 %v218_v2, %v5487_v4 }
  0xf9   :  { %v276_v7 = vmax.f32 %v217_v63, 0.0  ;;  %v221_v8 = vadd.f32 %v220_v6, %v5490_v5  ;;  %v5019_v6 = vld [vmem:[%s6831_s3 + $0x168] ss:$20 sps:$4 sm:$0xff]  }
  0xfa   :  { %1726 = vmatpush1.bf16.msra.mxu1 %v4989_v61  ;;  %1984 = vmatpush1.bf16.msra.mxu0 %v4992_v62  ;;  %v277_v19 = vmax.f32 %v219_v10, 0.0  ;;  %v5030_v10 = vld [vmem:[%s6831_s3 + $0x19c] ss:$20 sps:$4 sm:$0xff]  }
  0xfb   :  { %v278_v13 = vmax.f32 %v221_v8, 0.0  ;;  %700 = vmatprep.mubr.f32.mxu1 %v276_v7  ;;  %823 = vmatprep.mubr.f32.mxu0 %v276_v7  ;;  %v5022_v7 = vld [vmem:[%s6831_s3 + $0x170] ss:$20 sps:$4 sm:$0xff]  }
  0xfc   :  { %701 = vmatmul.mubr.f32.gmra.mrb[12].mxu1 %v275_v9  ;;  %824 = vmatmul.mubr.f32.gmra.mrb[44].mxu0 %v275_v9  ;;  %v5027_v9 = vld [vmem:[%s6831_s3 + $0x194] ss:$20 sps:$4 sm:$0xff]  }
  0xfd   :  { %v224_v16 = vpop.f32.mrb[16].mxu0  ;;  %706 = vmatprep.mubr.f32.mxu1 %v278_v13  ;;  %828 = vmatprep.mubr.f32.mxu0 %v278_v13 }
  0xfe   :  { %v225_v20 = vadd.f32 %v224_v16, %v5487_v4  ;;  %v226_v21 = vpop.f32.mrb[17].mxu0  ;;  %1727 = vmatprep.subr.bf16.mxu1 %v4997_v11  ;;  %1985 = vmatprep.subr.bf16.mxu0 %v5000_v12  ;;  %v5028_v16 = vld [vmem:[%s6831_s3 + $0x198] ss:$20 sps:$4 sm:$0xff]  }
  0xff   :  { %v227_v22 = vadd.f32 %v226_v21, %v5490_v5  ;;  %v228_v23 = vpop.f32.mrb[18].mxu0  ;;  %1728 = vmatpush1.bf16.msra.mxu1 %v4995_v14  ;;  %1986 = vmatpush1.bf16.msra.mxu0 %v4998_v15  ;;  %v5025_v15 = vld [vmem:[%s6831_s3 + $0x190] ss:$20 sps:$4 sm:$0xff]  }
 0x100   :  { %v230_v24 = vpop.f32.mrb[19].mxu0  ;;  %707 = vmatmul.mubr.f32.gmra.mrb[14].mxu1 %v277_v19  ;;  %829 = vmatmul.mubr.f32.gmra.mrb[46].mxu0 %v277_v19  ;;  %v279_v27 = vmax.f32 %v225_v20, 0.0  ;;  %v229_v28 = vadd.f32 %v228_v23, %v5487_v4 }
 0x101   :  { %v280_v25 = vmax.f32 %v227_v22, 0.0  ;;  %v231_v26 = vadd.f32 %v230_v24, %v5490_v5  ;;  %1729 = vmatprep.subr.bf16.mxu1 %v5003_v17  ;;  %1987 = vmatprep.subr.bf16.mxu0 %v5006_v18  ;;  %v5033_v24 = vld [vmem:[%s6831_s3 + $0x1bc] ss:$20 sps:$4 sm:$0xff]  }
 0x102   :  { %v281_v35 = vmax.f32 %v229_v28, 0.0  ;;  %v5042_v28 = vld [vmem:[%s6831_s3 + $0x1ec] ss:$20 sps:$4 sm:$0xff]  }
 0x103   :  { %v282_v31 = vmax.f32 %v231_v26, 0.0  ;;  %712 = vmatprep.mubr.f32.mxu1 %v280_v25  ;;  %833 = vmatprep.mubr.f32.mxu0 %v280_v25  ;;  %v5036_v25 = vld [vmem:[%s6831_s3 + $0x1c4] ss:$20 sps:$4 sm:$0xff]  }
 0x104   :  { %713 = vmatmul.mubr.f32.gmra.mrb[16].mxu1 %v279_v27  ;;  %834 = vmatmul.mubr.f32.gmra.mrb[48].mxu0 %v279_v27  ;;  %v5039_v27 = vld [vmem:[%s6831_s3 + $0x1e4] ss:$20 sps:$4 sm:$0xff]  }
 0x105   :  { %v234_v34 = vpop.f32.mrb[20].mxu0  ;;  %718 = vmatprep.mubr.f32.mxu1 %v282_v31  ;;  %838 = vmatprep.mubr.f32.mxu0 %v282_v31  ;;  %v5040_v31 = vld [vmem:[%s6831_s3 + $0x1e8] ss:$20 sps:$4 sm:$0xff]  }
 0x106   :  { %v235_v36 = vadd.f32 %v234_v34, %v5487_v4  ;;  %v236_v37 = vpop.f32.mrb[21].mxu0  ;;  %1730 = vmatpush1.bf16.msra.mxu1 %v5001_v29  ;;  %1988 = vmatpush1.bf16.msra.mxu0 %v5004_v30  ;;  %v5037_v30 = vld [vmem:[%s6831_s3 + $0x1e0] ss:$20 sps:$4 sm:$0xff]   ;;  %v5043_v34 = vld [vmem:[%s6831_s3 + $0x208] ss:$20 sps:$4 sm:$0xff]  }
 0x107   :  { %v237_v40 = vadd.f32 %v236_v37, %v5490_v5  ;;  %v238_v41 = vpop.f32.mrb[22].mxu0  ;;  %1731 = vmatprep.subr.bf16.mxu1 %v5009_v32  ;;  %1989 = vmatprep.subr.bf16.mxu0 %v5012_v33  ;;  %v5045_v32 = vld [vmem:[%s6831_s3 + $0x20c] ss:$20 sps:$4 sm:$0xff]   ;;  %v5048_v33 = vld [vmem:[%s6831_s3 + $0x214] ss:$20 sps:$4 sm:$0xff]  }
 0x108   :  { %v240_v42 = vpop.f32.mrb[23].mxu0  ;;  %719 = vmatmul.mubr.f32.gmra.mrb[18].mxu1 %v281_v35  ;;  %839 = vmatmul.mubr.f32.gmra.mrb[50].mxu0 %v281_v35  ;;  %v283_v45 = vmax.f32 %v235_v36, 0.0  ;;  %v239_v46 = vadd.f32 %v238_v41, %v5487_v4  ;;  %v5046_v35 = vld [vmem:[%s6831_s3 + $0x210] ss:$20 sps:$4 sm:$0xff]   ;;  %v5051_v36 = vld [vmem:[%s6831_s3 + $0x234] ss:$20 sps:$4 sm:$0xff]  }
 0x109   :  { %v284_v43 = vmax.f32 %v237_v40, 0.0  ;;  %v241_v44 = vadd.f32 %v240_v42, %v5490_v5  ;;  %v5054_v37 = vld [vmem:[%s6831_s3 + $0x23c] ss:$20 sps:$4 sm:$0xff]   ;;  %v5060_v41 = vld [vmem:[%s6831_s3 + $0x264] ss:$20 sps:$4 sm:$0xff]  }
 0x10a   :  { %1732 = vmatpush1.bf16.msra.mxu1 %v5007_v38  ;;  %1990 = vmatpush1.bf16.msra.mxu0 %v5010_v39  ;;  %v285_v55 = vmax.f32 %v239_v46, 0.0  ;;  %v5049_v38 = vld [vmem:[%s6831_s3 + $0x230] ss:$20 sps:$4 sm:$0xff]   ;;  %v5052_v39 = vld [vmem:[%s6831_s3 + $0x238] ss:$20 sps:$4 sm:$0xff]  }
 0x10b   :  { %v286_v49 = vmax.f32 %v241_v44, 0.0  ;;  %724 = vmatprep.mubr.f32.mxu1 %v284_v43  ;;  %843 = vmatprep.mubr.f32.mxu0 %v284_v43  ;;  %v5057_v40 = vld [vmem:[%s6831_s3 + $0x25c] ss:$20 sps:$4 sm:$0xff]   ;;  %v5055_v42 = vld [vmem:[%s6831_s3 + $0x258] ss:$20 sps:$4 sm:$0xff]  }
 0x10c   :  { %725 = vmatmul.mubr.f32.gmra.mrb[20].mxu1 %v283_v45  ;;  %844 = vmatmul.mubr.f32.gmra.mrb[52].mxu0 %v283_v45  ;;  %v5058_v43 = vld [vmem:[%s6831_s3 + $0x260] ss:$20 sps:$4 sm:$0xff]   ;;  %v5063_v44 = vld [vmem:[%s6831_s3 + $0x284] ss:$20 sps:$4 sm:$0xff]  }
 0x10d   :  { %v244_v52 = vpop.f32.mrb[24].mxu0  ;;  %730 = vmatprep.mubr.f32.mxu1 %v286_v49  ;;  %848 = vmatprep.mubr.f32.mxu0 %v286_v49  ;;  %v5066_v45 = vld [vmem:[%s6831_s3 + $0x28c] ss:$20 sps:$4 sm:$0xff]  }
 0x10e   :  { %v245_v56 = vadd.f32 %v244_v52, %v5487_v4  ;;  %v246_v57 = vpop.f32.mrb[25].mxu0  ;;  %1733 = vmatprep.subr.bf16.mxu1 %v5015_v47  ;;  %1991 = vmatprep.subr.bf16.mxu0 %v5018_v48  ;;  %v5719_v46 = vld [vmem:[%s6832_s8 + $0x2] sm:$0x7] }
 0x10f   :  { %v247_v58 = vadd.f32 %v246_v57, %v5490_v5  ;;  %v248_v59 = vpop.f32.mrb[26].mxu0  ;;  %1734 = vmatpush1.bf16.msra.mxu1 %v5013_v50  ;;  %1992 = vmatpush1.bf16.msra.mxu0 %v5016_v51  ;;  %v5723_v47 = vrot.slane %v5719_v46, %v5478_v1  ;;  %v5727_v48 = vrot.slane %v5719_v46, %v5484_v3  ;;  %v5064_v57 = vld [vmem:[%s6831_s3 + $0x288] ss:$20 sps:$4 sm:$0xff]  }
 0x110   :  { %v250_v60 = vpop.f32.mrb[27].mxu0  ;;  %731 = vmatmul.mubr.f32.gmra.mrb[22].mxu1 %v285_v55  ;;  %849 = vmatmul.mubr.f32.gmra.mrb[54].mxu0 %v285_v55  ;;  %v287_v63 = vmax.f32 %v245_v56, 0.0  ;;  %v249_v2 = vadd.f32 %v248_v59, %v5487_v4  ;;  %v5061_v56 = vld [vmem:[%s6831_s3 + $0x280] ss:$20 sps:$4 sm:$0xff]  }
 0x111   :  { %v288_v61 = vmax.f32 %v247_v58, 0.0  ;;  %v251_v62 = vadd.f32 %v250_v60, %v5490_v5  ;;  %1735 = vmatprep.subr.bf16.mxu1 %v5021_v53  ;;  %1993 = vmatprep.subr.bf16.mxu0 %v5024_v54 }
 0x112   :  { %v289_v12 = vmax.f32 %v249_v2, 0.0 }
 0x113   :  { %v290_v8 = vmax.f32 %v251_v62, 0.0  ;;  %736 = vmatprep.mubr.f32.mxu1 %v288_v61  ;;  %853 = vmatprep.mubr.f32.mxu0 %v288_v61  ;;  %v5069_v61 = vld [vmem:[%s6831_s3 + $0x2ac] ss:$20 sps:$4 sm:$0xff]  }
 0x114   :  { %737 = vmatmul.mubr.f32.gmra.mrb[24].mxu1 %v287_v63  ;;  %854 = vmatmul.mubr.f32.gmra.mrb[56].mxu0 %v287_v63 }
 0x115   :  { %v254_v11 = vpop.f32.mrb[28].mxu0  ;;  %742 = vmatprep.mubr.f32.mxu1 %v290_v8  ;;  %858 = vmatprep.mubr.f32.mxu0 %v290_v8 }
 0x116   :  { %v255_v13 = vadd.f32 %v254_v11, %v5487_v4  ;;  %v256_v14 = vpop.f32.mrb[29].mxu0  ;;  %1736 = vmatpush1.bf16.msra.mxu1 %v5019_v6  ;;  %1994 = vmatpush1.bf16.msra.mxu0 %v5022_v7  ;;  %v5072_v7 = vld [vmem:[%s6831_s3 + $0x2b4] ss:$20 sps:$4 sm:$0xff]   ;;  %v5070_v11 = vld [vmem:[%s6831_s3 + $0x2b0] ss:$20 sps:$4 sm:$0xff]  }
 0x117   :  { %v257_v17 = vadd.f32 %v256_v14, %v5490_v5  ;;  %v258_v18 = vpop.f32.mrb[30].mxu0  ;;  %1737 = vmatprep.subr.bf16.mxu1 %v5027_v9  ;;  %1995 = vmatprep.subr.bf16.mxu0 %v5030_v10  ;;  %v5067_v10 = vld [vmem:[%s6831_s3 + $0x2a8] ss:$20 sps:$4 sm:$0xff]  }
 0x118   :  { %v260_v19 = vpop.f32.mrb[31].mxu0  ;;  %743 = vmatmul.mubr.f32.gmra.mrb[26].mxu1 %v289_v12  ;;  %859 = vmatmul.mubr.f32.gmra.mrb[58].mxu0 %v289_v12  ;;  %v291_v22 = vmax.f32 %v255_v13, 0.0  ;;  %v259_v23 = vadd.f32 %v258_v18, %v5487_v4  ;;  %v5034_v4 = vld [vmem:[%s6831_s3 + $0x1c0] ss:$20 sps:$4 sm:$0xff]  }
 0x119   :  { %v292_v20 = vmax.f32 %v257_v17, 0.0  ;;  %v261_v21 = vadd.f32 %v260_v19, %v5490_v5  ;;  %v5031_v5 = vld [vmem:[%s6831_s3 + $0x1b8] ss:$20 sps:$4 sm:$0xff]  }
 0x11a   :  { %1738 = vmatpush1.bf16.msra.mxu1 %v5025_v15  ;;  %1996 = vmatpush1.bf16.msra.mxu0 %v5028_v16  ;;  %v293_v29 = vmax.f32 %v259_v23, 0.0  ;;  %v5075_v15 = vld [vmem:[%s6831_s3 + $0x2d4] ss:$20 sps:$4 sm:$0xff]   ;;  %v5073_v23 = vld [vmem:[%s6831_s3 + $0x2d0] ss:$20 sps:$4 sm:$0xff]  }
 0x11b   :  { %v294_v26 = vmax.f32 %v261_v21, 0.0  ;;  %748 = vmatprep.mubr.f32.mxu1 %v292_v20  ;;  %863 = vmatprep.mubr.f32.mxu0 %v292_v20  ;;  %v5078_v20 = vld [vmem:[%s6831_s3 + $0x2dc] ss:$20 sps:$4 sm:$0xff]  }
 0x11c   :  { %749 = vmatmul.mubr.f32.gmra.mrb[28].mxu1 %v291_v22  ;;  %864 = vmatmul.mubr.f32.gmra.mrb[60].mxu0 %v291_v22 }
 0x11d   :  { %754 = vmatprep.mubr.f32.mxu1 %v294_v26  ;;  %868 = vmatprep.mubr.f32.mxu0 %v294_v26 }
 0x11e   :  { %1739 = vmatprep.subr.bf16.mxu1 %v5033_v24  ;;  %1997 = vmatprep.subr.bf16.mxu0 %v5036_v25  ;;  %v5076_v24 = vld [vmem:[%s6831_s3 + $0x2d8] ss:$20 sps:$4 sm:$0xff]  }
 0x11f   :  { %1740 = vmatpush1.bf16.msra.mxu1 %v5031_v5  ;;  %1998 = vmatpush1.bf16.msra.mxu0 %v5034_v4  ;;  %v5081_v4 = vld [vmem:[%s6831_s3 + $0x2fc] ss:$20 sps:$4 sm:$0xff]  }
 0x120   :  { %755 = vmatmul.mubr.f32.gmra.mrb[30].mxu1 %v293_v29  ;;  %869 = vmatmul.mubr.f32.gmra.mrb[62].mxu0 %v293_v29 }
 0x121   :  { %1741 = vmatprep.subr.bf16.mxu1 %v5039_v27  ;;  %1999 = vmatprep.subr.bf16.mxu0 %v5042_v28 }
 0x123   :  { %1742 = vmatpush1.bf16.msra.mxu1 %v5037_v30  ;;  %2000 = vmatpush1.bf16.msra.mxu0 %v5040_v31  ;;  %v5084_v31 = vld [vmem:[%s6831_s3 + $0x304] ss:$20 sps:$4 sm:$0xff]  }
 0x124   :  { %1743 = vmatprep.subr.bf16.mxu1 %v5045_v32  ;;  %2001 = vmatprep.subr.bf16.mxu0 %v5048_v33 }
 0x127   :  { %1744 = vmatpush1.bf16.msra.mxu1 %v5043_v34  ;;  %2002 = vmatpush1.bf16.msra.mxu0 %v5046_v35  ;;  %v5079_v34 = vld [vmem:[%s6831_s3 + $0x2f8] ss:$20 sps:$4 sm:$0xff]   ;;  %v5082_v35 = vld [vmem:[%s6831_s3 + $0x300] ss:$20 sps:$4 sm:$0xff]  }
 0x128   :  { %1745 = vmatprep.subr.bf16.mxu1 %v5051_v36  ;;  %2003 = vmatprep.subr.bf16.mxu0 %v5054_v37 }
 0x12b   :  { %1746 = vmatpush1.bf16.msra.mxu1 %v5049_v38  ;;  %2004 = vmatpush1.bf16.msra.mxu0 %v5052_v39  ;;  %v5087_v39 = vld [vmem:[%s6831_s3 + $0x324] ss:$20 sps:$4 sm:$0xff]  }
 0x12c   :  { %1747 = vmatprep.subr.bf16.mxu1 %v5057_v40  ;;  %2005 = vmatprep.subr.bf16.mxu0 %v5060_v41 }
 0x12f   :  { %1748 = vmatpush1.bf16.msra.mxu1 %v5055_v42  ;;  %2006 = vmatpush1.bf16.msra.mxu0 %v5058_v43 }
 0x130   :  { %1846 = vmatprep.subr.bf16.mxu1 %v5063_v44  ;;  %2104 = vmatprep.subr.bf16.mxu0 %v5066_v45  ;;  %v5090_v44 = vld [vmem:[%s6831_s3 + $0x32c] ss:$20 sps:$4 sm:$0xff]  }
 0x1b7   :  { %v666_v49 = vpop.f32.mrb[0].mxu1  ;;  %v4245_v50 = vpop.f32.mrb[32].mxu0 }
 0x1b8   :  { %v667_v51 = vadd.f32 %v666_v49, %v5723_v47  ;;  %v668_v52 = vpop.f32.mrb[1].mxu1  ;;  %v4246_v53 = vpop.f32.mrb[33].mxu0 }
 0x1b9   :  { %v669_v54 = vadd.f32 %v668_v52, %v5727_v48  ;;  %v5731_v55 = vadd.f32 %v4246_v53, %v4245_v50  ;;  %v5085_v50 = vld [vmem:[%s6831_s3 + $0x320] ss:$20 sps:$4 sm:$0xff]  }
 0x1ba   :  { %v5744_v62 = vmax.f32 %v667_v51, 0.0  ;;  %v5088_v51 = vld [vmem:[%s6831_s3 + $0x328] ss:$20 sps:$4 sm:$0xff]  }
 0x1bb   :  { %v5739_v58 = vmax.f32 %v669_v54, 0.0  ;;  %v672_v59 = vpop.f32.mrb[2].mxu1  ;;  %v4248_v60 = vpop.f32.mrb[34].mxu0 }
 0x1bc   :  { %v673_v63 = vadd.f32 %v672_v59, %v5723_v47  ;;  %v674_v2 = vpop.f32.mrb[3].mxu1  ;;  %v4249_v6 = vpop.f32.mrb[35].mxu0 }
 0x1bd   :  { %v675_v8 = vadd.f32 %v674_v2, %v5727_v48  ;;  %v5751_v9 = vadd.f32 %v4249_v6, %v4248_v60  ;;  %1749 = vmatprep.mubr.f32.mxu1 %v5739_v58  ;;  %2007 = vmatprep.mubr.f32.mxu0 %v5739_v58 }
 0x1be   :  { %1750 = vmatmul.mubr.f32.vlgmr.msra.gmra.mrb[32].mxu1 %v5744_v62  ;;  %2008 = vmatmul.mubr.f32.vlgmr.msra.gmra.mrb[64].mxu0 %v5744_v62  ;;  %v5768_v16 = vmax.f32 %v673_v63, 0.0  ;;  %v5096_v63 = vld [vmem:[%s6831_s3 + $0x354] ss:$20 sps:$4 sm:$0xff]  }
 0x1bf   :  { %v5763_v12 = vmax.f32 %v675_v8, 0.0  ;;  %1847 = vmatpush1.bf16.msra.mxu1 %v5061_v56  ;;  %v678_v13 = vpop.f32.mrb[4].mxu1  ;;  %v4251_v14 = vpop.f32.mrb[36].mxu0  ;;  %2105 = vmatpush1.bf16.msra.mxu0 %v5064_v57  ;;  %v5093_v56 = vld [vmem:[%s6831_s3 + $0x34c] ss:$20 sps:$4 sm:$0xff]  }
 0x1c0   :  { %v679_v17 = vadd.f32 %v678_v13, %v5723_v47  ;;  %v680_v18 = vpop.f32.mrb[5].mxu1  ;;  %v4252_v19 = vpop.f32.mrb[37].mxu0  ;;  %1848 = vmatprep.subr.bf16.mxu1 %v5069_v61  ;;  %2106 = vmatprep.subr.bf16.mxu0 %v5072_v7  ;;  %v5091_v7 = vld [vmem:[%s6831_s3 + $0x348] ss:$20 sps:$4 sm:$0xff]   ;;  %v5094_v8 = vld [vmem:[%s6831_s3 + $0x350] ss:$20 sps:$4 sm:$0xff]  }
 0x1c1   :  { %v681_v21 = vadd.f32 %v680_v18, %v5727_v48  ;;  %v5775_v22 = vadd.f32 %v4252_v19, %v4251_v14  ;;  %1755 = vmatprep.mubr.f32.mxu1 %v5763_v12  ;;  %2013 = vmatprep.mubr.f32.mxu0 %v5763_v12  ;;  %v5099_v14 = vld [vmem:[%s6831_s3 + $0x374] ss:$20 sps:$4 sm:$0xff]  }
 0x1c2   :  { %1756 = vmatmul.mubr.f32.gmra.mrb[34].mxu1 %v5768_v16  ;;  %2014 = vmatmul.mubr.f32.gmra.mrb[66].mxu0 %v5768_v16  ;;  %v5792_v27 = vmax.f32 %v679_v17, 0.0 }
 0x1c3   :  { %v5787_v25 = vmax.f32 %v681_v21, 0.0  ;;  %v684_v26 = vpop.f32.mrb[6].mxu1  ;;  %v4254_v5 = vpop.f32.mrb[38].mxu0  ;;  %1849 = vmatpush1.bf16.msra.mxu1 %v5067_v10  ;;  %2107 = vmatpush1.bf16.msra.mxu0 %v5070_v11 }
 0x1c4   :  { %v685_v28 = vadd.f32 %v684_v26, %v5723_v47  ;;  %v686_v29 = vpop.f32.mrb[7].mxu1  ;;  %v4255_v30 = vpop.f32.mrb[39].mxu0  ;;  %1850 = vmatprep.subr.bf16.mxu1 %v5075_v15  ;;  %2108 = vmatprep.subr.bf16.mxu0 %v5078_v20  ;;  %v5102_v20 = vld [vmem:[%s6831_s3 + $0x37c] ss:$20 sps:$4 sm:$0xff]   ;;  %v5100_v26 = vld [vmem:[%s6831_s3 + $0x378] ss:$20 sps:$4 sm:$0xff]  }
 0x1c5   :  { %v687_v32 = vadd.f32 %v686_v29, %v5727_v48  ;;  %v5799_v33 = vadd.f32 %v4255_v30, %v4254_v5  ;;  %1761 = vmatprep.mubr.f32.mxu1 %v5787_v25  ;;  %2019 = vmatprep.mubr.f32.mxu0 %v5787_v25  ;;  %v5105_v29 = vld [vmem:[%s6831_s3 + $0x39c] ss:$20 sps:$4 sm:$0xff]  }
 0x1c6   :  { %1762 = vmatmul.mubr.f32.gmra.mrb[36].mxu1 %v5792_v27  ;;  %2020 = vmatmul.mubr.f32.gmra.mrb[68].mxu0 %v5792_v27  ;;  %v5816_v40 = vmax.f32 %v685_v28, 0.0 }
 0x1c7   :  { %v5811_v36 = vmax.f32 %v687_v32, 0.0  ;;  %v690_v37 = vpop.f32.mrb[8].mxu1  ;;  %v4257_v38 = vpop.f32.mrb[40].mxu0  ;;  %1851 = vmatpush1.bf16.msra.mxu1 %v5073_v23  ;;  %2109 = vmatpush1.bf16.msra.mxu0 %v5076_v24  ;;  %v5097_v24 = vld [vmem:[%s6831_s3 + $0x370] ss:$20 sps:$4 sm:$0xff]  }
 0x1c8   :  { %v691_v41 = vadd.f32 %v690_v37, %v5723_v47  ;;  %v692_v42 = vpop.f32.mrb[9].mxu1  ;;  %v4258_v43 = vpop.f32.mrb[41].mxu0  ;;  %1852 = vmatprep.subr.bf16.mxu1 %v5081_v4  ;;  %2110 = vmatprep.subr.bf16.mxu0 %v5084_v31 }
 0x1c9   :  { %v693_v45 = vadd.f32 %v692_v42, %v5727_v48  ;;  %v5823_v49 = vadd.f32 %v4258_v43, %v4257_v38  ;;  %1767 = vmatprep.mubr.f32.mxu1 %v5811_v36  ;;  %2025 = vmatprep.mubr.f32.mxu0 %v5811_v36 }
 0x1ca   :  { %1768 = vmatmul.mubr.f32.gmra.mrb[38].mxu1 %v5816_v40  ;;  %2026 = vmatmul.mubr.f32.gmra.mrb[70].mxu0 %v5816_v40  ;;  %v5840_v57 = vmax.f32 %v691_v41, 0.0  ;;  %v5106_v41 = vld [vmem:[%s6831_s3 + $0x3a0] ss:$20 sps:$4 sm:$0xff]  }
 0x1cb   :  { %v5835_v52 = vmax.f32 %v693_v45, 0.0  ;;  %v696_v53 = vpop.f32.mrb[10].mxu1  ;;  %v4260_v54 = vpop.f32.mrb[42].mxu0  ;;  %1853 = vmatpush1.bf16.msra.mxu1 %v5079_v34  ;;  %2111 = vmatpush1.bf16.msra.mxu0 %v5082_v35  ;;  %v5108_v35 = vld [vmem:[%s6831_s3 + $0x3a4] ss:$20 sps:$4 sm:$0xff]  }
 0x1cc   :  { %v697_v59 = vadd.f32 %v696_v53, %v5723_v47  ;;  %v698_v60 = vpop.f32.mrb[11].mxu1  ;;  %v4261_v61 = vpop.f32.mrb[43].mxu0  ;;  %1854 = vmatprep.subr.bf16.mxu1 %v5087_v39  ;;  %2112 = vmatprep.subr.bf16.mxu0 %v5090_v44  ;;  %v5103_v39 = vld [vmem:[%s6831_s3 + $0x398] ss:$20 sps:$4 sm:$0xff]   ;;  %v5109_v45 = vld [vmem:[%s6831_s3 + $0x150] ss:$20 sps:$4 sm:$0xff]  }
 0x1cd   :  { %v699_v2 = vadd.f32 %v698_v60, %v5727_v48  ;;  %v5847_v6 = vadd.f32 %v4261_v61, %v4260_v54  ;;  %1773 = vmatprep.mubr.f32.mxu1 %v5835_v52  ;;  %2031 = vmatprep.mubr.f32.mxu0 %v5835_v52 }
 0x1ce   :  { %1774 = vmatmul.mubr.f32.gmra.mrb[40].mxu1 %v5840_v57  ;;  %2032 = vmatmul.mubr.f32.gmra.mrb[72].mxu0 %v5840_v57  ;;  %v5864_v15 = vmax.f32 %v697_v59, 0.0 }
 0x1cf   :  { %v5859_v10 = vmax.f32 %v699_v2, 0.0  ;;  %v702_v11 = vpop.f32.mrb[12].mxu1  ;;  %v4263_v13 = vpop.f32.mrb[44].mxu0  ;;  %1855 = vmatpush1.bf16.msra.mxu1 %v5085_v50  ;;  %2113 = vmatpush1.bf16.msra.mxu0 %v5088_v51 }
 0x1d0   :  { %v703_v17 = vadd.f32 %v702_v11, %v5723_v47  ;;  %v704_v18 = vpop.f32.mrb[13].mxu1  ;;  %v4264_v19 = vpop.f32.mrb[45].mxu0  ;;  %1856 = vmatprep.subr.bf16.mxu1 %v5093_v56  ;;  %2114 = vmatprep.subr.bf16.mxu0 %v5096_v63  ;;  %v5918_v56 = vld [vmem:[%s6831_s3 + $0x290] ss:$20 sps:$4 sm:$0xff]  }
 0x1d1   :  { %v705_v21 = vadd.f32 %v704_v18, %v5727_v48  ;;  %v5871_v23 = vadd.f32 %v4264_v19, %v4263_v13  ;;  %1779 = vmatprep.mubr.f32.mxu1 %v5859_v10  ;;  %2037 = vmatprep.mubr.f32.mxu0 %v5859_v10 }
 0x1d2   :  { %1780 = vmatmul.mubr.f32.gmra.mrb[42].mxu1 %v5864_v15  ;;  %2038 = vmatmul.mubr.f32.gmra.mrb[74].mxu0 %v5864_v15  ;;  %v5888_v30 = vmax.f32 %v703_v17, 0.0 }
 0x1d3   :  { %v5883_v5 = vmax.f32 %v705_v21, 0.0  ;;  %v708_v4 = vpop.f32.mrb[14].mxu1  ;;  %v4266_v28 = vpop.f32.mrb[46].mxu0  ;;  %1857 = vmatpush1.bf16.msra.mxu1 %v5091_v7  ;;  %2115 = vmatpush1.bf16.msra.mxu0 %v5094_v8 }
 0x1d4   :  { %v709_v31 = vadd.f32 %v708_v4, %v5723_v47  ;;  %v710_v32 = vpop.f32.mrb[15].mxu1  ;;  %v4267_v34 = vpop.f32.mrb[47].mxu0  ;;  %1858 = vmatprep.subr.bf16.mxu1 %v5099_v14  ;;  %2116 = vmatprep.subr.bf16.mxu0 %v5102_v20 }
 0x1d5   :  { %v711_v37 = vadd.f32 %v710_v32, %v5727_v48  ;;  %v5895_v38 = vadd.f32 %v4267_v34, %v4266_v28  ;;  %1785 = vmatprep.mubr.f32.mxu1 %v5883_v5  ;;  %2043 = vmatprep.mubr.f32.mxu0 %v5883_v5 }
 0x1d6   :  { %1786 = vmatmul.mubr.f32.gmra.mrb[44].mxu1 %v5888_v30  ;;  %2044 = vmatmul.mubr.f32.gmra.mrb[76].mxu0 %v5888_v30  ;;  %v5912_v50 = vmax.f32 %v709_v31, 0.0 }
 0x1d7   :  { %v5907_v42 = vmax.f32 %v711_v37, 0.0  ;;  %v714_v43 = vpop.f32.mrb[16].mxu1  ;;  %v4269_v44 = vpop.f32.mrb[48].mxu0  ;;  %1859 = vmatpush1.bf16.msra.mxu1 %v5097_v24  ;;  %2117 = vmatpush1.bf16.msra.mxu0 %v5100_v26 }
 0x1d8   :  { %v715_v51 = vadd.f32 %v714_v43, %v5723_v47  ;;  %v716_v53 = vpop.f32.mrb[17].mxu1  ;;  %v4270_v54 = vpop.f32.mrb[49].mxu0  ;;  %1860 = vmatprep.subr.bf16.mxu1 %v5105_v29  ;;  %2118 = vmatprep.subr.bf16.mxu0 %v5108_v35 }
 0x1d9   :  { %v717_v59 = vadd.f32 %v716_v53, %v5727_v48  ;;  %v5921_v60 = vadd.f32 %v4270_v54, %v4269_v44  ;;  %1791 = vmatprep.mubr.f32.mxu1 %v5907_v42  ;;  %2049 = vmatprep.mubr.f32.mxu0 %v5907_v42 }
 0x1da   :  { %1792 = vmatmul.mubr.f32.gmra.mrb[46].mxu1 %v5912_v50  ;;  %2050 = vmatmul.mubr.f32.gmra.mrb[78].mxu0 %v5912_v50  ;;  %v5929_v7 = vmax.f32 %v715_v51, 0.0 }
 0x1db   :  { %v5927_v61 = vmax.f32 %v717_v59, 0.0  ;;  %v720_v63 = vpop.f32.mrb[18].mxu1  ;;  %v4272_v2 = vpop.f32.mrb[50].mxu0  ;;  %1861 = vmatpush1.bf16.msra.mxu1 %v5103_v39  ;;  %2119 = vmatpush1.bf16.msra.mxu0 %v5106_v41 }
 0x1dc   :  { %v721_v8 = vadd.f32 %v720_v63, %v5723_v47  ;;  %v722_v11 = vpop.f32.mrb[19].mxu1  ;;  %v4273_v13 = vpop.f32.mrb[51].mxu0  ;;  %4293 = vmatprep.subr.bf16.mxu1 %v5109_v45  ;;  %4621 = vmatprep.subr.bf16.mxu0 %v5918_v56 }
 0x1dd   :  { %v723_v14 = vadd.f32 %v722_v11, %v5727_v48  ;;  %v5934_v17 = vadd.f32 %v4273_v13, %v4272_v2  ;;  %1797 = vmatprep.mubr.f32.mxu1 %v5927_v61  ;;  %2055 = vmatprep.mubr.f32.mxu0 %v5927_v61 }
 0x1de   :  { %1798 = vmatmul.mubr.f32.gmra.mrb[48].mxu1 %v5929_v7  ;;  %2056 = vmatmul.mubr.f32.gmra.mrb[80].mxu0 %v5929_v7  ;;  %v5942_v21 = vmax.f32 %v721_v8, 0.0 }
 0x1df   :  { %v5940_v18 = vmax.f32 %v723_v14, 0.0  ;;  %v726_v19 = vpop.f32.mrb[20].mxu1  ;;  %v4275_v20 = vpop.f32.mrb[52].mxu0 }
 0x1e0   :  { %v727_v24 = vadd.f32 %v726_v19, %v5723_v47  ;;  %v728_v26 = vpop.f32.mrb[21].mxu1  ;;  %v4276_v4 = vpop.f32.mrb[53].mxu0 }
 0x1e1   :  { %v729_v28 = vadd.f32 %v728_v26, %v5727_v48  ;;  %v5946_v29 = vadd.f32 %v4276_v4, %v4275_v20  ;;  %1803 = vmatprep.mubr.f32.mxu1 %v5940_v18  ;;  %2061 = vmatprep.mubr.f32.mxu0 %v5940_v18 }
 0x1e2   :  { %1804 = vmatmul.mubr.f32.gmra.mrb[50].mxu1 %v5942_v21  ;;  %2062 = vmatmul.mubr.f32.gmra.mrb[82].mxu0 %v5942_v21  ;;  %v5954_v35 = vmax.f32 %v727_v24, 0.0 }
 0x1e3   :  { %v5952_v31 = vmax.f32 %v729_v28, 0.0  ;;  %v732_v32 = vpop.f32.mrb[22].mxu1  ;;  %v4278_v34 = vpop.f32.mrb[54].mxu0 }
 0x1e4   :  { %v733_v37 = vadd.f32 %v732_v32, %v5723_v47  ;;  %v734_v39 = vpop.f32.mrb[23].mxu1  ;;  %v4279_v41 = vpop.f32.mrb[55].mxu0 }
 0x1e5   :  { %v735_v43 = vadd.f32 %v734_v39, %v5727_v48  ;;  %v5958_v44 = vadd.f32 %v4279_v41, %v4278_v34  ;;  %1809 = vmatprep.mubr.f32.mxu1 %v5952_v31  ;;  %2067 = vmatprep.mubr.f32.mxu0 %v5952_v31  ;;  %v371_v41 = vsub.s32 2, %v5475_v0 }
 0x1e6   :  { %1810 = vmatmul.mubr.f32.gmra.mrb[52].mxu1 %v5954_v35  ;;  %2068 = vmatmul.mubr.f32.gmra.mrb[84].mxu0 %v5954_v35  ;;  %v5966_v54 = vmax.f32 %v733_v37, 0.0 }
 0x1e7   :  { %v5964_v45 = vmax.f32 %v735_v43, 0.0  ;;  %v738_v51 = vpop.f32.mrb[24].mxu1  ;;  %v4281_v53 = vpop.f32.mrb[56].mxu0 }
 0x1e8   :  { %v739_v59 = vadd.f32 %v738_v51, %v5723_v47  ;;  %v740_v63 = vpop.f32.mrb[25].mxu1  ;;  %v4282_v2 = vpop.f32.mrb[57].mxu0 }
 0x1e9   :  { %v741_v8 = vadd.f32 %v740_v63, %v5727_v48  ;;  %v5970_v11 = vadd.f32 %v4282_v2, %v4281_v53  ;;  %1815 = vmatprep.mubr.f32.mxu1 %v5964_v45  ;;  %2073 = vmatprep.mubr.f32.mxu0 %v5964_v45 }
 0x1ea   :  { %1816 = vmatmul.mubr.f32.gmra.mrb[54].mxu1 %v5966_v54  ;;  %2074 = vmatmul.mubr.f32.gmra.mrb[86].mxu0 %v5966_v54  ;;  %v5978_v20 = vmax.f32 %v739_v59, 0.0 }
 0x1eb   :  { %v5976_v13 = vmax.f32 %v741_v8, 0.0  ;;  %v744_v14 = vpop.f32.mrb[26].mxu1  ;;  %v4284_v19 = vpop.f32.mrb[58].mxu0 }
 0x1ec   :  { %v745_v24 = vadd.f32 %v744_v14, %v5723_v47  ;;  %v746_v26 = vpop.f32.mrb[27].mxu1  ;;  %v4285_v4 = vpop.f32.mrb[59].mxu0 }
 0x1ed   :  { %v747_v28 = vadd.f32 %v746_v26, %v5727_v48  ;;  %v5982_v32 = vadd.f32 %v4285_v4, %v4284_v19  ;;  %1821 = vmatprep.mubr.f32.mxu1 %v5976_v13  ;;  %2079 = vmatprep.mubr.f32.mxu0 %v5976_v13 }
 0x1ee   :  { %1822 = vmatmul.mubr.f32.gmra.mrb[56].mxu1 %v5978_v20  ;;  %2080 = vmatmul.mubr.f32.gmra.mrb[88].mxu0 %v5978_v20  ;;  %v5991_v43 = vmax.f32 %v745_v24, 0.0  ;;  %v6006_v24 = vrot.slane %v5719_v46, %v371_v41 }
 0x1ef   :  { %v5988_v34 = vmax.f32 %v747_v28, 0.0  ;;  %v750_v37 = vpop.f32.mrb[28].mxu1  ;;  %v4287_v39 = vpop.f32.mrb[60].mxu0 }
 0x1f0   :  { %v751_v51 = vadd.f32 %v750_v37, %v5723_v47  ;;  %v752_v53 = vpop.f32.mrb[29].mxu1  ;;  %v4288_v59 = vpop.f32.mrb[61].mxu0 }
 0x1f1   :  { %v753_v63 = vadd.f32 %v752_v53, %v5727_v48  ;;  %v5995_v2 = vadd.f32 %v4288_v59, %v4287_v39  ;;  %1827 = vmatprep.mubr.f32.mxu1 %v5988_v34  ;;  %2085 = vmatprep.mubr.f32.mxu0 %v5988_v34  ;;  %v5222_v59 = vmov 0.0  }
 0x1f2   :  { %1828 = vmatmul.mubr.f32.gmra.mrb[58].mxu1 %v5991_v43  ;;  %2086 = vmatmul.mubr.f32.gmra.mrb[90].mxu0 %v5991_v43  ;;  %v6008_v26 = vmax.f32 %v751_v51, 0.0  ;;  %v796_v51 = vadd.f32 %v5731_v55, %v6006_v24  ;;  %v5112_v55 = vld [vmem:[%s6831_s3 + $0x178] ss:$20 sps:$4 sm:$0xff]  }
 0x1f3   :  { %v6001_v8 = vmax.f32 %v753_v63, 0.0  ;;  %v756_v14 = vpop.f32.mrb[30].mxu1  ;;  %v4290_v19 = vpop.f32.mrb[62].mxu0 }
 0x1f4   :  { %v757_v4 = vadd.f32 %v756_v14, %v5723_v47  ;;  %v758_v28 = vpop.f32.mrb[31].mxu1  ;;  %v4291_v37 = vpop.f32.mrb[63].mxu0  ;;  %v6036_v63 = vmax.f32 %v796_v51, 0.0  ;;  %v801_v14 = vadd.f32 %v5751_v9, %v6006_v24  ;;  %v806_v9 = vadd.f32 %v5775_v22, %v6006_v24  ;;  %v5117_v22 = vld [vmem:[%s6831_s3 + $0x2e0] ss:$20 sps:$4 sm:$0xff]  }
 0x1f5   :  { %v759_v39 = vadd.f32 %v758_v28, %v5727_v48  ;;  %v6012_v53 = vadd.f32 %v4291_v37, %v4290_v19  ;;  %1833 = vmatprep.mubr.f32.mxu1 %v6001_v8  ;;  %2091 = vmatprep.mubr.f32.mxu0 %v6001_v8  ;;  %v5110_v48 = vld [vmem:[%s6831_s3 + $0x10] ss:$20 sps:$4 sm:$0xff]   ;;  %v5113_v19 = vld [vmem:[%s6831_s3 + $0x38] ss:$20 sps:$4 sm:$0xff]   ;;  %v5115_v37 = vld [vmem:[%s6831_s3 + $0x1a0] ss:$20 sps:$4 sm:$0xff]   ;;  %v811_v51 = vadd.f32 %v5799_v33, %v6006_v24 }
 0x1f6   :  { %1834 = vmatmul.mubr.f32.gmra.mrb[60].mxu1 %v6008_v26  ;;  %2092 = vmatmul.mubr.f32.gmra.mrb[92].mxu0 %v6008_v26  ;;  %v6022_v47 = vmax.f32 %v757_v4, 0.0  ;;  %v5114_v4 = vld [vmem:[%s6831_s3 + $0x2b8] ss:$20 sps:$4 sm:$0xff]   ;;  %v6049_v28 = vmax.f32 %v801_v14, 0.0  ;;  %v5120_v33 = vld [vmem:[%s6831_s3 + $0x308] ss:$20 sps:$4 sm:$0xff]  }
 0x1f7   :  { %v6018_v46 = vmax.f32 %v759_v39, 0.0  ;;  %v5116_v39 = vld [vmem:[%s6831_s3 + $0x60] ss:$20 sps:$4 sm:$0xff]   ;;  %v6085_v14 = vmax.f32 %v811_v51, 0.0  ;;  %v5125_v51 = vld [vmem:[%s6831_s3 + $0xd8] ss:$20 sps:$4 sm:$0xff]  }
 0x1f9   :  { %1839 = vmatprep.mubr.f32.mxu1 %v6018_v46  ;;  %2097 = vmatprep.mubr.f32.mxu0 %v6018_v46 }
 0x1fa   :  { %1840 = vmatmul.mubr.f32.gmra.mrb[62].mxu1 %v6022_v47  ;;  %2098 = vmatmul.mubr.f32.gmra.mrb[94].mxu0 %v6022_v47 }
 0x1fb   :  { %1878 = vmatprep.mubr.f32.mxu1 %v5222_v59  ;;  %2136 = vmatprep.mubr.f32.mxu0 %v5222_v59 }
 0x1fe   :  { %1879 = vmatmul.mubr.f32.vlgmr.msra.gmra.mrb[32].mxu1 %v6036_v63  ;;  %2137 = vmatmul.mubr.f32.vlgmr.msra.gmra.mrb[64].mxu0 %v6036_v63 }
 0x1ff   :  { %4294 = vmatpush3.bf16.msra.mxu1 %v5110_v48  ;;  %1884 = vmatprep.mubr.f32.mxu1 %v5222_v59  ;;  %v5118_v48 = vld [vmem:[%s6831_s3 + $0x1c8] ss:$20 sps:$4 sm:$0xff]  }
 0x200   :  { %2142 = vmatprep.mubr.f32.mxu0 %v5222_v59  ;;  %4295 = vmatprep.subr.bf16.mxu1 %v5112_v55  ;;  %v5119_v55 = vld [vmem:[%s6831_s3 + $0x88] ss:$20 sps:$4 sm:$0xff]  }
 0x201   :  { %4622 = vmatpush3.bf16.msra.mxu0 %v5918_v56  ;;  %v6068_v56 = vmax.f32 %v806_v9, 0.0  ;;  %v5122_v9 = vld [vmem:[%s6831_s3 + $0xb0] ss:$20 sps:$4 sm:$0xff]  }
 0x202   :  { %1885 = vmatmul.mubr.f32.gmra.mrb[34].mxu1 %v6049_v28  ;;  %2143 = vmatmul.mubr.f32.gmra.mrb[66].mxu0 %v6049_v28 }
 0x203   :  { %1890 = vmatprep.mubr.f32.mxu1 %v5222_v59  ;;  %2148 = vmatprep.mubr.f32.mxu0 %v5222_v59 }
 0x204   :  { %4296 = vmatpush3.bf16.msra.mxu1 %v5113_v19  ;;  %4623 = vmatprep.subr.bf16.mxu0 %v5114_v4  ;;  %v816_v19 = vadd.f32 %v5823_v49, %v6006_v24  ;;  %v5123_v49 = vld [vmem:[%s6831_s3 + $0x330] ss:$20 sps:$4 sm:$0xff]  }
 0x205   :  { %4297 = vmatprep.subr.bf16.mxu1 %v5115_v37  ;;  %4624 = vmatpush3.bf16.msra.mxu0 %v5114_v4  ;;  %v5121_v4 = vld [vmem:[%s6831_s3 + $0x1f0] ss:$20 sps:$4 sm:$0xff]  }
 0x206   :  { %1891 = vmatmul.mubr.f32.gmra.mrb[36].mxu1 %v6068_v56  ;;  %2149 = vmatmul.mubr.f32.gmra.mrb[68].mxu0 %v6068_v56  ;;  %v6102_v37 = vmax.f32 %v816_v19, 0.0  ;;  %v836_v19 = vadd.f32 %v5921_v60, %v6006_v24 }
 0x207   :  { %1896 = vmatprep.mubr.f32.mxu1 %v5222_v59  ;;  %2154 = vmatprep.mubr.f32.mxu0 %v5222_v59 }
 0x208   :  { %4298 = vmatpush3.bf16.msra.mxu1 %v5116_v39  ;;  %4625 = vmatprep.subr.bf16.mxu0 %v5117_v22  ;;  %v821_v39 = vadd.f32 %v5847_v6, %v6006_v24  ;;  %v5126_v6 = vld [vmem:[%s6831_s3 + $0x358] ss:$20 sps:$4 sm:$0xff]  }
 0x209   :  { %4299 = vmatprep.subr.bf16.mxu1 %v5118_v48  ;;  %4626 = vmatpush3.bf16.msra.mxu0 %v5117_v22  ;;  %v5124_v22 = vld [vmem:[%s6831_s3 + $0x218] ss:$20 sps:$4 sm:$0xff]   ;;  %v826_v48 = vadd.f32 %v5871_v23, %v6006_v24  ;;  %v5127_v23 = vld [vmem:[%s6831_s3 + $0x240] ss:$20 sps:$4 sm:$0xff]  }
 0x20a   :  { %1897 = vmatmul.mubr.f32.gmra.mrb[38].mxu1 %v6085_v14  ;;  %2155 = vmatmul.mubr.f32.gmra.mrb[70].mxu0 %v6085_v14 }
 0x20b   :  { %1902 = vmatprep.mubr.f32.mxu1 %v5222_v59  ;;  %2160 = vmatprep.mubr.f32.mxu0 %v5222_v59  ;;  %v6138_v60 = vmax.f32 %v826_v48, 0.0  ;;  %v5132_v48 = vld [vmem:[%s6831_s3 + $0x3a8] ss:$20 sps:$4 sm:$0xff]  }
 0x20c   :  { %4300 = vmatpush3.bf16.msra.mxu1 %v5119_v55  ;;  %4627 = vmatprep.subr.bf16.mxu0 %v5120_v33  ;;  %v6121_v55 = vmax.f32 %v821_v39, 0.0  ;;  %v6147_v39 = vmax.f32 %v836_v19, 0.0 }
 0x20d   :  { %4301 = vmatprep.subr.bf16.mxu1 %v5121_v4  ;;  %4628 = vmatpush3.bf16.msra.mxu0 %v5120_v33  ;;  %v831_v33 = vadd.f32 %v5895_v38, %v6006_v24  ;;  %v5128_v4 = vld [vmem:[%s6831_s3 + $0x100] ss:$20 sps:$4 sm:$0xff]  }
 0x20e   :  { %1903 = vmatmul.mubr.f32.gmra.mrb[40].mxu1 %v6102_v37  ;;  %2161 = vmatmul.mubr.f32.gmra.mrb[72].mxu0 %v6102_v37  ;;  %v5129_v38 = vld [vmem:[%s6831_s3 + $0x380] ss:$20 sps:$4 sm:$0xff]  }
 0x20f   :  { %1908 = vmatprep.mubr.f32.mxu1 %v5222_v59  ;;  %2166 = vmatprep.mubr.f32.mxu0 %v5222_v59 }
 0x210   :  { %4302 = vmatpush3.bf16.msra.mxu1 %v5122_v9  ;;  %4629 = vmatprep.subr.bf16.mxu0 %v5123_v49  ;;  %v5130_v9 = vld [vmem:[%s6831_s3 + $0x268] ss:$20 sps:$4 sm:$0xff]  }
 0x211   :  { %4303 = vmatprep.subr.bf16.mxu1 %v5124_v22  ;;  %4630 = vmatpush3.bf16.msra.mxu0 %v5123_v49  ;;  %v6145_v49 = vmax.f32 %v831_v33, 0.0  ;;  %v5131_v22 = vld [vmem:[%s6831_s3 + $0x128] ss:$20 sps:$4 sm:$0xff]   ;;  %v841_v33 = vadd.f32 %v5934_v17, %v6006_v24 }
 0x212   :  { %1909 = vmatmul.mubr.f32.gmra.mrb[42].mxu1 %v6121_v55  ;;  %2167 = vmatmul.mubr.f32.gmra.mrb[74].mxu0 %v6121_v55 }
 0x213   :  { %1914 = vmatprep.mubr.f32.mxu1 %v5222_v59  ;;  %2172 = vmatprep.mubr.f32.mxu0 %v5222_v59  ;;  %v6175_v19 = vmax.f32 %v841_v33, 0.0  ;;  %v5159_v33 = vld [vmem:[%s6833_s4 + $0x30] sm:$0xff]  }
 0x214   :  { %4304 = vmatpush3.bf16.msra.mxu1 %v5125_v51  ;;  %4631 = vmatprep.subr.bf16.mxu0 %v5126_v6  ;;  %v5134_v51 = vld [vmem:[%s6833_s4 + $0xc0] sm:$0xff]  }
 0x215   :  { %4305 = vmatprep.subr.bf16.mxu1 %v5127_v23  ;;  %4632 = vmatpush3.bf16.msra.mxu0 %v5126_v6  ;;  %v5133_v6 = vld [vmem:[%s6833_s4 + $0x40] sm:$0xff]   ;;  %v846_v23 = vadd.f32 %v5946_v29, %v6006_v24 }
 0x216   :  { %1915 = vmatmul.mubr.f32.gmra.mrb[44].mxu1 %v6138_v60  ;;  %2173 = vmatmul.mubr.f32.gmra.mrb[76].mxu0 %v6138_v60 }
 0x217   :  { %1920 = vmatprep.mubr.f32.mxu1 %v5222_v59  ;;  %2178 = vmatprep.mubr.f32.mxu0 %v5222_v59  ;;  %v6183_v17 = vmax.f32 %v846_v23, 0.0  ;;  %v5163_v23 = vld [vmem:[%s6833_s4 + $0x38] sm:$0xff]  }
 0x218   :  { %4306 = vmatpush3.bf16.msra.mxu1 %v5128_v4  ;;  %4633 = vmatprep.subr.bf16.mxu0 %v5129_v38  ;;  %v851_v4 = vadd.f32 %v5958_v44, %v6006_v24 }
 0x219   :  { %4307 = vmatprep.subr.bf16.mxu1 %v5130_v9  ;;  %4634 = vmatpush3.bf16.msra.mxu0 %v5129_v38  ;;  %v856_v38 = vadd.f32 %v5970_v11, %v6006_v24  ;;  %v861_v9 = vadd.f32 %v5982_v32, %v6006_v24 }
 0x21a   :  { %1921 = vmatmul.mubr.f32.gmra.mrb[46].mxu1 %v6145_v49  ;;  %2179 = vmatmul.mubr.f32.gmra.mrb[78].mxu0 %v6145_v49  ;;  %v6191_v29 = vmax.f32 %v851_v4, 0.0 }
 0x21b   :  { %1926 = vmatprep.mubr.f32.mxu1 %v5222_v59  ;;  %2184 = vmatprep.mubr.f32.mxu0 %v5222_v59  ;;  %v6199_v44 = vmax.f32 %v856_v38, 0.0  ;;  %v6207_v11 = vmax.f32 %v861_v9, 0.0 }
 0x21c   :  { %4308 = vmatpush3.bf16.msra.mxu1 %v5131_v22  ;;  %4635 = vmatprep.subr.bf16.mxu0 %v5132_v48  ;;  %v866_v22 = vadd.f32 %v5995_v2, %v6006_v24 }
 0x21d   :  { %4636 = vmatpush3.bf16.msra.mxu0 %v5132_v48  ;;  %4445 = vmatprep.subr.bf16.mxu1 %v5134_v51  ;;  %v871_v48 = vadd.f32 %v6012_v53, %v6006_v24  ;;  %v5135_v24 = vld [vmem:[%s6833_s4] sm:$0xff]   ;;  %v5137_v51 = vld [vmem:[%s6833_s4 + $0x48] sm:$0xff]  }
 0x21e   :  { %1927 = vmatmul.mubr.f32.gmra.mrb[48].mxu1 %v6147_v39  ;;  %2185 = vmatmul.mubr.f32.gmra.mrb[80].mxu0 %v6147_v39  ;;  %v6215_v32 = vmax.f32 %v866_v22, 0.0  ;;  %v5136_v53 = vld [vmem:[%s6833_s4 + $0x80] sm:$0xff]  }
 0x21f   :  { %1932 = vmatprep.mubr.f32.mxu1 %v5222_v59  ;;  %2190 = vmatprep.mubr.f32.mxu0 %v5222_v59  ;;  %v6223_v2 = vmax.f32 %v871_v48, 0.0 }
 0x220   :  { %4381 = vmatprep.subr.bf16.mxu0 %v5133_v6  ;;  %v5138_v6 = vld [vmem:[%s6833_s4 + $0xc8] sm:$0xff]  }
 0x222   :  { %1933 = vmatmul.mubr.f32.gmra.mrb[50].mxu1 %v6175_v19  ;;  %2191 = vmatmul.mubr.f32.gmra.mrb[82].mxu0 %v6175_v19 }
 0x223   :  { %1938 = vmatprep.mubr.f32.mxu1 %v5222_v59  ;;  %2196 = vmatprep.mubr.f32.mxu0 %v5222_v59 }
 0x226   :  { %1939 = vmatmul.mubr.f32.gmra.mrb[52].mxu1 %v6183_v17  ;;  %2197 = vmatmul.mubr.f32.gmra.mrb[84].mxu0 %v6183_v17 }
 0x227   :  { %1944 = vmatprep.mubr.f32.mxu1 %v5222_v59  ;;  %2202 = vmatprep.mubr.f32.mxu0 %v5222_v59 }
 0x22a   :  { %1945 = vmatmul.mubr.f32.gmra.mrb[54].mxu1 %v6191_v29  ;;  %2203 = vmatmul.mubr.f32.gmra.mrb[86].mxu0 %v6191_v29 }
 0x22b   :  { %1950 = vmatprep.mubr.f32.mxu1 %v5222_v59  ;;  %2208 = vmatprep.mubr.f32.mxu0 %v5222_v59 }
 0x22e   :  { %1951 = vmatmul.mubr.f32.gmra.mrb[56].mxu1 %v6199_v44  ;;  %2209 = vmatmul.mubr.f32.gmra.mrb[88].mxu0 %v6199_v44 }
 0x22f   :  { %1956 = vmatprep.mubr.f32.mxu1 %v5222_v59  ;;  %2214 = vmatprep.mubr.f32.mxu0 %v5222_v59 }
 0x232   :  { %1957 = vmatmul.mubr.f32.gmra.mrb[58].mxu1 %v6207_v11  ;;  %2215 = vmatmul.mubr.f32.gmra.mrb[90].mxu0 %v6207_v11 }
 0x233   :  { %1962 = vmatprep.mubr.f32.mxu1 %v5222_v59  ;;  %2220 = vmatprep.mubr.f32.mxu0 %v5222_v59 }
 0x236   :  { %1963 = vmatmul.mubr.f32.gmra.mrb[60].mxu1 %v6215_v32  ;;  %2221 = vmatmul.mubr.f32.gmra.mrb[92].mxu0 %v6215_v32 }
 0x237   :  { %1968 = vmatprep.mubr.f32.mxu1 %v5222_v59  ;;  %2226 = vmatprep.mubr.f32.mxu0 %v5222_v59 }
 0x23a   :  { %1969 = vmatmul.mubr.f32.gmra.mrb[62].mxu1 %v6223_v2  ;;  %2227 = vmatmul.mubr.f32.gmra.mrb[94].mxu0 %v6223_v2 }
 0x23b   :  { %2265 = vmatprep.mubr.f32.mxu1 %v5739_v58  ;;  %4637 = vmatprep.mubr.f32.mxu0 %v6036_v63  ;;  %v5139_v58 = vld [vmem:[%s6833_s4 + $0x8] sm:$0xff]  }
 0x23c   :  { %v5140_v63 = vld [vmem:[%s6833_s4 + $0x88] sm:$0xff]  }
 0x23e   :  { %2266 = vmatmul.mubr.f32.vlgmr.msra.gmra.mrb[64].mxu1 %v5744_v62  ;;  %4638 = vmatmul.mubr.f32.vlgmr.msra.gmra.mrb[96].mxu0 %v6049_v28  ;;  %v5141_v62 = vld [vmem:[%s6833_s4 + $0x50] sm:$0xff]  }
 0x23f   :  { %2270 = vmatprep.mubr.f32.mxu1 %v5763_v12  ;;  %4640 = vmatprep.mubr.f32.mxu0 %v6068_v56  ;;  %v5142_v12 = vld [vmem:[%s6833_s4 + $0xd0] sm:$0xff]  }
 0x240   :  { %4382 = vmatpush3.bf16.msra.mxu0 %v5135_v24  ;;  %4446 = vmatpush3.bf16.msra.mxu1 %v5136_v53  ;;  %v5143_v28 = vld [vmem:[%s6833_s4 + $0x10] sm:$0xff]  }
 0x241   :  { %4383 = vmatprep.subr.bf16.mxu0 %v5137_v51  ;;  %4447 = vmatprep.subr.bf16.mxu1 %v5138_v6  ;;  %v5144_v56 = vld [vmem:[%s6833_s4 + $0x90] sm:$0xff]  }
 0x242   :  { %2271 = vmatmul.mubr.f32.gmra.mrb[66].mxu1 %v5768_v16  ;;  %4641 = vmatmul.mubr.f32.gmra.mrb[98].mxu0 %v6085_v14  ;;  %v5145_v16 = vld [vmem:[%s6833_s4 + $0x58] sm:$0xff]  }
 0x243   :  { %2275 = vmatprep.mubr.f32.mxu1 %v5787_v25  ;;  %4643 = vmatprep.mubr.f32.mxu0 %v6102_v37  ;;  %v5146_v25 = vld [vmem:[%s6833_s4 + $0xd8] sm:$0xff]  }
 0x244   :  { %4384 = vmatpush3.bf16.msra.mxu0 %v5139_v58  ;;  %4448 = vmatpush3.bf16.msra.mxu1 %v5140_v63  ;;  %v5147_v14 = vld [vmem:[%s6833_s4 + $0x18] sm:$0xff]  }
 0x245   :  { %4385 = vmatprep.subr.bf16.mxu0 %v5141_v62  ;;  %4449 = vmatprep.subr.bf16.mxu1 %v5142_v12  ;;  %v5148_v37 = vld [vmem:[%s6833_s4 + $0x98] sm:$0xff]  }
 0x246   :  { %2276 = vmatmul.mubr.f32.gmra.mrb[68].mxu1 %v5792_v27  ;;  %4644 = vmatmul.mubr.f32.gmra.mrb[100].mxu0 %v6121_v55  ;;  %v5149_v27 = vld [vmem:[%s6833_s4 + $0x60] sm:$0xff]  }
 0x247   :  { %2280 = vmatprep.mubr.f32.mxu1 %v5811_v36  ;;  %4646 = vmatprep.mubr.f32.mxu0 %v6138_v60  ;;  %v5150_v36 = vld [vmem:[%s6833_s4 + $0xe0] sm:$0xff]  }
 0x248   :  { %4386 = vmatpush3.bf16.msra.mxu0 %v5143_v28  ;;  %4450 = vmatpush3.bf16.msra.mxu1 %v5144_v56  ;;  %v5151_v55 = vld [vmem:[%s6833_s4 + $0x20] sm:$0xff]   ;;  %v5167_v28 = vld [vmem:[%s6833_s4 + $0x110] sm:$0xff]  }
 0x249   :  { %4387 = vmatprep.subr.bf16.mxu0 %v5145_v16  ;;  %4451 = vmatprep.subr.bf16.mxu1 %v5146_v25  ;;  %v5152_v60 = vld [vmem:[%s6833_s4 + $0xa0] sm:$0xff]  }
 0x24a   :  { %2281 = vmatmul.mubr.f32.gmra.mrb[70].mxu1 %v5816_v40  ;;  %4647 = vmatmul.mubr.f32.gmra.mrb[102].mxu0 %v6145_v49  ;;  %v5153_v40 = vld [vmem:[%s6833_s4 + $0x68] sm:$0xff]  }
 0x24b   :  { %2285 = vmatprep.mubr.f32.mxu1 %v5835_v52  ;;  %4649 = vmatprep.mubr.f32.mxu0 %v6147_v39  ;;  %v5154_v52 = vld [vmem:[%s6833_s4 + $0xe8] sm:$0xff]  }
 0x24c   :  { %4388 = vmatpush3.bf16.msra.mxu0 %v5147_v14  ;;  %4452 = vmatpush3.bf16.msra.mxu1 %v5148_v37  ;;  %v5155_v49 = vld [vmem:[%s6833_s4 + $0x28] sm:$0xff]  }
 0x24d   :  { %4389 = vmatprep.subr.bf16.mxu0 %v5149_v27  ;;  %4453 = vmatprep.subr.bf16.mxu1 %v5150_v36  ;;  %v5156_v39 = vld [vmem:[%s6833_s4 + $0xa8] sm:$0xff]  }
 0x24e   :  { %2286 = vmatmul.mubr.f32.gmra.mrb[72].mxu1 %v5840_v57  ;;  %4650 = vmatmul.mubr.f32.gmra.mrb[104].mxu0 %v6175_v19  ;;  %v5157_v57 = vld [vmem:[%s6833_s4 + $0x70] sm:$0xff]  }
 0x24f   :  { %2290 = vmatprep.mubr.f32.mxu1 %v5859_v10  ;;  %4652 = vmatprep.mubr.f32.mxu0 %v6183_v17  ;;  %v5158_v10 = vld [vmem:[%s6833_s4 + $0xf0] sm:$0xff]   ;;  %v5164_v17 = vld [vmem:[%s6833_s4 + $0xb8] sm:$0xff]  }
 0x250   :  { %4390 = vmatpush3.bf16.msra.mxu0 %v5151_v55  ;;  %4454 = vmatpush3.bf16.msra.mxu1 %v5152_v60  ;;  %v5160_v19 = vld [vmem:[%s6833_s4 + $0xb0] sm:$0xff]  }
 0x251   :  { %4391 = vmatprep.subr.bf16.mxu0 %v5153_v40  ;;  %4455 = vmatprep.subr.bf16.mxu1 %v5154_v52 }
 0x252   :  { %2291 = vmatmul.mubr.f32.gmra.mrb[74].mxu1 %v5864_v15  ;;  %4653 = vmatmul.mubr.f32.gmra.mrb[106].mxu0 %v6191_v29  ;;  %v5161_v15 = vld [vmem:[%s6833_s4 + $0x78] sm:$0xff]  }
 0x253   :  { %2295 = vmatprep.mubr.f32.mxu1 %v5883_v5  ;;  %4655 = vmatprep.mubr.f32.mxu0 %v6199_v44  ;;  %v5162_v5 = vld [vmem:[%s6833_s4 + $0xf8] sm:$0xff]  }
 0x254   :  { %4392 = vmatpush3.bf16.msra.mxu0 %v5155_v49  ;;  %4456 = vmatpush3.bf16.msra.mxu1 %v5156_v39  ;;  %v5168_v39 = vld [vmem:[%s6833_s4 + $0x118] sm:$0xff]  }
 0x255   :  { %4393 = vmatprep.subr.bf16.mxu0 %v5157_v57  ;;  %4457 = vmatprep.subr.bf16.mxu1 %v5158_v10 }
 0x256   :  { %2296 = vmatmul.mubr.f32.gmra.mrb[76].mxu1 %v5888_v30  ;;  %4656 = vmatmul.mubr.f32.gmra.mrb[108].mxu0 %v6207_v11  ;;  %v5165_v30 = vld [vmem:[%s6833_s4 + $0x100] sm:$0xff]   ;;  %v5166_v11 = vld [vmem:[%s6833_s4 + $0x108] sm:$0xff]  }
 0x257   :  { %2300 = vmatprep.mubr.f32.mxu1 %v5907_v42  ;;  %4658 = vmatprep.mubr.f32.mxu0 %v6215_v32  ;;  %v6371_v42 = vld [vmem:[%s6832_s8 + $0x5] sm:$0x1f] }
 0x258   :  { %4394 = vmatpush3.bf16.msra.mxu0 %v5159_v33  ;;  %4458 = vmatpush3.bf16.msra.mxu1 %v5160_v19 }
 0x259   :  { %4395 = vmatprep.subr.bf16.mxu0 %v5161_v15  ;;  %4459 = vmatprep.subr.bf16.mxu1 %v5162_v5 }
 0x25a   :  { %2301 = vmatmul.mubr.f32.gmra.mrb[78].mxu1 %v5912_v50  ;;  %4659 = vmatmul.mubr.f32.gmra.mrb[110].mxu0 %v6223_v2  ;;  %v1082_v50 = vsub.s32 3, %v5475_v0 }
 0x25b   :  { %2305 = vmatprep.mubr.f32.mxu1 %v5927_v61  ;;  %v6376_v61 = vrot.slane %v6371_v42, %v5478_v1 }
 0x25c   :  { %4396 = vmatpush3.bf16.msra.mxu0 %v5163_v23  ;;  %4460 = vmatpush3.bf16.msra.mxu1 %v5164_v17 }
 0x25d   :  { %4661 = vmatprep.subr.bf16.mxu0 %v5165_v30 }
 0x25e   :  { %2306 = vmatmul.mubr.f32.gmra.mrb[80].mxu1 %v5929_v7  ;;  %v6381_v7 = vrot.slane %v6371_v42, %v371_v41 }
 0x25f   :  { %2310 = vmatprep.mubr.f32.mxu1 %v5940_v18  ;;  %v6385_v18 = vrot.slane %v6371_v42, %v5484_v3 }
 0x262   :  { %2311 = vmatmul.mubr.f32.gmra.mrb[82].mxu1 %v5942_v21  ;;  %v6388_v21 = vrot.slane %v6371_v42, %v1082_v50 }
 0x263   :  { %2315 = vmatprep.mubr.f32.mxu1 %v5952_v31 }
 0x266   :  { %2316 = vmatmul.mubr.f32.gmra.mrb[84].mxu1 %v5954_v35 }
 0x267   :  { %2320 = vmatprep.mubr.f32.mxu1 %v5964_v45 }
 0x26a   :  { %2321 = vmatmul.mubr.f32.gmra.mrb[86].mxu1 %v5966_v54 }
 0x26b   :  { %2325 = vmatprep.mubr.f32.mxu1 %v5976_v13 }
 0x26e   :  { %2326 = vmatmul.mubr.f32.gmra.mrb[88].mxu1 %v5978_v20 }
 0x26f   :  { %2330 = vmatprep.mubr.f32.mxu1 %v5988_v34 }
 0x272   :  { %2331 = vmatmul.mubr.f32.gmra.mrb[90].mxu1 %v5991_v43 }
 0x273   :  { %2335 = vmatprep.mubr.f32.mxu1 %v6001_v8 }
 0x276   :  { %2336 = vmatmul.mubr.f32.gmra.mrb[92].mxu1 %v6008_v26 }
 0x277   :  { %2340 = vmatprep.mubr.f32.mxu1 %v6018_v46 }
 0x27a   :  { %2341 = vmatmul.mubr.f32.gmra.mrb[94].mxu1 %v6022_v47 }
 0x2d1   :  { %v1880_v31 = vpop.f32.mrb[32].mxu1  ;;  %v2138_v35 = vpop.f32.mrb[64].mxu0 }
 0x2d2   :  { %v4757_v45 = vadd.f32 %v1880_v31, %v6376_v61  ;;  %v4789_v54 = vadd.f32 %v2138_v35, %v6381_v7  ;;  %v1882_v13 = vpop.f32.mrb[33].mxu1  ;;  %v2140_v20 = vpop.f32.mrb[65].mxu0 }
 0x2d3   :  { %v4758_v34 = vadd.f32 %v1882_v13, %v6385_v18  ;;  %v4790_v41 = vadd.f32 %v2140_v20, %v6388_v21 }
 0x2d4   :  { %v2459_v47 = vmax.f32 %v4757_v45, 0.0  ;;  %v2461_v4 = vmax.f32 %v4789_v54, 0.0  ;;  %v5169_v45 = vld [vmem:[%s6833_s4 + $0x120] sm:$0xff]  }
 0x2d5   :  { %v2460_v43 = vmax.f32 %v4758_v34, 0.0  ;;  %v2462_v8 = vmax.f32 %v4790_v41, 0.0  ;;  %v1886_v26 = vpop.f32.mrb[34].mxu1  ;;  %v2144_v46 = vpop.f32.mrb[66].mxu0 }
 0x2d6   :  { %v4759_v29 = vadd.f32 %v1886_v26, %v6376_v61  ;;  %v4791_v38 = vadd.f32 %v2144_v46, %v6381_v7  ;;  %v1888_v44 = vpop.f32.mrb[35].mxu1  ;;  %v2146_v9 = vpop.f32.mrb[67].mxu0 }
 0x2d7   :  { %v4760_v22 = vadd.f32 %v1888_v44, %v6385_v18  ;;  %v4792_v32 = vadd.f32 %v2146_v9, %v6388_v21  ;;  %2898 = vmatprep.mubr.f32.mxu0 %v2460_v43  ;;  %3011 = vmatprep.mubr.f32.mxu1 %v2462_v8 }
 0x2d8   :  { %2899 = vmatmul.mubr.f32.vlgmr.msra.gmra.mrb[112].mxu0 %v2459_v47  ;;  %3012 = vmatmul.mubr.f32.vlgmr.msra.gmra.mrb[96].mxu1 %v2461_v4  ;;  %v2464_v51 = vmax.f32 %v4759_v29, 0.0  ;;  %v2466_v6 = vmax.f32 %v4791_v38, 0.0  ;;  %v5170_v38 = vld [vmem:[%s6833_s4 + $0x128] sm:$0xff]  }
 0x2d9   :  { %v2465_v48 = vmax.f32 %v4760_v22, 0.0  ;;  %v2467_v2 = vmax.f32 %v4792_v32, 0.0  ;;  %v1892_v24 = vpop.f32.mrb[36].mxu1  ;;  %v2150_v53 = vpop.f32.mrb[68].mxu0  ;;  %4662 = vmatpush3.bf16.msra.mxu0 %v5165_v30 }
 0x2da   :  { %v4761_v58 = vadd.f32 %v1892_v24, %v6376_v61  ;;  %v4793_v63 = vadd.f32 %v2150_v53, %v6381_v7  ;;  %v1894_v62 = vpop.f32.mrb[37].mxu1  ;;  %v2152_v12 = vpop.f32.mrb[69].mxu0  ;;  %4663 = vmatprep.subr.bf16.mxu0 %v5166_v11 }
 0x2db   :  { %v4762_v56 = vadd.f32 %v1894_v62, %v6385_v18  ;;  %v4794_v16 = vadd.f32 %v2152_v12, %v6388_v21  ;;  %2903 = vmatprep.mubr.f32.mxu0 %v2465_v48  ;;  %3016 = vmatprep.mubr.f32.mxu1 %v2467_v2 }
 0x2dc   :  { %2904 = vmatmul.mubr.f32.gmra.mrb[114].mxu0 %v2464_v51  ;;  %3017 = vmatmul.mubr.f32.gmra.mrb[98].mxu1 %v2466_v6  ;;  %v2469_v36 = vmax.f32 %v4761_v58, 0.0  ;;  %v2471_v55 = vmax.f32 %v4793_v63, 0.0  ;;  %v5171_v63 = vld [vmem:[%s6833_s4 + $0x130] sm:$0xff]  }
 0x2dd   :  { %v2470_v25 = vmax.f32 %v4762_v56, 0.0  ;;  %v2472_v14 = vmax.f32 %v4794_v16, 0.0  ;;  %v1898_v37 = vpop.f32.mrb[38].mxu1  ;;  %v2156_v27 = vpop.f32.mrb[70].mxu0  ;;  %4664 = vmatpush3.bf16.msra.mxu0 %v5166_v11 }
 0x2de   :  { %v4763_v60 = vadd.f32 %v1898_v37, %v6376_v61  ;;  %v4795_v40 = vadd.f32 %v2156_v27, %v6381_v7  ;;  %v1900_v52 = vpop.f32.mrb[39].mxu1  ;;  %v2158_v49 = vpop.f32.mrb[71].mxu0  ;;  %4665 = vmatprep.subr.bf16.mxu0 %v5167_v28 }
 0x2df   :  { %v4764_v57 = vadd.f32 %v1900_v52, %v6385_v18  ;;  %v4796_v10 = vadd.f32 %v2158_v49, %v6388_v21  ;;  %2908 = vmatprep.mubr.f32.mxu0 %v2470_v25  ;;  %3021 = vmatprep.mubr.f32.mxu1 %v2472_v14 }
 0x2e0   :  { %2909 = vmatmul.mubr.f32.gmra.mrb[116].mxu0 %v2469_v36  ;;  %3022 = vmatmul.mubr.f32.gmra.mrb[100].mxu1 %v2471_v55  ;;  %v2474_v23 = vmax.f32 %v4763_v60, 0.0  ;;  %v2476_v17 = vmax.f32 %v4795_v40, 0.0  ;;  %v5172_v40 = vld [vmem:[%s6833_s4 + $0x138] sm:$0xff]  }
 0x2e1   :  { %v2475_v33 = vmax.f32 %v4764_v57, 0.0  ;;  %v2477_v19 = vmax.f32 %v4796_v10, 0.0  ;;  %v1904_v15 = vpop.f32.mrb[40].mxu1  ;;  %v2162_v5 = vpop.f32.mrb[72].mxu0  ;;  %4666 = vmatpush3.bf16.msra.mxu0 %v5167_v28 }
 0x2e2   :  { %v4765_v30 = vadd.f32 %v1904_v15, %v6376_v61  ;;  %v4797_v50 = vadd.f32 %v2162_v5, %v6381_v7  ;;  %v1906_v31 = vpop.f32.mrb[41].mxu1  ;;  %v2164_v35 = vpop.f32.mrb[73].mxu0  ;;  %4667 = vmatprep.subr.bf16.mxu0 %v5168_v39 }
 0x2e3   :  { %v4766_v54 = vadd.f32 %v1906_v31, %v6385_v18  ;;  %v4798_v13 = vadd.f32 %v2164_v35, %v6388_v21  ;;  %2913 = vmatprep.mubr.f32.mxu0 %v2475_v33  ;;  %3026 = vmatprep.mubr.f32.mxu1 %v2477_v19 }
 0x2e4   :  { %2914 = vmatmul.mubr.f32.gmra.mrb[118].mxu0 %v2474_v23  ;;  %3027 = vmatmul.mubr.f32.gmra.mrb[102].mxu1 %v2476_v17  ;;  %v2479_v8 = vmax.f32 %v4765_v30, 0.0  ;;  %v2481_v26 = vmax.f32 %v4797_v50, 0.0 }
 0x2e5   :  { %v2480_v20 = vmax.f32 %v4766_v54, 0.0  ;;  %v2482_v34 = vmax.f32 %v4798_v13, 0.0  ;;  %v1910_v41 = vpop.f32.mrb[42].mxu1  ;;  %v2168_v43 = vpop.f32.mrb[74].mxu0  ;;  %4668 = vmatpush3.bf16.msra.mxu0 %v5168_v39 }
 0x2e6   :  { %v4767_v46 = vadd.f32 %v1910_v41, %v6376_v61  ;;  %v4799_v47 = vadd.f32 %v2168_v43, %v6381_v7  ;;  %v1912_v4 = vpop.f32.mrb[43].mxu1  ;;  %v2170_v29 = vpop.f32.mrb[75].mxu0  ;;  %4669 = vmatprep.subr.bf16.mxu0 %v5169_v45 }
 0x2e7   :  { %v4768_v44 = vadd.f32 %v1912_v4, %v6385_v18  ;;  %v4800_v9 = vadd.f32 %v2170_v29, %v6388_v21  ;;  %2918 = vmatprep.mubr.f32.mxu0 %v2480_v20  ;;  %3031 = vmatprep.mubr.f32.mxu1 %v2482_v34 }
 0x2e8   :  { %2919 = vmatmul.mubr.f32.gmra.mrb[120].mxu0 %v2479_v8  ;;  %3032 = vmatmul.mubr.f32.gmra.mrb[104].mxu1 %v2481_v26  ;;  %v2484_v2 = vmax.f32 %v4767_v46, 0.0  ;;  %v2486_v24 = vmax.f32 %v4799_v47, 0.0 }
 0x2e9   :  { %v2485_v11 = vmax.f32 %v4768_v44, 0.0  ;;  %v2487_v22 = vmax.f32 %v4800_v9, 0.0  ;;  %v1916_v32 = vpop.f32.mrb[44].mxu1  ;;  %v2174_v48 = vpop.f32.mrb[76].mxu0  ;;  %4670 = vmatpush3.bf16.msra.mxu0 %v5169_v45 }
 0x2ea   :  { %v4769_v53 = vadd.f32 %v1916_v32, %v6376_v61  ;;  %v4801_v51 = vadd.f32 %v2174_v48, %v6381_v7  ;;  %v1918_v6 = vpop.f32.mrb[45].mxu1  ;;  %v2176_v58 = vpop.f32.mrb[77].mxu0  ;;  %4671 = vmatprep.subr.bf16.mxu0 %v5170_v38 }
 0x2eb   :  { %v4770_v62 = vadd.f32 %v1918_v6, %v6385_v18  ;;  %v4802_v12 = vadd.f32 %v2176_v58, %v6388_v21  ;;  %2923 = vmatprep.mubr.f32.mxu0 %v2485_v11  ;;  %3036 = vmatprep.mubr.f32.mxu1 %v2487_v22 }
 0x2ec   :  { %2924 = vmatmul.mubr.f32.gmra.mrb[122].mxu0 %v2484_v2  ;;  %3037 = vmatmul.mubr.f32.gmra.mrb[106].mxu1 %v2486_v24  ;;  %v2489_v14 = vmax.f32 %v4769_v53, 0.0  ;;  %v2491_v37 = vmax.f32 %v4801_v51, 0.0 }
 0x2ed   :  { %v2490_v28 = vmax.f32 %v4770_v62, 0.0  ;;  %v2492_v56 = vmax.f32 %v4802_v12, 0.0  ;;  %v1922_v16 = vpop.f32.mrb[46].mxu1  ;;  %v2180_v25 = vpop.f32.mrb[78].mxu0  ;;  %4672 = vmatpush3.bf16.msra.mxu0 %v5170_v38 }
 0x2ee   :  { %v4771_v27 = vadd.f32 %v1922_v16, %v6376_v61  ;;  %v4803_v36 = vadd.f32 %v2180_v25, %v6381_v7  ;;  %v1924_v55 = vpop.f32.mrb[47].mxu1  ;;  %v2182_v60 = vpop.f32.mrb[79].mxu0  ;;  %4673 = vmatprep.subr.bf16.mxu0 %v5171_v63 }
 0x2ef   :  { %v4772_v52 = vadd.f32 %v1924_v55, %v6385_v18  ;;  %v4804_v49 = vadd.f32 %v2182_v60, %v6388_v21  ;;  %2928 = vmatprep.mubr.f32.mxu0 %v2490_v28  ;;  %3041 = vmatprep.mubr.f32.mxu1 %v2492_v56 }
 0x2f0   :  { %2929 = vmatmul.mubr.f32.gmra.mrb[124].mxu0 %v2489_v14  ;;  %3042 = vmatmul.mubr.f32.gmra.mrb[108].mxu1 %v2491_v37  ;;  %v2494_v19 = vmax.f32 %v4771_v27, 0.0  ;;  %v2496_v15 = vmax.f32 %v4803_v36, 0.0 }
 0x2f1   :  { %v2495_v39 = vmax.f32 %v4772_v52, 0.0  ;;  %v2497_v57 = vmax.f32 %v4804_v49, 0.0  ;;  %v1928_v10 = vpop.f32.mrb[48].mxu1  ;;  %v2186_v33 = vpop.f32.mrb[80].mxu0  ;;  %4674 = vmatpush3.bf16.msra.mxu0 %v5171_v63 }
 0x2f2   :  { %v4773_v5 = vadd.f32 %v1928_v10, %v6376_v61  ;;  %v4805_v23 = vadd.f32 %v2186_v33, %v6381_v7  ;;  %v1930_v17 = vpop.f32.mrb[49].mxu1  ;;  %v2188_v30 = vpop.f32.mrb[81].mxu0  ;;  %4675 = vmatprep.subr.bf16.mxu0 %v5172_v40 }
 0x2f3   :  { %v4774_v50 = vadd.f32 %v1930_v17, %v6385_v18  ;;  %v4806_v31 = vadd.f32 %v2188_v30, %v6388_v21  ;;  %2933 = vmatprep.mubr.f32.mxu0 %v2495_v39  ;;  %3046 = vmatprep.mubr.f32.mxu1 %v2497_v57 }
 0x2f4   :  { %2934 = vmatmul.mubr.f32.gmra.mrb[126].mxu0 %v2494_v19  ;;  %3047 = vmatmul.mubr.f32.gmra.mrb[110].mxu1 %v2496_v15  ;;  %v2499_v20 = vmax.f32 %v4773_v5, 0.0  ;;  %v2501_v34 = vmax.f32 %v4805_v23, 0.0 }
 0x2f5   :  { %v2500_v35 = vmax.f32 %v4774_v50, 0.0  ;;  %v2502_v45 = vmax.f32 %v4806_v31, 0.0  ;;  %v1934_v54 = vpop.f32.mrb[50].mxu1  ;;  %v2192_v13 = vpop.f32.mrb[82].mxu0  ;;  %4676 = vmatpush3.bf16.msra.mxu0 %v5172_v40 }
 0x2f6   :  { %v4775_v41 = vadd.f32 %v1934_v54, %v6376_v61  ;;  %v4807_v43 = vadd.f32 %v2192_v13, %v6381_v7  ;;  %v1936_v8 = vpop.f32.mrb[51].mxu1  ;;  %v2194_v26 = vpop.f32.mrb[83].mxu0 }
 0x2f7   :  { %v4776_v46 = vadd.f32 %v1936_v8, %v6385_v18  ;;  %v4808_v47 = vadd.f32 %v2194_v26, %v6388_v21  ;;  %2938 = vmatprep.mubr.f32.mxu0 %v2500_v35  ;;  %3051 = vmatprep.mubr.f32.mxu1 %v2502_v45 }
 0x2f8   :  { %2939 = vmatmul.mubr.f32.gmra.mrb[128].mxu0 %v2499_v20  ;;  %3052 = vmatmul.mubr.f32.gmra.mrb[112].mxu1 %v2501_v34  ;;  %v2504_v9 = vmax.f32 %v4775_v41, 0.0  ;;  %v2506_v11 = vmax.f32 %v4807_v43, 0.0 }
 0x2f9   :  { %v2505_v4 = vmax.f32 %v4776_v46, 0.0  ;;  %v2507_v29 = vmax.f32 %v4808_v47, 0.0  ;;  %v1940_v38 = vpop.f32.mrb[52].mxu1  ;;  %v2198_v44 = vpop.f32.mrb[84].mxu0 }
 0x2fa   :  { %v4777_v22 = vadd.f32 %v1940_v38, %v6376_v61  ;;  %v4809_v32 = vadd.f32 %v2198_v44, %v6381_v7  ;;  %v1942_v48 = vpop.f32.mrb[53].mxu1  ;;  %v2200_v2 = vpop.f32.mrb[85].mxu0 }
 0x2fb   :  { %v4778_v24 = vadd.f32 %v1942_v48, %v6385_v18  ;;  %v4810_v53 = vadd.f32 %v2200_v2, %v6388_v21  ;;  %2943 = vmatprep.mubr.f32.mxu0 %v2505_v4  ;;  %3056 = vmatprep.mubr.f32.mxu1 %v2507_v29  ;;  %v1086_v2 = vsub.s32 4, %v5475_v0 }
 0x2fc   :  { %2944 = vmatmul.mubr.f32.gmra.mrb[130].mxu0 %v2504_v9  ;;  %3057 = vmatmul.mubr.f32.gmra.mrb[114].mxu1 %v2506_v11  ;;  %v2509_v62 = vmax.f32 %v4777_v22, 0.0  ;;  %v2511_v12 = vmax.f32 %v4809_v32, 0.0 }
 0x2fd   :  { %v2510_v51 = vmax.f32 %v4778_v24, 0.0  ;;  %v2512_v6 = vmax.f32 %v4810_v53, 0.0  ;;  %v1946_v58 = vpop.f32.mrb[54].mxu1  ;;  %v2204_v63 = vpop.f32.mrb[86].mxu0 }
 0x2fe   :  { %v4779_v28 = vadd.f32 %v1946_v58, %v6376_v61  ;;  %v4811_v56 = vadd.f32 %v2204_v63, %v6381_v7  ;;  %v1948_v16 = vpop.f32.mrb[55].mxu1  ;;  %v2206_v25 = vpop.f32.mrb[87].mxu0 }
 0x2ff   :  { %v4780_v14 = vadd.f32 %v1948_v16, %v6385_v18  ;;  %v4812_v37 = vadd.f32 %v2206_v25, %v6388_v21  ;;  %2948 = vmatprep.mubr.f32.mxu0 %v2510_v51  ;;  %3061 = vmatprep.mubr.f32.mxu1 %v2512_v6  ;;  %v6477_v25 = vrot.slane %v6371_v42, %v1086_v2 }
 0x300   :  { %2949 = vmatmul.mubr.f32.gmra.mrb[132].mxu0 %v2509_v62  ;;  %3062 = vmatmul.mubr.f32.gmra.mrb[116].mxu1 %v2511_v12  ;;  %v2514_v40 = vmax.f32 %v4779_v28, 0.0  ;;  %v2516_v52 = vmax.f32 %v4811_v56, 0.0 }
 0x301   :  { %v2515_v27 = vmax.f32 %v4780_v14, 0.0  ;;  %v2517_v36 = vmax.f32 %v4812_v37, 0.0  ;;  %v1952_v55 = vpop.f32.mrb[56].mxu1  ;;  %v2210_v60 = vpop.f32.mrb[88].mxu0 }
 0x302   :  { %v4781_v49 = vadd.f32 %v1952_v55, %v6376_v61  ;;  %v4813_v39 = vadd.f32 %v2210_v60, %v6381_v7  ;;  %v1954_v57 = vpop.f32.mrb[57].mxu1  ;;  %v2212_v10 = vpop.f32.mrb[89].mxu0 }
 0x303   :  { %v4782_v33 = vadd.f32 %v1954_v57, %v6385_v18  ;;  %v4814_v19 = vadd.f32 %v2212_v10, %v6388_v21  ;;  %2953 = vmatprep.mubr.f32.mxu0 %v2515_v27  ;;  %3066 = vmatprep.mubr.f32.mxu1 %v2517_v36 }
 0x304   :  { %2954 = vmatmul.mubr.f32.gmra.mrb[134].mxu0 %v2514_v40  ;;  %3067 = vmatmul.mubr.f32.gmra.mrb[118].mxu1 %v2516_v52  ;;  %v2519_v30 = vmax.f32 %v4781_v49, 0.0  ;;  %v2521_v50 = vmax.f32 %v4813_v39, 0.0 }
 0x305   :  { %v2520_v15 = vmax.f32 %v4782_v33, 0.0  ;;  %v2522_v5 = vmax.f32 %v4814_v19, 0.0  ;;  %v1958_v23 = vpop.f32.mrb[58].mxu1  ;;  %v2216_v17 = vpop.f32.mrb[90].mxu0 }
 0x306   :  { %v4783_v31 = vadd.f32 %v1958_v23, %v6376_v61  ;;  %v4815_v35 = vadd.f32 %v2216_v17, %v6381_v7  ;;  %v1960_v45 = vpop.f32.mrb[59].mxu1  ;;  %v2218_v54 = vpop.f32.mrb[91].mxu0 }
 0x307   :  { %v4784_v13 = vadd.f32 %v1960_v45, %v6385_v18  ;;  %v4816_v20 = vadd.f32 %v2218_v54, %v6388_v21  ;;  %2958 = vmatprep.mubr.f32.mxu0 %v2520_v15  ;;  %3071 = vmatprep.mubr.f32.mxu1 %v2522_v5 }
 0x308   :  { %2959 = vmatmul.mubr.f32.gmra.mrb[136].mxu0 %v2519_v30  ;;  %3072 = vmatmul.mubr.f32.gmra.mrb[120].mxu1 %v2521_v50  ;;  %v2524_v26 = vmax.f32 %v4783_v31, 0.0  ;;  %v2526_v46 = vmax.f32 %v4815_v35, 0.0 }
 0x309   :  { %v2525_v34 = vmax.f32 %v4784_v13, 0.0  ;;  %v2527_v41 = vmax.f32 %v4816_v20, 0.0  ;;  %v1964_v43 = vpop.f32.mrb[60].mxu1  ;;  %v2222_v8 = vpop.f32.mrb[92].mxu0 }
 0x30a   :  { %v4785_v47 = vadd.f32 %v1964_v43, %v6376_v61  ;;  %v4817_v4 = vadd.f32 %v2222_v8, %v6381_v7  ;;  %v1966_v29 = vpop.f32.mrb[61].mxu1  ;;  %v2224_v38 = vpop.f32.mrb[93].mxu0 }
 0x30b   :  { %v4786_v44 = vadd.f32 %v1966_v29, %v6385_v18  ;;  %v4818_v9 = vadd.f32 %v2224_v38, %v6388_v21  ;;  %2963 = vmatprep.mubr.f32.mxu0 %v2525_v34  ;;  %3076 = vmatprep.mubr.f32.mxu1 %v2527_v41 }
 0x30c   :  { %2964 = vmatmul.mubr.f32.gmra.mrb[138].mxu0 %v2524_v26  ;;  %3077 = vmatmul.mubr.f32.gmra.mrb[122].mxu1 %v2526_v46  ;;  %v2529_v24 = vmax.f32 %v4785_v47, 0.0  ;;  %v2531_v53 = vmax.f32 %v4817_v4, 0.0 }
 0x30d   :  { %v2530_v11 = vmax.f32 %v4786_v44, 0.0  ;;  %v2532_v22 = vmax.f32 %v4818_v9, 0.0  ;;  %v1970_v32 = vpop.f32.mrb[62].mxu1  ;;  %v2228_v48 = vpop.f32.mrb[94].mxu0 }
 0x30e   :  { %v4787_v51 = vadd.f32 %v1970_v32, %v6376_v61  ;;  %v4819_v6 = vadd.f32 %v2228_v48, %v6381_v7  ;;  %v1972_v58 = vpop.f32.mrb[63].mxu1  ;;  %v2230_v63 = vpop.f32.mrb[95].mxu0 }
 0x30f   :  { %v4788_v62 = vadd.f32 %v1972_v58, %v6385_v18  ;;  %v4820_v12 = vadd.f32 %v2230_v63, %v6388_v21  ;;  %2968 = vmatprep.mubr.f32.mxu0 %v2530_v11  ;;  %3081 = vmatprep.mubr.f32.mxu1 %v2532_v22 }
 0x310   :  { %2969 = vmatmul.mubr.f32.gmra.mrb[140].mxu0 %v2529_v24  ;;  %3082 = vmatmul.mubr.f32.gmra.mrb[124].mxu1 %v2531_v53  ;;  %v2534_v61 = vmax.f32 %v4787_v51, 0.0  ;;  %v2536_v14 = vmax.f32 %v4819_v6, 0.0 }
 0x311   :  { %v2535_v28 = vmax.f32 %v4788_v62, 0.0  ;;  %v2537_v56 = vmax.f32 %v4820_v12, 0.0  ;;  %v4309_v16 = vpop.f32.mrb[64].mxu1  ;;  %v4639_v0 = vpop.f32.mrb[96].mxu0 }
 0x312   :  { %v4310_v7 = vpop.f32.mrb[65].mxu1  ;;  %v2380_v37 = vpop.f32.mrb[97].mxu0 }
 0x313   :  { %v4311_v27 = vadd.f32 %v4310_v7, %v4309_v16  ;;  %2973 = vmatprep.mubr.f32.mxu0 %v2535_v28  ;;  %3086 = vmatprep.mubr.f32.mxu1 %v2537_v56 }
 0x314   :  { %2974 = vmatmul.mubr.f32.gmra.mrb[142].mxu0 %v2534_v61  ;;  %3087 = vmatmul.mubr.f32.gmra.mrb[126].mxu1 %v2536_v14 }
 0x315   :  { %v2268_v18 = vadd.f32 %v4311_v27, %v6477_v25  ;;  %v4312_v21 = vpop.f32.mrb[66].mxu1  ;;  %v4642_v36 = vpop.f32.mrb[98].mxu0  ;;  %3361 = vmatprep.mubr.f32.mxu1 %v5222_v59 }
 0x316   :  { %v4313_v55 = vpop.f32.mrb[67].mxu1  ;;  %v2390_v60 = vpop.f32.mrb[99].mxu0 }
 0x317   :  { %v2381_v40 = vadd.f32 %v2380_v37, %v2268_v18  ;;  %v4314_v42 = vadd.f32 %v4313_v55, %v4312_v21 }
 0x319   :  { %v2463_v52 = vmax.f32 %v2381_v40, 0.0  ;;  %v2273_v49 = vadd.f32 %v4314_v42, %v6477_v25  ;;  %v4315_v39 = vpop.f32.mrb[68].mxu1  ;;  %v4645_v57 = vpop.f32.mrb[100].mxu0 }
 0x31a   :  { %v4316_v10 = vpop.f32.mrb[69].mxu1  ;;  %v2400_v33 = vpop.f32.mrb[101].mxu0 }
 0x31b   :  { %v2386_v19 = vadd.f32 %v4639_v0, %v2273_v49  ;;  %v4317_v15 = vadd.f32 %v4316_v10, %v4315_v39  ;;  %4677 = vmatprep.mubr.f32.mxu0 %v2463_v52  ;;  %v5173_v52 = vld [vmem:[%s6834_s5] ss:$8 sps:$4 sm:$0xff]   ;;  %v5175_v10 = vld [vmem:[%s6834_s5 + $0x4] ss:$8 sps:$4 sm:$0xff]  }
 0x31c   :  { %3329 = vmatprep.subr.bf16.mxu1 %v5175_v10 }
 0x31d   :  { %v2468_v5 = vmax.f32 %v2386_v19, 0.0  ;;  %v2278_v23 = vadd.f32 %v4317_v15, %v6477_v25  ;;  %v4318_v17 = vpop.f32.mrb[70].mxu1  ;;  %v4648_v30 = vpop.f32.mrb[102].mxu0  ;;  %3330 = vmatpush1.bf16.msra.mxu1 %v5173_v52 }
 0x31e   :  { %v4319_v50 = vpop.f32.mrb[71].mxu1  ;;  %v2410_v31 = vpop.f32.mrb[103].mxu0 }
 0x31f   :  { %v4320_v35 = vadd.f32 %v4319_v50, %v4318_v17  ;;  %4678 = vmatmul.mubr.f32.vlgmr.msra.gmra.mrb[144].mxu0 %v2468_v5  ;;  %v2391_v45 = vadd.f32 %v2390_v60, %v2278_v23 }
 0x321   :  { %v2283_v54 = vadd.f32 %v4320_v35, %v6477_v25  ;;  %v4321_v13 = vpop.f32.mrb[72].mxu1  ;;  %v4651_v20 = vpop.f32.mrb[104].mxu0  ;;  %v2473_v34 = vmax.f32 %v2391_v45, 0.0  ;;  %v5176_v35 = vld [vmem:[%s6834_s5 + $0x10] ss:$8 sps:$4 sm:$0xff]  }
 0x322   :  { %v4322_v41 = vpop.f32.mrb[73].mxu1  ;;  %v2420_v43 = vpop.f32.mrb[105].mxu0  ;;  %v5178_v45 = vld [vmem:[%s6834_s5 + $0x14] ss:$8 sps:$4 sm:$0xff]  }
 0x323   :  { %v4323_v8 = vadd.f32 %v4322_v41, %v4321_v13  ;;  %4680 = vmatprep.mubr.f32.mxu0 %v2473_v34  ;;  %v2396_v26 = vadd.f32 %v4642_v36, %v2283_v54  ;;  %3331 = vmatprep.subr.bf16.mxu1 %v5178_v45 }
 0x324   :  { %3332 = vmatpush1.bf16.msra.mxu1 %v5176_v35 }
 0x325   :  { %v2288_v46 = vadd.f32 %v4323_v8, %v6477_v25  ;;  %v4324_v47 = vpop.f32.mrb[74].mxu1  ;;  %v6485_v4 = vpop.f32.mrb[106].mxu0  ;;  %v2478_v29 = vmax.f32 %v2396_v26, 0.0 }
 0x326   :  { %v4325_v38 = vpop.f32.mrb[75].mxu1  ;;  %v2430_v44 = vpop.f32.mrb[107].mxu0 }
 0x327   :  { %v4326_v9 = vadd.f32 %v4325_v38, %v4324_v47  ;;  %4681 = vmatmul.mubr.f32.gmra.mrb[146].mxu0 %v2478_v29  ;;  %v2401_v11 = vadd.f32 %v2400_v33, %v2288_v46 }
 0x329   :  { %v2293_v22 = vadd.f32 %v4326_v9, %v6477_v25  ;;  %v4327_v32 = vpop.f32.mrb[76].mxu1  ;;  %v6488_v48 = vpop.f32.mrb[108].mxu0  ;;  %v2483_v2 = vmax.f32 %v2401_v11, 0.0  ;;  %v5181_v9 = vld [vmem:[%s6834_s5 + $0x24] ss:$8 sps:$4 sm:$0xff]  }
 0x32a   :  { %v4328_v24 = vpop.f32.mrb[77].mxu1  ;;  %v6490_v53 = vpop.f32.mrb[109].mxu0  ;;  %3333 = vmatprep.subr.bf16.mxu1 %v5181_v9 }
 0x32b   :  { %v4329_v51 = vadd.f32 %v4328_v24, %v4327_v32  ;;  %4683 = vmatprep.mubr.f32.mxu0 %v2483_v2  ;;  %v2406_v6 = vadd.f32 %v4645_v57, %v2293_v22 }
 0x32d   :  { %v2298_v58 = vadd.f32 %v4329_v51, %v6477_v25  ;;  %v4330_v63 = vpop.f32.mrb[78].mxu1  ;;  %v6493_v62 = vpop.f32.mrb[110].mxu0  ;;  %v2488_v12 = vmax.f32 %v2406_v6, 0.0 }
 0x32e   :  { %v4331_v28 = vpop.f32.mrb[79].mxu1  ;;  %v6495_v56 = vpop.f32.mrb[111].mxu0 }
 0x32f   :  { %v4332_v16 = vadd.f32 %v4331_v28, %v4330_v63  ;;  %4684 = vmatmul.mubr.f32.gmra.mrb[148].mxu0 %v2488_v12  ;;  %v2411_v0 = vadd.f32 %v2410_v31, %v2298_v58  ;;  %v5182_v28 = vld [vmem:[%s6834_s5 + $0x30] ss:$8 sps:$4 sm:$0xff]  }
 0x331   :  { %v2303_v61 = vadd.f32 %v4332_v16, %v6477_v25  ;;  %v4333_v14 = vpop.f32.mrb[80].mxu1  ;;  %v2493_v7 = vmax.f32 %v2411_v0, 0.0  ;;  %v5184_v16 = vld [vmem:[%s6834_s5 + $0x34] ss:$8 sps:$4 sm:$0xff]  }
 0x332   :  { %v4334_v37 = vpop.f32.mrb[81].mxu1 }
 0x333   :  { %v4335_v27 = vadd.f32 %v4334_v37, %v4333_v14  ;;  %4686 = vmatprep.mubr.f32.mxu0 %v2493_v7  ;;  %v2416_v18 = vadd.f32 %v4648_v30, %v2303_v61  ;;  %v5187_v7 = vld [vmem:[%s6834_s5 + $0x44] ss:$8 sps:$4 sm:$0xff]   ;;  %v5191_v37 = vld [vmem:[%s6834_s5 + $0x60] ss:$8 sps:$4 sm:$0xff]  }
 0x335   :  { %v2308_v21 = vadd.f32 %v4335_v27, %v6477_v25  ;;  %v4336_v36 = vpop.f32.mrb[82].mxu1  ;;  %v2498_v55 = vmax.f32 %v2416_v18, 0.0  ;;  %v5193_v27 = vld [vmem:[%s6834_s5 + $0x64] ss:$8 sps:$4 sm:$0xff]   ;;  %v5194_v18 = vld [vmem:[%s6834_s5 + $0x70] ss:$8 sps:$4 sm:$0xff]  }
 0x336   :  { %v4337_v60 = vpop.f32.mrb[83].mxu1 }
 0x337   :  { %v4338_v40 = vadd.f32 %v4337_v60, %v4336_v36  ;;  %4687 = vmatmul.mubr.f32.gmra.mrb[150].mxu0 %v2498_v55  ;;  %v2421_v42 = vadd.f32 %v2420_v43, %v2308_v21  ;;  %v5196_v21 = vld [vmem:[%s6834_s5 + $0x74] ss:$8 sps:$4 sm:$0xff]   ;;  %v6562_v60 = vld [vmem:[%s6832_s8 + $0xa] ss:$0 sm:$0xff] }
 0x339   :  { %v2313_v49 = vadd.f32 %v4338_v40, %v6477_v25  ;;  %v4339_v39 = vpop.f32.mrb[84].mxu1  ;;  %v2503_v57 = vmax.f32 %v2421_v42, 0.0 }
 0x33a   :  { %v4340_v33 = vpop.f32.mrb[85].mxu1 }
 0x33b   :  { %v4341_v19 = vadd.f32 %v4340_v33, %v4339_v39  ;;  %4689 = vmatprep.mubr.f32.mxu0 %v2503_v57  ;;  %v2426_v15 = vadd.f32 %v4651_v20, %v2313_v49 }
 0x33d   :  { %v2318_v5 = vadd.f32 %v4341_v19, %v6477_v25  ;;  %v4342_v23 = vpop.f32.mrb[86].mxu1  ;;  %v2508_v17 = vmax.f32 %v2426_v15, 0.0 }
 0x33e   :  { %v4343_v30 = vpop.f32.mrb[87].mxu1 }
 0x33f   :  { %v4344_v50 = vadd.f32 %v4343_v30, %v4342_v23  ;;  %4690 = vmatmul.mubr.f32.gmra.mrb[152].mxu0 %v2508_v17  ;;  %v2431_v31 = vadd.f32 %v2430_v44, %v2318_v5  ;;  %v5179_v44 = vld [vmem:[%s6834_s5 + $0x20] ss:$8 sps:$4 sm:$0xff]  }
 0x340   :  { %3334 = vmatpush1.bf16.msra.mxu1 %v5179_v44 }
 0x341   :  { %v2323_v54 = vadd.f32 %v4344_v50, %v6477_v25  ;;  %v4345_v13 = vpop.f32.mrb[88].mxu1  ;;  %v2513_v20 = vmax.f32 %v2431_v31, 0.0  ;;  %3335 = vmatprep.subr.bf16.mxu1 %v5184_v16 }
 0x342   :  { %v4346_v34 = vpop.f32.mrb[89].mxu1 }
 0x343   :  { %v4347_v41 = vadd.f32 %v4346_v34, %v4345_v13  ;;  %4692 = vmatprep.mubr.f32.mxu0 %v2513_v20  ;;  %v2436_v43 = vadd.f32 %v6485_v4, %v2323_v54  ;;  %v5197_v20 = vld [vmem:[%s6835_s6 + $0x40] sm:$0xff]  }
 0x344   :  { %3336 = vmatpush1.bf16.msra.mxu1 %v5182_v28  ;;  %v5198_v34 = vld [vmem:[%s6835_s6] sm:$0xff]   ;;  %4533 = vmatprep.subr.bf16.mxu0 %v5197_v20  ;;  %v5210_v20 = vld [vmem:[%s6835_s6 + $0x30] sm:$0xff]  }
 0x345   :  { %v2328_v8 = vadd.f32 %v4347_v41, %v6477_v25  ;;  %v4348_v26 = vpop.f32.mrb[90].mxu1  ;;  %v2518_v46 = vmax.f32 %v2436_v43, 0.0  ;;  %3337 = vmatprep.subr.bf16.mxu1 %v5187_v7  ;;  %4534 = vmatpush3.bf16.msra.mxu0 %v5198_v34 }
 0x346   :  { %v4349_v47 = vpop.f32.mrb[91].mxu1 }
 0x347   :  { %v4350_v29 = vadd.f32 %v4349_v47, %v4348_v26  ;;  %4693 = vmatmul.mubr.f32.gmra.mrb[154].mxu0 %v2518_v46  ;;  %v2441_v38 = vadd.f32 %v6490_v53, %v2328_v8  ;;  %v5199_v47 = vld [vmem:[%s6835_s6 + $0x48] sm:$0xff]  }
 0x348   :  { %4535 = vmatprep.subr.bf16.mxu0 %v5199_v47 }
 0x349   :  { %v2333_v11 = vadd.f32 %v4350_v29, %v6477_v25  ;;  %v4351_v4 = vpop.f32.mrb[92].mxu1  ;;  %v2523_v22 = vmax.f32 %v2441_v38, 0.0  ;;  %v5200_v29 = vld [vmem:[%s6835_s6 + $0x8] sm:$0xff]  }
 0x34a   :  { %v4352_v32 = vpop.f32.mrb[93].mxu1  ;;  %4536 = vmatpush3.bf16.msra.mxu0 %v5200_v29 }
 0x34b   :  { %v4353_v2 = vadd.f32 %v4352_v32, %v4351_v4  ;;  %4695 = vmatprep.mubr.f32.mxu0 %v2523_v22  ;;  %v2446_v24 = vadd.f32 %v6488_v48, %v2333_v11  ;;  %v5201_v11 = vld [vmem:[%s6835_s6 + $0x50] sm:$0xff]  }
 0x34c   :  { %4537 = vmatprep.subr.bf16.mxu0 %v5201_v11 }
 0x34d   :  { %v2338_v53 = vadd.f32 %v4353_v2, %v6477_v25  ;;  %v4354_v51 = vpop.f32.mrb[94].mxu1  ;;  %v2528_v6 = vmax.f32 %v2446_v24, 0.0  ;;  %v5202_v2 = vld [vmem:[%s6835_s6 + $0x10] sm:$0xff]  }
 0x34e   :  { %v4355_v58 = vpop.f32.mrb[95].mxu1  ;;  %4538 = vmatpush3.bf16.msra.mxu0 %v5202_v2 }
 0x34f   :  { %v4356_v63 = vadd.f32 %v4355_v58, %v4354_v51  ;;  %4696 = vmatmul.mubr.f32.gmra.mrb[156].mxu0 %v2528_v6  ;;  %v2451_v12 = vadd.f32 %v6495_v56, %v2338_v53  ;;  %v5185_v56 = vld [vmem:[%s6834_s5 + $0x40] ss:$8 sps:$4 sm:$0xff]  }
 0x350   :  { %3338 = vmatpush1.bf16.msra.mxu1 %v5185_v56 }
 0x351   :  { %v2343_v0 = vadd.f32 %v4356_v63, %v6477_v25  ;;  %v2533_v48 = vmax.f32 %v2451_v12, 0.0  ;;  %v5188_v25 = vld [vmem:[%s6834_s5 + $0x50] ss:$8 sps:$4 sm:$0xff]  }
 0x352   :  { %v5203_v63 = vld [vmem:[%s6835_s6 + $0x58] sm:$0xff]  }
 0x353   :  { %4698 = vmatprep.mubr.f32.mxu0 %v2533_v48  ;;  %v2456_v61 = vadd.f32 %v6493_v62, %v2343_v0  ;;  %v5190_v62 = vld [vmem:[%s6834_s5 + $0x54] ss:$8 sps:$4 sm:$0xff]   ;;  %4539 = vmatprep.subr.bf16.mxu0 %v5203_v63 }
 0x354   :  { %3339 = vmatprep.subr.bf16.mxu1 %v5190_v62  ;;  %v5204_v0 = vld [vmem:[%s6835_s6 + $0x18] sm:$0xff]  }
 0x355   :  { %v2538_v14 = vmax.f32 %v2456_v61, 0.0  ;;  %3340 = vmatpush1.bf16.msra.mxu1 %v5188_v25  ;;  %v5205_v25 = vld [vmem:[%s6835_s6 + $0x60] sm:$0xff]   ;;  %4540 = vmatpush3.bf16.msra.mxu0 %v5204_v0 }
 0x356   :  { %3341 = vmatprep.subr.bf16.mxu1 %v5193_v27  ;;  %4541 = vmatprep.subr.bf16.mxu0 %v5205_v25 }
 0x357   :  { %4699 = vmatmul.mubr.f32.gmra.mrb[158].mxu0 %v2538_v14 }
 0x359   :  { %3342 = vmatpush1.bf16.msra.mxu1 %v5191_v37 }
 0x35a   :  { %3343 = vmatprep.subr.bf16.mxu1 %v5196_v21 }
 0x35d   :  { %3344 = vmatpush1.bf16.msra.mxu1 %v5194_v18 }
 0x3ab   :  { %v4397_v36 = vpop.f32.mrb[112].mxu0  ;;  %v4461_v55 = vpop.f32.mrb[96].mxu1 }
 0x3ac   :  { %v4398_v40 = vpop.f32.mrb[113].mxu0  ;;  %v4462_v42 = vpop.f32.mrb[97].mxu1 }
 0x3ad   :  { %v4399_v52 = vadd.f32 %v4398_v40, %v4397_v36  ;;  %v4463_v49 = vadd.f32 %v4462_v42, %v4461_v55  ;;  %v5206_v36 = vld [vmem:[%s6835_s6 + $0x20] sm:$0xff]   ;;  %v5207_v55 = vld [vmem:[%s6835_s6 + $0x68] sm:$0xff]  }
 0x3ae   :  { %4542 = vmatpush3.bf16.msra.mxu0 %v5206_v36 }
 0x3af   :  { %v2901_v39 = vadd.f32 %v4399_v52, %v6562_v60  ;;  %v4400_v57 = vpop.f32.mrb[114].mxu0  ;;  %v4464_v10 = vpop.f32.mrb[98].mxu1  ;;  %4543 = vmatprep.subr.bf16.mxu0 %v5207_v55 }
 0x3b0   :  { %v4401_v33 = vpop.f32.mrb[115].mxu0  ;;  %v4465_v19 = vpop.f32.mrb[99].mxu1 }
 0x3b1   :  { %v4402_v15 = vadd.f32 %v4401_v33, %v4400_v57  ;;  %v4466_v5 = vadd.f32 %v4465_v19, %v4464_v10  ;;  %v6565_v23 = vadd.f32 %v4463_v49, %v2901_v39  ;;  %v5208_v19 = vld [vmem:[%s6835_s6 + $0x28] sm:$0xff]  }
 0x3b2   :  { %4544 = vmatpush3.bf16.msra.mxu0 %v5208_v19 }
 0x3b3   :  { %v2906_v17 = vadd.f32 %v4402_v15, %v6562_v60  ;;  %v4403_v30 = vpop.f32.mrb[116].mxu0  ;;  %v4467_v50 = vpop.f32.mrb[100].mxu1 }
 0x3b4   :  { %v4404_v31 = vpop.f32.mrb[117].mxu0  ;;  %v4468_v35 = vpop.f32.mrb[101].mxu1 }
 0x3b5   :  { %v4405_v45 = vadd.f32 %v4404_v31, %v4403_v30  ;;  %v4469_v54 = vadd.f32 %v4468_v35, %v4467_v50  ;;  %v6568_v13 = vadd.f32 %v4466_v5, %v2906_v17  ;;  %v5209_v30 = vld [vmem:[%s6835_s6 + $0x70] sm:$0xff]  }
 0x3b6   :  { %4545 = vmatprep.subr.bf16.mxu0 %v5209_v30 }
 0x3b7   :  { %v2911_v41 = vadd.f32 %v4405_v45, %v6562_v60  ;;  %v4406_v43 = vpop.f32.mrb[118].mxu0  ;;  %v4470_v8 = vpop.f32.mrb[102].mxu1  ;;  %4546 = vmatpush3.bf16.msra.mxu0 %v5210_v20 }
 0x3b8   :  { %v4407_v26 = vpop.f32.mrb[119].mxu0  ;;  %v4471_v46 = vpop.f32.mrb[103].mxu1 }
 0x3b9   :  { %v4408_v38 = vadd.f32 %v4407_v26, %v4406_v43  ;;  %v4472_v44 = vadd.f32 %v4471_v46, %v4470_v8  ;;  %v6583_v9 = vadd.f32 %v4469_v54, %v2911_v41 }
 0x3bb   :  { %v2916_v4 = vadd.f32 %v4408_v38, %v6562_v60  ;;  %v4409_v22 = vpop.f32.mrb[120].mxu0  ;;  %v4473_v32 = vpop.f32.mrb[104].mxu1 }
 0x3bc   :  { %v4410_v24 = vpop.f32.mrb[121].mxu0  ;;  %v4474_v53 = vpop.f32.mrb[105].mxu1 }
 0x3bd   :  { %v4411_v51 = vadd.f32 %v4410_v24, %v4409_v22  ;;  %v4475_v6 = vadd.f32 %v4474_v53, %v4473_v32  ;;  %v6592_v58 = vadd.f32 %v4472_v44, %v2916_v4 }
 0x3bf   :  { %v2921_v12 = vadd.f32 %v4411_v51, %v6562_v60  ;;  %v4412_v28 = vpop.f32.mrb[122].mxu0  ;;  %v4476_v16 = vpop.f32.mrb[106].mxu1 }
 0x3c0   :  { %v4413_v48 = vpop.f32.mrb[123].mxu0  ;;  %v4477_v61 = vpop.f32.mrb[107].mxu1 }
 0x3c1   :  { %v4414_v14 = vadd.f32 %v4413_v48, %v4412_v28  ;;  %v4478_v56 = vadd.f32 %v4477_v61, %v4476_v16  ;;  %v6601_v7 = vadd.f32 %v4475_v6, %v2921_v12 }
 0x3c3   :  { %v2926_v62 = vadd.f32 %v4414_v14, %v6562_v60  ;;  %v4415_v37 = vpop.f32.mrb[124].mxu0  ;;  %v4479_v27 = vpop.f32.mrb[108].mxu1 }
 0x3c4   :  { %v4416_v18 = vpop.f32.mrb[125].mxu0  ;;  %v4480_v21 = vpop.f32.mrb[109].mxu1 }
 0x3c5   :  { %v4417_v40 = vadd.f32 %v4416_v18, %v4415_v37  ;;  %v4481_v42 = vadd.f32 %v4480_v21, %v4479_v27  ;;  %v6613_v52 = vadd.f32 %v4478_v56, %v2926_v62 }
 0x3c7   :  { %v2931_v49 = vadd.f32 %v4417_v40, %v6562_v60  ;;  %v4418_v39 = vpop.f32.mrb[126].mxu0  ;;  %v4482_v57 = vpop.f32.mrb[110].mxu1 }
 0x3c8   :  { %v4419_v10 = vpop.f32.mrb[127].mxu0  ;;  %v4483_v33 = vpop.f32.mrb[111].mxu1 }
 0x3c9   :  { %v4420_v15 = vadd.f32 %v4419_v10, %v4418_v39  ;;  %v4484_v5 = vadd.f32 %v4483_v33, %v4482_v57  ;;  %v6619_v17 = vadd.f32 %v4481_v42, %v2931_v49 }
 0x3cb   :  { %v2936_v50 = vadd.f32 %v4420_v15, %v6562_v60  ;;  %v4421_v31 = vpop.f32.mrb[128].mxu0  ;;  %v4485_v35 = vpop.f32.mrb[112].mxu1 }
 0x3cc   :  { %v4422_v45 = vpop.f32.mrb[129].mxu0  ;;  %v4486_v54 = vpop.f32.mrb[113].mxu1 }
 0x3cd   :  { %v4423_v34 = vadd.f32 %v4422_v45, %v4421_v31  ;;  %v4487_v41 = vadd.f32 %v4486_v54, %v4485_v35  ;;  %v6628_v43 = vadd.f32 %v4484_v5, %v2936_v50 }
 0x3cf   :  { %v2941_v8 = vadd.f32 %v4423_v34, %v6562_v60  ;;  %v4424_v26 = vpop.f32.mrb[130].mxu0  ;;  %v4488_v46 = vpop.f32.mrb[114].mxu1 }
 0x3d0   :  { %v4425_v47 = vpop.f32.mrb[131].mxu0  ;;  %v4489_v29 = vpop.f32.mrb[115].mxu1 }
 0x3d1   :  { %v4426_v38 = vadd.f32 %v4425_v47, %v4424_v26  ;;  %v4490_v44 = vadd.f32 %v4489_v29, %v4488_v46  ;;  %v6631_v11 = vadd.f32 %v4487_v41, %v2941_v8 }
 0x3d3   :  { %v2946_v4 = vadd.f32 %v4426_v38, %v6562_v60  ;;  %v4427_v22 = vpop.f32.mrb[132].mxu0  ;;  %v4491_v32 = vpop.f32.mrb[116].mxu1 }
 0x3d4   :  { %v4428_v2 = vpop.f32.mrb[133].mxu0  ;;  %v4492_v24 = vpop.f32.mrb[117].mxu1 }
 0x3d5   :  { %v4429_v53 = vadd.f32 %v4428_v2, %v4427_v22  ;;  %v4493_v51 = vadd.f32 %v4492_v24, %v4491_v32  ;;  %v6634_v6 = vadd.f32 %v4490_v44, %v2946_v4 }
 0x3d7   :  { %v2951_v63 = vadd.f32 %v4429_v53, %v6562_v60  ;;  %v4430_v12 = vpop.f32.mrb[134].mxu0  ;;  %v4494_v28 = vpop.f32.mrb[118].mxu1 }
 0x3d8   :  { %v4431_v16 = vpop.f32.mrb[135].mxu0  ;;  %v4495_v0 = vpop.f32.mrb[119].mxu1 }
 0x3d9   :  { %v4432_v48 = vadd.f32 %v4431_v16, %v4430_v12  ;;  %v4496_v61 = vadd.f32 %v4495_v0, %v4494_v28  ;;  %v6637_v14 = vadd.f32 %v4493_v51, %v2951_v63 }
 0x3db   :  { %v2956_v56 = vadd.f32 %v4432_v48, %v6562_v60  ;;  %v4433_v25 = vpop.f32.mrb[136].mxu0  ;;  %v4497_v62 = vpop.f32.mrb[120].mxu1 }
 0x3dc   :  { %v4434_v37 = vpop.f32.mrb[137].mxu0  ;;  %v4498_v27 = vpop.f32.mrb[121].mxu1 }
 0x3dd   :  { %v4435_v18 = vadd.f32 %v4434_v37, %v4433_v25  ;;  %v4499_v21 = vadd.f32 %v4498_v27, %v4497_v62  ;;  %v6640_v36 = vadd.f32 %v4496_v61, %v2956_v56 }
 0x3df   :  { %v2961_v55 = vadd.f32 %v4435_v18, %v6562_v60  ;;  %v4436_v40 = vpop.f32.mrb[138].mxu0  ;;  %v4500_v42 = vpop.f32.mrb[122].mxu1 }
 0x3e0   :  { %v4437_v49 = vpop.f32.mrb[139].mxu0  ;;  %v4501_v39 = vpop.f32.mrb[123].mxu1 }
 0x3e1   :  { %v4438_v57 = vadd.f32 %v4437_v49, %v4436_v40  ;;  %v4502_v10 = vadd.f32 %v4501_v39, %v4500_v42  ;;  %v6643_v33 = vadd.f32 %v4499_v21, %v2961_v55 }
 0x3e3   :  { %v2966_v19 = vadd.f32 %v4438_v57, %v6562_v60  ;;  %v4439_v15 = vpop.f32.mrb[140].mxu0  ;;  %v4503_v5 = vpop.f32.mrb[124].mxu1 }
 0x3e4   :  { %v4440_v30 = vpop.f32.mrb[141].mxu0  ;;  %v4504_v50 = vpop.f32.mrb[125].mxu1 }
 0x3e5   :  { %v4441_v31 = vadd.f32 %v4440_v30, %v4439_v15  ;;  %v4505_v35 = vadd.f32 %v4504_v50, %v4503_v5  ;;  %v6646_v45 = vadd.f32 %v4502_v10, %v2966_v19 }
 0x3e7   :  { %v2971_v54 = vadd.f32 %v4441_v31, %v6562_v60  ;;  %v4442_v20 = vpop.f32.mrb[142].mxu0  ;;  %v4506_v34 = vpop.f32.mrb[126].mxu1  ;;  %v5211_v31 = vld [vmem:[%s6835_s6 + $0x78] sm:$0xff]  }
 0x3e8   :  { %v4443_v41 = vpop.f32.mrb[143].mxu0  ;;  %v4507_v8 = vpop.f32.mrb[127].mxu1  ;;  %4547 = vmatprep.subr.bf16.mxu0 %v5211_v31 }
 0x3e9   :  { %v4444_v26 = vadd.f32 %v4443_v41, %v4442_v20  ;;  %v4508_v46 = vadd.f32 %v4507_v8, %v4506_v34  ;;  %v6649_v47 = vadd.f32 %v4505_v35, %v2971_v54  ;;  %v5212_v35 = vld [vmem:[%s6835_s6 + $0x38] sm:$0xff]   ;;  %v5215_v54 = vld [vmem:[%s6836_s7 + $0x10] sm:$0xff]   ;;  %v5217_v34 = vld [vmem:[%s6836_s7 + $0x20] sm:$0xff]  }
 0x3ea   :  { %4548 = vmatpush3.bf16.msra.mxu0 %v5212_v35  ;;  %v5216_v20 = vld [vmem:[%s6836_s7 + $0x18] sm:$0xff]   ;;  %v3237_v41 = vld [vmem:[%s6832_s8 + $0xb] sm:$0x3] }
 0x3eb   :  { %v2976_v29 = vadd.f32 %v4444_v26, %v6562_v60  ;;  %v6710_v8 = vrot.slane %v3237_v41, %v5478_v1  ;;  %v6713_v26 = vrot.slane %v3237_v41, %v5484_v3 }
 0x3ed   :  { %v6652_v38 = vadd.f32 %v4508_v46, %v2976_v29 }
 0x3f2   :  { %v4679_v44 = vpop.f32.mrb[144].mxu0 }
 0x3f3   :  { %v3132_v4 = vadd.f32 %v4679_v44, %v6568_v13  ;;  %v3126_v22 = vpop.f32.mrb[145].mxu0 }
 0x3f4   :  { %v3127_v32 = vadd.f32 %v3126_v22, %v6565_v23 }
 0x3f5   :  { %v3206_v24 = vmax.f32 %v3132_v4, 0.0 }
 0x3f6   :  { %v3205_v2 = vmax.f32 %v3127_v32, 0.0 }
 0x3f8   :  { %3362 = vmatmul.mubr.f32.vlgmr.msra.gmra.mrb[128].mxu1 %v3205_v2 }
 0x3f9   :  { %3367 = vmatprep.mubr.f32.mxu1 %v5222_v59 }
 0x3fa   :  { %v4682_v53 = vpop.f32.mrb[146].mxu0 }
 0x3fb   :  { %v3142_v51 = vadd.f32 %v4682_v53, %v6592_v58  ;;  %v3136_v63 = vpop.f32.mrb[147].mxu0 }
 0x3fc   :  { %v3137_v12 = vadd.f32 %v3136_v63, %v6583_v9  ;;  %3368 = vmatmul.mubr.f32.gmra.mrb[130].mxu1 %v3206_v24 }
 0x3fd   :  { %3373 = vmatprep.mubr.f32.mxu1 %v5222_v59  ;;  %v3208_v13 = vmax.f32 %v3142_v51, 0.0 }
 0x3fe   :  { %v3207_v60 = vmax.f32 %v3137_v12, 0.0 }
 0x400   :  { %3374 = vmatmul.mubr.f32.gmra.mrb[132].mxu1 %v3207_v60 }
 0x401   :  { %3379 = vmatprep.mubr.f32.mxu1 %v5222_v59 }
 0x402   :  { %v4685_v23 = vpop.f32.mrb[148].mxu0 }
 0x403   :  { %v3152_v28 = vadd.f32 %v4685_v23, %v6613_v52  ;;  %v3146_v16 = vpop.f32.mrb[149].mxu0 }
 0x404   :  { %v3147_v0 = vadd.f32 %v3146_v16, %v6601_v7  ;;  %3380 = vmatmul.mubr.f32.gmra.mrb[134].mxu1 %v3208_v13 }
 0x405   :  { %3385 = vmatprep.mubr.f32.mxu1 %v5222_v59  ;;  %v3210_v9 = vmax.f32 %v3152_v28, 0.0 }
 0x406   :  { %v3209_v58 = vmax.f32 %v3147_v0, 0.0 }
 0x408   :  { %3386 = vmatmul.mubr.f32.gmra.mrb[136].mxu1 %v3209_v58 }
 0x409   :  { %3391 = vmatprep.mubr.f32.mxu1 %v5222_v59 }
 0x40a   :  { %v4688_v48 = vpop.f32.mrb[150].mxu0 }
 0x40b   :  { %v3162_v61 = vadd.f32 %v4688_v48, %v6628_v43  ;;  %v3156_v56 = vpop.f32.mrb[151].mxu0 }
 0x40c   :  { %v3157_v25 = vadd.f32 %v3156_v56, %v6619_v17  ;;  %3392 = vmatmul.mubr.f32.gmra.mrb[138].mxu1 %v3210_v9 }
 0x40d   :  { %3397 = vmatprep.mubr.f32.mxu1 %v5222_v59  ;;  %v3212_v7 = vmax.f32 %v3162_v61, 0.0 }
 0x40e   :  { %v3211_v52 = vmax.f32 %v3157_v25, 0.0 }
 0x410   :  { %3398 = vmatmul.mubr.f32.gmra.mrb[140].mxu1 %v3211_v52 }
 0x411   :  { %3403 = vmatprep.mubr.f32.mxu1 %v5222_v59 }
 0x412   :  { %v4691_v62 = vpop.f32.mrb[152].mxu0 }
 0x413   :  { %v3172_v37 = vadd.f32 %v4691_v62, %v6634_v6  ;;  %v3166_v27 = vpop.f32.mrb[153].mxu0 }
 0x414   :  { %v3167_v18 = vadd.f32 %v3166_v27, %v6631_v11  ;;  %3404 = vmatmul.mubr.f32.gmra.mrb[142].mxu1 %v3212_v7 }
 0x415   :  { %3409 = vmatprep.mubr.f32.mxu1 %v5222_v59  ;;  %v3214_v17 = vmax.f32 %v3172_v37, 0.0 }
 0x416   :  { %v3213_v43 = vmax.f32 %v3167_v18, 0.0 }
 0x418   :  { %3410 = vmatmul.mubr.f32.gmra.mrb[144].mxu1 %v3213_v43 }
 0x419   :  { %3415 = vmatprep.mubr.f32.mxu1 %v5222_v59 }
 0x41a   :  { %v4694_v21 = vpop.f32.mrb[154].mxu0 }
 0x41b   :  { %v3182_v55 = vadd.f32 %v4694_v21, %v6640_v36  ;;  %v3176_v40 = vpop.f32.mrb[155].mxu0 }
 0x41c   :  { %v3177_v42 = vadd.f32 %v3176_v40, %v6637_v14  ;;  %3416 = vmatmul.mubr.f32.gmra.mrb[146].mxu1 %v3214_v17 }
 0x41d   :  { %3421 = vmatprep.mubr.f32.mxu1 %v5222_v59  ;;  %v3216_v11 = vmax.f32 %v3182_v55, 0.0 }
 0x41e   :  { %v3215_v6 = vmax.f32 %v3177_v42, 0.0 }
 0x420   :  { %3422 = vmatmul.mubr.f32.gmra.mrb[148].mxu1 %v3215_v6 }
 0x421   :  { %3427 = vmatprep.mubr.f32.mxu1 %v5222_v59 }
 0x422   :  { %v4697_v49 = vpop.f32.mrb[156].mxu0 }
 0x423   :  { %v3192_v39 = vadd.f32 %v4697_v49, %v6646_v45  ;;  %v3186_v57 = vpop.f32.mrb[157].mxu0  ;;  %v5213_v45 = vld [vmem:[%s6836_s7] sm:$0xff]  }
 0x424   :  { %v3187_v10 = vadd.f32 %v3186_v57, %v6643_v33  ;;  %3428 = vmatmul.mubr.f32.gmra.mrb[150].mxu1 %v3216_v11  ;;  %4701 = vmatprep.subr.bf16.mxu0 %v5213_v45 }
 0x425   :  { %3433 = vmatprep.mubr.f32.mxu1 %v5222_v59  ;;  %v3218_v14 = vmax.f32 %v3192_v39, 0.0  ;;  %4741 = vmatprep.subr.bf16.mxu1 %v5213_v45 }
 0x426   :  { %v3217_v36 = vmax.f32 %v3187_v10, 0.0  ;;  %4749 = vmatpush3.bf16.msra.mxu1 %v5213_v45 }
 0x428   :  { %3434 = vmatmul.mubr.f32.gmra.mrb[152].mxu1 %v3217_v36 }
 0x429   :  { %3439 = vmatprep.mubr.f32.mxu1 %v5222_v59 }
 0x42a   :  { %v4700_v19 = vpop.f32.mrb[158].mxu0 }
 0x42b   :  { %v3202_v15 = vadd.f32 %v4700_v19, %v6652_v38  ;;  %v3196_v5 = vpop.f32.mrb[159].mxu0 }
 0x42c   :  { %v3197_v30 = vadd.f32 %v3196_v5, %v6649_v47  ;;  %3440 = vmatmul.mubr.f32.gmra.mrb[154].mxu1 %v3218_v14 }
 0x42d   :  { %3445 = vmatprep.mubr.f32.mxu1 %v5222_v59  ;;  %v3220_v33 = vmax.f32 %v3202_v15, 0.0 }
 0x42e   :  { %v3219_v50 = vmax.f32 %v3197_v30, 0.0 }
 0x430   :  { %3446 = vmatmul.mubr.f32.gmra.mrb[156].mxu1 %v3219_v50 }
 0x431   :  { %3451 = vmatprep.mubr.f32.mxu1 %v5222_v59  ;;  %v5214_v59 = vld [vmem:[%s6836_s7 + $0x8] sm:$0xff]  }
 0x432   :  { %4742 = vmatprep.subr.bf16.mxu1 %v5214_v59 }
 0x433   :  { %4750 = vmatpush3.bf16.msra.mxu1 %v5214_v59 }
 0x434   :  { %3452 = vmatmul.mubr.f32.gmra.mrb[158].mxu1 %v3220_v33  ;;  %4743 = vmatprep.subr.bf16.mxu1 %v5215_v54 }
 0x437   :  { %4751 = vmatpush3.bf16.msra.mxu1 %v5215_v54 }
 0x438   :  { %4744 = vmatprep.subr.bf16.mxu1 %v5216_v20 }
 0x43b   :  { %4752 = vmatpush3.bf16.msra.mxu1 %v5216_v20 }
 0x43c   :  { %4745 = vmatprep.subr.bf16.mxu1 %v5217_v34 }
 0x43f   :  { %4753 = vmatpush3.bf16.msra.mxu1 %v5217_v34 }
 0x4cb   :  { %v3363_v46 = vpop.f32.mrb[128].mxu1 }
 0x4cc   :  { %v3364_v47 = vadd.f32 %v3363_v46, %v6710_v8  ;;  %v3365_v29 = vpop.f32.mrb[129].mxu1 }
 0x4cd   :  { %v3366_v38 = vadd.f32 %v3365_v29, %v6713_v26 }
 0x4ce   :  { %v3458_v22 = vmax.f32 %v3364_v47, 0.0 }
 0x4cf   :  { %v3459_v44 = vmax.f32 %v3366_v38, 0.0  ;;  %v3369_v4 = vpop.f32.mrb[130].mxu1 }
 0x4d0   :  { %v3370_v32 = vadd.f32 %v3369_v4, %v6710_v8  ;;  %v3371_v2 = vpop.f32.mrb[131].mxu1 }
 0x4d1   :  { %v3372_v24 = vadd.f32 %v3371_v2, %v6713_v26  ;;  %3657 = vmatprep.mubr.f32.mxu0 %v3459_v44 }
 0x4d2   :  { %3658 = vmatmul.mubr.f32.vlgmr.msra.gmra.mrb[160].mxu0 %v3458_v22  ;;  %v3460_v3 = vmax.f32 %v3370_v32, 0.0 }
 0x4d3   :  { %v3461_v1 = vmax.f32 %v3372_v24, 0.0  ;;  %v3375_v53 = vpop.f32.mrb[132].mxu1  ;;  %4702 = vmatpush3.bf16.msra.mxu0 %v5213_v45 }
 0x4d4   :  { %v3376_v51 = vadd.f32 %v3375_v53, %v6710_v8  ;;  %v3377_v63 = vpop.f32.mrb[133].mxu1  ;;  %4703 = vmatprep.subr.bf16.mxu0 %v5214_v59 }
 0x4d5   :  { %v3378_v12 = vadd.f32 %v3377_v63, %v6713_v26  ;;  %3662 = vmatprep.mubr.f32.mxu0 %v3461_v1 }
 0x4d6   :  { %3663 = vmatmul.mubr.f32.gmra.mrb[162].mxu0 %v3460_v3  ;;  %v3462_v23 = vmax.f32 %v3376_v51, 0.0 }
 0x4d7   :  { %v3463_v60 = vmax.f32 %v3378_v12, 0.0  ;;  %v3381_v13 = vpop.f32.mrb[134].mxu1  ;;  %4704 = vmatpush3.bf16.msra.mxu0 %v5214_v59 }
 0x4d8   :  { %v3382_v28 = vadd.f32 %v3381_v13, %v6710_v8  ;;  %v3383_v16 = vpop.f32.mrb[135].mxu1  ;;  %4705 = vmatprep.subr.bf16.mxu0 %v5215_v54 }
 0x4d9   :  { %v3384_v0 = vadd.f32 %v3383_v16, %v6713_v26  ;;  %3667 = vmatprep.mubr.f32.mxu0 %v3463_v60 }
 0x4da   :  { %3668 = vmatmul.mubr.f32.gmra.mrb[164].mxu0 %v3462_v23  ;;  %v3464_v48 = vmax.f32 %v3382_v28, 0.0 }
 0x4db   :  { %v3465_v58 = vmax.f32 %v3384_v0, 0.0  ;;  %v3387_v9 = vpop.f32.mrb[136].mxu1  ;;  %4706 = vmatpush3.bf16.msra.mxu0 %v5215_v54 }
 0x4dc   :  { %v3388_v61 = vadd.f32 %v3387_v9, %v6710_v8  ;;  %v3389_v56 = vpop.f32.mrb[137].mxu1  ;;  %4707 = vmatprep.subr.bf16.mxu0 %v5216_v20 }
 0x4dd   :  { %v3390_v25 = vadd.f32 %v3389_v56, %v6713_v26  ;;  %3672 = vmatprep.mubr.f32.mxu0 %v3465_v58 }
 0x4de   :  { %3673 = vmatmul.mubr.f32.gmra.mrb[166].mxu0 %v3464_v48  ;;  %v3466_v62 = vmax.f32 %v3388_v61, 0.0 }
 0x4df   :  { %v3467_v52 = vmax.f32 %v3390_v25, 0.0  ;;  %v3393_v7 = vpop.f32.mrb[138].mxu1  ;;  %4708 = vmatpush3.bf16.msra.mxu0 %v5216_v20 }
 0x4e0   :  { %v3394_v37 = vadd.f32 %v3393_v7, %v6710_v8  ;;  %v3395_v27 = vpop.f32.mrb[139].mxu1  ;;  %4709 = vmatprep.subr.bf16.mxu0 %v5217_v34 }
 0x4e1   :  { %v3396_v18 = vadd.f32 %v3395_v27, %v6713_v26  ;;  %3677 = vmatprep.mubr.f32.mxu0 %v3467_v52 }
 0x4e2   :  { %3678 = vmatmul.mubr.f32.gmra.mrb[168].mxu0 %v3466_v62  ;;  %v3468_v21 = vmax.f32 %v3394_v37, 0.0 }
 0x4e3   :  { %v3469_v43 = vmax.f32 %v3396_v18, 0.0  ;;  %v3399_v17 = vpop.f32.mrb[140].mxu1  ;;  %4710 = vmatpush3.bf16.msra.mxu0 %v5217_v34 }
 0x4e4   :  { %v3400_v55 = vadd.f32 %v3399_v17, %v6710_v8  ;;  %v3401_v40 = vpop.f32.mrb[141].mxu1 }
 0x4e5   :  { %v3402_v42 = vadd.f32 %v3401_v40, %v6713_v26  ;;  %3682 = vmatprep.mubr.f32.mxu0 %v3469_v43  ;;  %v5218_v43 = vld [vmem:[%s6836_s7 + $0x28] sm:$0xff]  }
 0x4e6   :  { %3683 = vmatmul.mubr.f32.gmra.mrb[170].mxu0 %v3468_v21  ;;  %v3470_v49 = vmax.f32 %v3400_v55, 0.0  ;;  %4711 = vmatprep.subr.bf16.mxu0 %v5218_v43  ;;  %v6759_v21 = vld [vmem:[%s6832_s8 + $0xd] ss:$0 sm:$0xff] }
 0x4e7   :  { %v3471_v6 = vmax.f32 %v3402_v42, 0.0  ;;  %v3405_v11 = vpop.f32.mrb[142].mxu1  ;;  %4746 = vmatprep.subr.bf16.mxu1 %v5218_v43  ;;  %4712 = vmatpush3.bf16.msra.mxu0 %v5218_v43 }
 0x4e8   :  { %v3406_v39 = vadd.f32 %v3405_v11, %v6710_v8  ;;  %v3407_v57 = vpop.f32.mrb[143].mxu1  ;;  %4754 = vmatpush3.bf16.msra.mxu1 %v5218_v43 }
 0x4e9   :  { %v3408_v10 = vadd.f32 %v3407_v57, %v6713_v26  ;;  %3687 = vmatprep.mubr.f32.mxu0 %v3471_v6 }
 0x4ea   :  { %3688 = vmatmul.mubr.f32.gmra.mrb[172].mxu0 %v3470_v49  ;;  %v3472_v19 = vmax.f32 %v3406_v39, 0.0 }
 0x4eb   :  { %v3473_v36 = vmax.f32 %v3408_v10, 0.0  ;;  %v3411_v14 = vpop.f32.mrb[144].mxu1 }
 0x4ec   :  { %v3412_v15 = vadd.f32 %v3411_v14, %v6710_v8  ;;  %v3413_v5 = vpop.f32.mrb[145].mxu1 }
 0x4ed   :  { %v3414_v30 = vadd.f32 %v3413_v5, %v6713_v26  ;;  %3692 = vmatprep.mubr.f32.mxu0 %v3473_v36 }
 0x4ee   :  { %3693 = vmatmul.mubr.f32.gmra.mrb[174].mxu0 %v3472_v19  ;;  %v3474_v31 = vmax.f32 %v3412_v15, 0.0 }
 0x4ef   :  { %v3475_v50 = vmax.f32 %v3414_v30, 0.0  ;;  %v3417_v33 = vpop.f32.mrb[146].mxu1 }
 0x4f0   :  { %v3418_v35 = vadd.f32 %v3417_v33, %v6710_v8  ;;  %v3419_v45 = vpop.f32.mrb[147].mxu1 }
 0x4f1   :  { %v3420_v59 = vadd.f32 %v3419_v45, %v6713_v26  ;;  %3697 = vmatprep.mubr.f32.mxu0 %v3475_v50 }
 0x4f2   :  { %3698 = vmatmul.mubr.f32.gmra.mrb[176].mxu0 %v3474_v31  ;;  %v3476_v34 = vmax.f32 %v3418_v35, 0.0 }
 0x4f3   :  { %v3477_v54 = vmax.f32 %v3420_v59, 0.0  ;;  %v3423_v20 = vpop.f32.mrb[148].mxu1 }
 0x4f4   :  { %v3424_v41 = vadd.f32 %v3423_v20, %v6710_v8  ;;  %v3425_v46 = vpop.f32.mrb[149].mxu1 }
 0x4f5   :  { %v3426_v47 = vadd.f32 %v3425_v46, %v6713_v26  ;;  %3702 = vmatprep.mubr.f32.mxu0 %v3477_v54 }
 0x4f6   :  { %3703 = vmatmul.mubr.f32.gmra.mrb[178].mxu0 %v3476_v34  ;;  %v3478_v44 = vmax.f32 %v3424_v41, 0.0 }
 0x4f7   :  { %v3479_v29 = vmax.f32 %v3426_v47, 0.0  ;;  %v3429_v38 = vpop.f32.mrb[150].mxu1 }
 0x4f8   :  { %v3430_v4 = vadd.f32 %v3429_v38, %v6710_v8  ;;  %v3431_v22 = vpop.f32.mrb[151].mxu1 }
 0x4f9   :  { %v3432_v32 = vadd.f32 %v3431_v22, %v6713_v26  ;;  %3707 = vmatprep.mubr.f32.mxu0 %v3479_v29 }
 0x4fa   :  { %3708 = vmatmul.mubr.f32.gmra.mrb[180].mxu0 %v3478_v44  ;;  %v3480_v1 = vmax.f32 %v3430_v4, 0.0 }
 0x4fb   :  { %v3481_v2 = vmax.f32 %v3432_v32, 0.0  ;;  %v3435_v24 = vpop.f32.mrb[152].mxu1 }
 0x4fc   :  { %v3436_v53 = vadd.f32 %v3435_v24, %v6710_v8  ;;  %v3437_v3 = vpop.f32.mrb[153].mxu1 }
 0x4fd   :  { %v3438_v51 = vadd.f32 %v3437_v3, %v6713_v26  ;;  %3712 = vmatprep.mubr.f32.mxu0 %v3481_v2 }
 0x4fe   :  { %3713 = vmatmul.mubr.f32.gmra.mrb[182].mxu0 %v3480_v1  ;;  %v3482_v60 = vmax.f32 %v3436_v53, 0.0 }
 0x4ff   :  { %v3483_v63 = vmax.f32 %v3438_v51, 0.0  ;;  %v3441_v12 = vpop.f32.mrb[154].mxu1 }
 0x500   :  { %v3442_v13 = vadd.f32 %v3441_v12, %v6710_v8  ;;  %v3443_v23 = vpop.f32.mrb[155].mxu1 }
 0x501   :  { %v3444_v28 = vadd.f32 %v3443_v23, %v6713_v26  ;;  %3717 = vmatprep.mubr.f32.mxu0 %v3483_v63 }
 0x502   :  { %3718 = vmatmul.mubr.f32.gmra.mrb[184].mxu0 %v3482_v60  ;;  %v3484_v58 = vmax.f32 %v3442_v13, 0.0 }
 0x503   :  { %v3485_v16 = vmax.f32 %v3444_v28, 0.0  ;;  %v3447_v0 = vpop.f32.mrb[156].mxu1 }
 0x504   :  { %v3448_v9 = vadd.f32 %v3447_v0, %v6710_v8  ;;  %v3449_v48 = vpop.f32.mrb[157].mxu1 }
 0x505   :  { %v3450_v61 = vadd.f32 %v3449_v48, %v6713_v26  ;;  %3722 = vmatprep.mubr.f32.mxu0 %v3485_v16 }
 0x506   :  { %3723 = vmatmul.mubr.f32.gmra.mrb[186].mxu0 %v3484_v58  ;;  %v3486_v52 = vmax.f32 %v3448_v9, 0.0 }
 0x507   :  { %v3487_v56 = vmax.f32 %v3450_v61, 0.0  ;;  %v3453_v25 = vpop.f32.mrb[158].mxu1 }
 0x508   :  { %v3454_v7 = vadd.f32 %v3453_v25, %v6710_v8  ;;  %v3455_v62 = vpop.f32.mrb[159].mxu1  ;;  %v5219_v8 = vld [vmem:[%s6836_s7 + $0x30] sm:$0xff]  }
 0x509   :  { %v3456_v37 = vadd.f32 %v3455_v62, %v6713_v26  ;;  %3727 = vmatprep.mubr.f32.mxu0 %v3487_v56  ;;  %4713 = vmatprep.subr.bf16.mxu0 %v5219_v8  ;;  %v5220_v26 = vld [vmem:[%s6836_s7 + $0x38] sm:$0xff]  }
 0x50a   :  { %3728 = vmatmul.mubr.f32.gmra.mrb[188].mxu0 %v3486_v52  ;;  %v3488_v18 = vmax.f32 %v3454_v7, 0.0  ;;  %4747 = vmatprep.subr.bf16.mxu1 %v5219_v8 }
 0x50b   :  { %v3489_v27 = vmax.f32 %v3456_v37, 0.0  ;;  %4714 = vmatpush3.bf16.msra.mxu0 %v5219_v8  ;;  %4755 = vmatpush3.bf16.msra.mxu1 %v5219_v8 }
 0x50c   :  { %4715 = vmatprep.subr.bf16.mxu0 %v5220_v26  ;;  %4748 = vmatprep.subr.bf16.mxu1 %v5220_v26 }
 0x50d   :  { %3732 = vmatprep.mubr.f32.mxu0 %v3489_v27 }
 0x50e   :  { %3733 = vmatmul.mubr.f32.gmra.mrb[190].mxu0 %v3488_v18 }
 0x50f   :  { %4716 = vmatpush3.bf16.msra.mxu0 %v5220_v26  ;;  %4756 = vmatpush3.bf16.msra.mxu1 %v5220_v26 }
 0x5a5   :  { %v4549_v17 = vpop.f32.mrb[160].mxu0 }
 0x5a6   :  { %v4550_v55 = vpop.f32.mrb[161].mxu0 }
 0x5a7   :  { %v4551_v40 = vadd.f32 %v4550_v55, %v4549_v17 }
 0x5a9   :  { %v3660_v42 = vadd.f32 %v4551_v40, %v6759_v21  ;;  %v4552_v6 = vpop.f32.mrb[162].mxu0 }
 0x5aa   :  { %v4553_v11 = vpop.f32.mrb[163].mxu0 }
 0x5ab   :  { %v3738_v49 = vmax.f32 %v3660_v42, 0.0  ;;  %v4554_v39 = vadd.f32 %v4553_v11, %v4552_v6 }
 0x5ad   :  { %v3665_v57 = vadd.f32 %v4554_v39, %v6759_v21  ;;  %v4555_v10 = vpop.f32.mrb[164].mxu0  ;;  %4717 = vmatprep.mubr.f32.mxu0 %v3738_v49 }
 0x5ae   :  { %v4556_v36 = vpop.f32.mrb[165].mxu0 }
 0x5af   :  { %v3739_v14 = vmax.f32 %v3665_v57, 0.0  ;;  %v4557_v19 = vadd.f32 %v4556_v36, %v4555_v10 }
 0x5b1   :  { %v3670_v15 = vadd.f32 %v4557_v19, %v6759_v21  ;;  %v4558_v5 = vpop.f32.mrb[166].mxu0  ;;  %4718 = vmatmul.mubr.f32.vlgmr.msra.gmra.mrb[192].mxu0 %v3739_v14 }
 0x5b2   :  { %v4559_v30 = vpop.f32.mrb[167].mxu0 }
 0x5b3   :  { %v3740_v50 = vmax.f32 %v3670_v15, 0.0  ;;  %v4560_v33 = vadd.f32 %v4559_v30, %v4558_v5 }
 0x5b5   :  { %v3675_v31 = vadd.f32 %v4560_v33, %v6759_v21  ;;  %v4561_v35 = vpop.f32.mrb[168].mxu0  ;;  %4720 = vmatprep.mubr.f32.mxu0 %v3740_v50  ;;  %v4220_v33 = vld [vmem:[%s6832_s8 + $0xe] ss:$0 sm:$0xff] }
 0x5b6   :  { %v4562_v45 = vpop.f32.mrb[169].mxu0 }
 0x5b7   :  { %v3741_v59 = vmax.f32 %v3675_v31, 0.0  ;;  %v4563_v54 = vadd.f32 %v4562_v45, %v4561_v35 }
 0x5b9   :  { %v3680_v20 = vadd.f32 %v4563_v54, %v6759_v21  ;;  %v4564_v34 = vpop.f32.mrb[170].mxu0  ;;  %4721 = vmatmul.mubr.f32.gmra.mrb[194].mxu0 %v3741_v59 }
 0x5ba   :  { %v4565_v41 = vpop.f32.mrb[171].mxu0 }
 0x5bb   :  { %v3742_v46 = vmax.f32 %v3680_v20, 0.0  ;;  %v4566_v47 = vadd.f32 %v4565_v41, %v4564_v34 }
 0x5bd   :  { %v3685_v29 = vadd.f32 %v4566_v47, %v6759_v21  ;;  %v4567_v38 = vpop.f32.mrb[172].mxu0  ;;  %4723 = vmatprep.mubr.f32.mxu0 %v3742_v46 }
 0x5be   :  { %v4568_v44 = vpop.f32.mrb[173].mxu0 }
 0x5bf   :  { %v3743_v4 = vmax.f32 %v3685_v29, 0.0  ;;  %v4569_v22 = vadd.f32 %v4568_v44, %v4567_v38 }
 0x5c1   :  { %v3690_v32 = vadd.f32 %v4569_v22, %v6759_v21  ;;  %v4570_v2 = vpop.f32.mrb[174].mxu0  ;;  %4724 = vmatmul.mubr.f32.gmra.mrb[196].mxu0 %v3743_v4 }
 0x5c2   :  { %v4571_v24 = vpop.f32.mrb[175].mxu0 }
 0x5c3   :  { %v3744_v1 = vmax.f32 %v3690_v32, 0.0  ;;  %v4572_v53 = vadd.f32 %v4571_v24, %v4570_v2 }
 0x5c5   :  { %v3695_v3 = vadd.f32 %v4572_v53, %v6759_v21  ;;  %v4573_v51 = vpop.f32.mrb[176].mxu0  ;;  %4726 = vmatprep.mubr.f32.mxu1 %v3744_v1 }
 0x5c6   :  { %v4574_v63 = vpop.f32.mrb[177].mxu0 }
 0x5c7   :  { %v3745_v12 = vmax.f32 %v3695_v3, 0.0  ;;  %v4575_v60 = vadd.f32 %v4574_v63, %v4573_v51 }
 0x5c9   :  { %v3700_v13 = vadd.f32 %v4575_v60, %v6759_v21  ;;  %v4576_v23 = vpop.f32.mrb[178].mxu0  ;;  %4727 = vmatmul.mubr.f32.vlgmr.msra.gmra.mrb[160].mxu1 %v3745_v12 }
 0x5ca   :  { %v4577_v28 = vpop.f32.mrb[179].mxu0 }
 0x5cb   :  { %v3746_v16 = vmax.f32 %v3700_v13, 0.0  ;;  %v4578_v0 = vadd.f32 %v4577_v28, %v4576_v23 }
 0x5cd   :  { %v3705_v58 = vadd.f32 %v4578_v0, %v6759_v21  ;;  %v4579_v9 = vpop.f32.mrb[180].mxu0  ;;  %4729 = vmatprep.mubr.f32.mxu1 %v3746_v16 }
 0x5ce   :  { %v4580_v48 = vpop.f32.mrb[181].mxu0 }
 0x5cf   :  { %v3747_v61 = vmax.f32 %v3705_v58, 0.0  ;;  %v4581_v56 = vadd.f32 %v4580_v48, %v4579_v9 }
 0x5d1   :  { %v3710_v25 = vadd.f32 %v4581_v56, %v6759_v21  ;;  %v4582_v52 = vpop.f32.mrb[182].mxu0  ;;  %4730 = vmatmul.mubr.f32.gmra.mrb[162].mxu1 %v3747_v61 }
 0x5d2   :  { %v4583_v7 = vpop.f32.mrb[183].mxu0 }
 0x5d3   :  { %v3748_v62 = vmax.f32 %v3710_v25, 0.0  ;;  %v4584_v37 = vadd.f32 %v4583_v7, %v4582_v52 }
 0x5d5   :  { %v3715_v27 = vadd.f32 %v4584_v37, %v6759_v21  ;;  %v4585_v18 = vpop.f32.mrb[184].mxu0  ;;  %4732 = vmatprep.mubr.f32.mxu1 %v3748_v62 }
 0x5d6   :  { %v4586_v43 = vpop.f32.mrb[185].mxu0 }
 0x5d7   :  { %v3749_v8 = vmax.f32 %v3715_v27, 0.0  ;;  %v4587_v26 = vadd.f32 %v4586_v43, %v4585_v18 }
 0x5d9   :  { %v3720_v17 = vadd.f32 %v4587_v26, %v6759_v21  ;;  %v4588_v55 = vpop.f32.mrb[186].mxu0  ;;  %4733 = vmatmul.mubr.f32.gmra.mrb[164].mxu1 %v3749_v8 }
 0x5da   :  { %v4589_v40 = vpop.f32.mrb[187].mxu0 }
 0x5db   :  { %v3750_v42 = vmax.f32 %v3720_v17, 0.0  ;;  %v4590_v6 = vadd.f32 %v4589_v40, %v4588_v55 }
 0x5dd   :  { %v3725_v11 = vadd.f32 %v4590_v6, %v6759_v21  ;;  %v4591_v49 = vpop.f32.mrb[188].mxu0  ;;  %4735 = vmatprep.mubr.f32.mxu1 %v3750_v42 }
 0x5de   :  { %v4592_v39 = vpop.f32.mrb[189].mxu0 }
 0x5df   :  { %v3751_v57 = vmax.f32 %v3725_v11, 0.0  ;;  %v4593_v10 = vadd.f32 %v4592_v39, %v4591_v49 }
 0x5e1   :  { %v3730_v36 = vadd.f32 %v4593_v10, %v6759_v21  ;;  %v4594_v14 = vpop.f32.mrb[190].mxu0  ;;  %4736 = vmatmul.mubr.f32.gmra.mrb[166].mxu1 %v3751_v57 }
 0x5e2   :  { %v4595_v19 = vpop.f32.mrb[191].mxu0 }
 0x5e3   :  { %v3752_v15 = vmax.f32 %v3730_v36, 0.0  ;;  %v4596_v5 = vadd.f32 %v4595_v19, %v4594_v14 }
 0x5e5   :  { %v3735_v30 = vadd.f32 %v4596_v5, %v6759_v21  ;;  %4738 = vmatprep.mubr.f32.mxu1 %v3752_v15 }
 0x5e7   :  { %v3753_v50 = vmax.f32 %v3735_v30, 0.0 }
 0x5e9   :  { %4739 = vmatmul.mubr.f32.gmra.mrb[168].mxu1 %v3753_v50 }
 0x684   :  { %v4719_v31 = vpop.f32.mrb[192].mxu0 }
 0x685   :  { %v3865_v35 = vadd.f32 %v4719_v31, %v4220_v33  ;;  %v3859_v45 = vpop.f32.mrb[193].mxu0 }
 0x686   :  { %v3860_v59 = vadd.f32 %v4220_v33, %v3859_v45 }
 0x687   :  { %3939 = vst [vmem:[%s6837_s9 + $0x8] sm:$0xff] %v3865_v35 }
 0x688   :  { %3938 = vst [vmem:[%s6837_s9] sm:$0xff] %v3860_v59 }
 0x68c   :  { %v4722_v21 = vpop.f32.mrb[194].mxu0 }
 0x68d   :  { %v3875_v54 = vadd.f32 %v4722_v21, %v4220_v33  ;;  %v3869_v20 = vpop.f32.mrb[195].mxu0 }
 0x68e   :  { %v3870_v34 = vadd.f32 %v4220_v33, %v3869_v20 }
 0x68f   :  { %3941 = vst [vmem:[%s6837_s9 + $0x18] sm:$0xff] %v3875_v54 }
 0x690   :  { %3940 = vst [vmem:[%s6837_s9 + $0x10] sm:$0xff] %v3870_v34 }
 0x694   :  { %v4725_v41 = vpop.f32.mrb[196].mxu0 }
 0x695   :  { %v3885_v46 = vadd.f32 %v4725_v41, %v4220_v33  ;;  %v3879_v47 = vpop.f32.mrb[197].mxu0 }
 0x696   :  { %v3880_v29 = vadd.f32 %v4220_v33, %v3879_v47 }
 0x697   :  { %3943 = vst [vmem:[%s6837_s9 + $0x28] sm:$0xff] %v3885_v46 }
 0x698   :  { %3942 = vst [vmem:[%s6837_s9 + $0x20] sm:$0xff] %v3880_v29 }
 0x69c   :  { %v4728_v38 = vpop.f32.mrb[160].mxu1 }
 0x69d   :  { %v3895_v44 = vadd.f32 %v4728_v38, %v4220_v33  ;;  %v3889_v4 = vpop.f32.mrb[161].mxu1 }
 0x69e   :  { %v3890_v22 = vadd.f32 %v4220_v33, %v3889_v4 }
 0x69f   :  { %3945 = vst [vmem:[%s6837_s9 + $0x38] sm:$0xff] %v3895_v44 }
 0x6a0   :  { %3944 = vst [vmem:[%s6837_s9 + $0x30] sm:$0xff] %v3890_v22 }
 0x6a4   :  { %v4731_v32 = vpop.f32.mrb[162].mxu1 }
 0x6a5   :  { %v3905_v2 = vadd.f32 %v4731_v32, %v4220_v33  ;;  %v3899_v24 = vpop.f32.mrb[163].mxu1 }
 0x6a6   :  { %v3900_v1 = vadd.f32 %v4220_v33, %v3899_v24 }
 0x6a7   :  { %3947 = vst [vmem:[%s6837_s9 + $0x48] sm:$0xff] %v3905_v2 }
 0x6a8   :  { %3946 = vst [vmem:[%s6837_s9 + $0x40] sm:$0xff] %v3900_v1 }
 0x6ac   :  { %v4734_v53 = vpop.f32.mrb[164].mxu1 }
 0x6ad   :  { %v3915_v3 = vadd.f32 %v4734_v53, %v4220_v33  ;;  %v3909_v51 = vpop.f32.mrb[165].mxu1 }
 0x6ae   :  { %v3910_v63 = vadd.f32 %v4220_v33, %v3909_v51 }
 0x6af   :  { %3949 = vst [vmem:[%s6837_s9 + $0x58] sm:$0xff] %v3915_v3 }
 0x6b0   :  { %3948 = vst [vmem:[%s6837_s9 + $0x50] sm:$0xff] %v3910_v63 }
 0x6b4   :  { %v4737_v12 = vpop.f32.mrb[166].mxu1 }
 0x6b5   :  { %v3925_v60 = vadd.f32 %v4737_v12, %v4220_v33  ;;  %v3919_v13 = vpop.f32.mrb[167].mxu1 }
 0x6b6   :  { %v3920_v23 = vadd.f32 %v4220_v33, %v3919_v13 }
 0x6b7   :  { %3951 = vst [vmem:[%s6837_s9 + $0x68] sm:$0xff] %v3925_v60 }
 0x6b8   :  { %3950 = vst [vmem:[%s6837_s9 + $0x60] sm:$0xff] %v3920_v23 }
 0x6bc   :  { %v4740_v28 = vpop.f32.mrb[168].mxu1 }
 0x6bd   :  { %v3935_v16 = vadd.f32 %v4740_v28, %v4220_v33  ;;  %v3929_v0 = vpop.f32.mrb[169].mxu1 }
 0x6be   :  { %v3930_v58 = vadd.f32 %v4220_v33, %v3929_v0 }
 0x6bf   :  { %3953 = vst [vmem:[%s6837_s9 + $0x78] sm:$0xff] %v3935_v16 }
 0x6c0   :  { %3952 = vst [vmem:[%s6837_s9 + $0x70] sm:$0xff] %v3930_v58 }

</bundles_post_ra>
